<compile_context>
chip_gen: v7x
topology: tpu7x:2x2x1
jax: 0.10.0
libtpu: 0.0.40
codegen_flags: <defaults>
</compile_context>

<pallas_src>
import math

import jax
import jax.numpy as jnp
from jax import lax
from jax.experimental import pallas as pl
from jax.experimental.pallas import tpu as pltpu

D_MODEL = 8
H = 2
D_K = D_MODEL // H


def _mha_kernel(q_ref, k_ref, v_ref, mask_ref, wqk_ref, wvo_ref, o_ref):
    # q/k/v/o refs: (R, D) flattened rows; mask_ref: (R, R); w refs: (D, H*D).
    r, d = q_ref.shape

    xq = q_ref[...]
    xk = k_ref[...]
    xv = v_ref[...]

    # Fused projections: one (R, D) @ (D, H*D) matmul for all heads' folded
    # Q*K weights and one for the folded V*O weights (scale already baked in).
    t_all = jnp.dot(xq, wqk_ref[...], preferred_element_type=jnp.float32)   # (R, H*D)
    vo_all = jnp.dot(xv, wvo_ref[...], preferred_element_type=jnp.float32)  # (R, H*D)

    # Additive cross-batch mask (0 within a batch element, -1e30 across).
    neg = mask_ref[...]                                                     # (R, R)

    acc = None
    for hh in range(H):  # H = 2, static unroll
        t_h = t_all[:, hh * d:(hh + 1) * d]    # static lane slice, (R, D)
        vo_h = vo_all[:, hh * d:(hh + 1) * d]  # static lane slice, (R, D)

        # Block-diagonal scores: single MXU matmul over the flattened rows,
        # contracting the last dims (no explicit transpose materialized).
        scores = lax.dot_general(t_h, xk, (((1,), (1,)), ((), ())),
                                 preferred_element_type=jnp.float32)        # (R, R)
        # Mask cross-batch entries BEFORE the row max so exp() zeroes them.
        scores = scores + neg

        # Numerically-stable softmax; normalization via EUP approx reciprocal.
        scores = scores - jnp.max(scores, axis=-1, keepdims=True)
        p = jnp.exp(scores)
        p = p * pl.reciprocal(jnp.sum(p, axis=-1, keepdims=True), approx=True)

        # Attention-weighted, O-projected values: (R, R) @ (R, D).
        contrib = jnp.dot(p, vo_h, preferred_element_type=jnp.float32)      # (R, D)
        acc = contrib if acc is None else acc + contrib                     # head 0 init

    o_ref[...] = acc.astype(o_ref.dtype)


def _pack_weights(wq, wk, wv, wo):
    """Fold per-head Q*K and V*O weight products (wrapper-side, done once)."""
    d = wq.shape[0]
    dk = d // H
    scale = 1.0 / math.sqrt(dk)
    wq_t, wk_t, wv_t, wo_t = wq.T, wk.T, wv.T, wo.T   # (in, out) layout
    wqk = [
        (wq_t[:, h * dk:(h + 1) * dk] * scale) @ wk_t[:, h * dk:(h + 1) * dk].T
        for h in range(H)
    ]
    wvo = [
        wv_t[:, h * dk:(h + 1) * dk] @ wo_t[h * dk:(h + 1) * dk, :]
        for h in range(H)
    ]
    # Concatenate along the output dim: (D, H*D) each.
    return jnp.concatenate(wqk, axis=1), jnp.concatenate(wvo, axis=1)


def _chip_hint():
    """Best-effort (target_rows_per_block, num_tensorcores) for this chip."""
    kind = ""
    try:
        kind = jax.devices()[0].device_kind.lower()
    except Exception:  # pragma: no cover - defensive; fall back to defaults
        pass
    if "v5 lite" in kind or "v5e" in kind or "v5lite" in kind:
        return 128, 1          # v5e: 128x128 MXU, single TensorCore
    if "v6" in kind:
        return 256, 1          # v6e: 256x256 MXU, single TensorCore
    if "v7" in kind or "7x" in kind:
        return 256, 2          # v7x: 256x256 MXU, 2 TensorCores
    if "v4" in kind or "v5p" in kind:
        return 128, 2          # megacore chips
    return 256, 1              # unknown: fill a 256-row block, don't split


def _pick_block_b(B, S):
    """Largest divisor of B whose flattened block has <= target MXU rows."""
    target_rows, num_cores = _chip_hint()
    bt = min(B, max(1, target_rows // S))
    while B % bt:
        bt -= 1
    # Only force a second grid step on multi-TensorCore chips.
    if num_cores >= 2 and B >= 2 and B // bt < 2:
        bt = max(1, B // 2)
        while B % bt:
            bt -= 1
    return bt


def mha_forward(q, k, v, wq, wk, wv, wo, *, block_b=None):
    B, S, D = q.shape
    assert D == D_MODEL

    wqk_cat, wvo_cat = _pack_weights(wq, wk, wv, wo)   # (D, H*D) each

    bt = block_b if block_b is not None else _pick_block_b(B, S)
    assert B % bt == 0, "block_b must divide batch"
    R = bt * S

    # Additive cross-batch mask for the block-diagonal scores formulation.
    row_batch = jnp.arange(R, dtype=jnp.int32) // S
    add_mask = jnp.where(row_batch[:, None] == row_batch[None, :],
                         jnp.float32(0.0), jnp.float32(-1e30))

    # Flatten activations to (B*S, D) rows in the wrapper (free XLA reshape).
    q2 = q.reshape(B * S, D)
    k2 = k.reshape(B * S, D)
    v2 = v.reshape(B * S, D)

    act_spec = pl.BlockSpec((R, D), lambda b: (b, 0))
    mask_spec = pl.BlockSpec((R, R), lambda b: (0, 0))
    w_spec = pl.BlockSpec((D, H * D), lambda b: (0, 0))

    out_flat = pl.pallas_call(
        _mha_kernel,
        out_shape=jax.ShapeDtypeStruct((B * S, D), q.dtype),
        grid_spec=pltpu.PrefetchScalarGridSpec(
            num_scalar_prefetch=0,
            grid=(B // bt,),
            in_specs=[act_spec, act_spec, act_spec, mask_spec, w_spec, w_spec],
            out_specs=act_spec,
        ),
        compiler_params=pltpu.CompilerParams(
            dimension_semantics=("parallel",),
        ),
    )(q2, k2, v2, add_mask, wqk_cat, wvo_cat)

    return out_flat.reshape(B, S, D)


def _reference_mha(q, k, v, wq, wk, wv, wo):
    # Pure-JAX reference mirroring the PyTorch module exactly (original weights).
    B, S, D = q.shape
    query = q @ wq.T
    key = k @ wk.T
    value = v @ wv.T
    query = query.reshape(B, S, H, D_K).transpose(0, 2, 1, 3)
    key = key.reshape(B, S, H, D_K).transpose(0, 2, 1, 3)
    value = value.reshape(B, S, H, D_K).transpose(0, 2, 1, 3)
    scores = jnp.einsum("bhqd,bhkd->bhqk", query, key) / math.sqrt(D_K)
    probs = jax.nn.softmax(scores, axis=-1)
    x = jnp.einsum("bhqk,bhkd->bhqd", probs, value)
    x = x.transpose(0, 2, 1, 3).reshape(B, S, H * D_K)
    return x @ wo.T


if __name__ == "__main__":
    key0 = jax.random.PRNGKey(0)
    kq, kk, kv, k1, k2, k3, k4 = jax.random.split(key0, 7)

    B, S = 32, 8  # small, but enough rows (256) to exercise block-diagonal batching

    q = jax.random.normal(kq, (B, S, D_MODEL), dtype=jnp.float32)
    k = jax.random.normal(kk, (B, S, D_MODEL), dtype=jnp.float32)
    v = jax.random.normal(kv, (B, S, D_MODEL), dtype=jnp.float32)

    # Deterministic PyTorch-style (out, in) weights, kaiming-uniform-like bound.
    bound = 1.0 / math.sqrt(D_MODEL)
    wq = jax.random.uniform(k1, (D_MODEL, D_MODEL), jnp.float32, -bound, bound)
    wk = jax.random.uniform(k2, (D_MODEL, D_MODEL), jnp.float32, -bound, bound)
    wv = jax.random.uniform(k3, (D_MODEL, D_MODEL), jnp.float32, -bound, bound)
    wo = jax.random.uniform(k4, (D_MODEL, D_MODEL), jnp.float32, -bound, bound)

    ref = _reference_mha(q, k, v, wq, wk, wv, wo)

    # Auto block size (chip-dependent).
    out = mha_forward(q, k, v, wq, wk, wv, wo)
    out = jax.block_until_ready(out)
    assert out.shape == (B, S, D_MODEL)
    # Tolerance accommodates the EUP approx-reciprocal softmax normalization
    # and the folded-weight associativity change.
    assert jnp.allclose(out, ref, atol=2e-3, rtol=2e-3), "mismatch vs reference"

    # Explicit multi-step grid (exercises the cross-batch mask with Bt > 1
    # batch elements per block AND multiple grid steps).
    out2 = mha_forward(q, k, v, wq, wk, wv, wo, block_b=8)
    out2 = jax.block_until_ready(out2)
    assert jnp.allclose(out2, ref, atol=2e-3, rtol=2e-3), "mismatch vs reference (bt=8)"

    print("KERNEL_OK")
</pallas_src>

<mosaic_0001>
module attributes {stable_mosaic.version = 11 : i64} {
  func.func @_mha_kernel(%arg0: i32, %arg1: memref<256x8xf32, #tpu.memory_space<vmem>>, %arg2: memref<256x8xf32, #tpu.memory_space<vmem>>, %arg3: memref<256x8xf32, #tpu.memory_space<vmem>>, %arg4: memref<256x256xf32, #tpu.memory_space<vmem>>, %arg5: memref<8x16xf32, #tpu.memory_space<vmem>>, %arg6: memref<8x16xf32, #tpu.memory_space<vmem>>, %arg7: memref<256x8xf32, #tpu.memory_space<vmem>>) attributes {dimension_semantics = [#tpu.dimension_semantics<parallel>], iteration_bounds = array<i64: 1>, scalar_prefetch = 0 : i64, scratch_operands = 0 : i64, tpu.core_type = #tpu.core_type<tc>, window_params = [{transform_indices = @transform_0, window_bounds = array<i64: 256, 8>}, {transform_indices = @transform_1, window_bounds = array<i64: 256, 8>}, {transform_indices = @transform_2, window_bounds = array<i64: 256, 8>}, {pipeline_mode = #tpu.pipeline_mode<synchronous>, transform_indices = @transform_3, window_bounds = array<i64: 256, 256>}, {pipeline_mode = #tpu.pipeline_mode<synchronous>, transform_indices = @transform_4, window_bounds = array<i64: 8, 16>}, {pipeline_mode = #tpu.pipeline_mode<synchronous>, transform_indices = @transform_5, window_bounds = array<i64: 8, 16>}, {transform_indices = @transform_6, window_bounds = array<i64: 256, 8>}]} {
    %c0 = arith.constant 0 : index
    %c0_0 = arith.constant 0 : index
    %0 = vector.load %arg1[%c0, %c0_0] : memref<256x8xf32, #tpu.memory_space<vmem>>, vector<256x8xf32>
    %c0_1 = arith.constant 0 : index
    %c0_2 = arith.constant 0 : index
    %1 = vector.load %arg2[%c0_1, %c0_2] : memref<256x8xf32, #tpu.memory_space<vmem>>, vector<256x8xf32>
    %c0_3 = arith.constant 0 : index
    %c0_4 = arith.constant 0 : index
    %2 = vector.load %arg3[%c0_3, %c0_4] : memref<256x8xf32, #tpu.memory_space<vmem>>, vector<256x8xf32>
    %c0_5 = arith.constant 0 : index
    %c0_6 = arith.constant 0 : index
    %3 = vector.load %arg5[%c0_5, %c0_6] : memref<8x16xf32, #tpu.memory_space<vmem>>, vector<8x16xf32>
    %cst = arith.constant dense<0.000000e+00> : vector<256x16xf32>
    %4 = tpu.matmul %0, %3, %cst {dimension_numbers = #tpu.dot_dimension_numbers<[1], [0], [0], [1], [0, 0, 1, 1], [], []>} : vector<256x8xf32>, vector<8x16xf32>, vector<256x16xf32> -> vector<256x16xf32>
    %c0_7 = arith.constant 0 : index
    %c0_8 = arith.constant 0 : index
    %5 = vector.load %arg6[%c0_7, %c0_8] : memref<8x16xf32, #tpu.memory_space<vmem>>, vector<8x16xf32>
    %cst_9 = arith.constant dense<0.000000e+00> : vector<256x16xf32>
    %6 = tpu.matmul %2, %5, %cst_9 {dimension_numbers = #tpu.dot_dimension_numbers<[1], [0], [0], [1], [0, 0, 1, 1], [], []>} : vector<256x8xf32>, vector<8x16xf32>, vector<256x16xf32> -> vector<256x16xf32>
    %c0_10 = arith.constant 0 : index
    %c0_11 = arith.constant 0 : index
    %7 = vector.load %arg4[%c0_10, %c0_11] : memref<256x256xf32, #tpu.memory_space<vmem>>, vector<256x256xf32>
    %8 = vector.extract_strided_slice %4 {offsets = [0, 0], sizes = [256, 8], strides = [1, 1]} : vector<256x16xf32> to vector<256x8xf32>
    %9 = vector.extract_strided_slice %6 {offsets = [0, 0], sizes = [256, 8], strides = [1, 1]} : vector<256x16xf32> to vector<256x8xf32>
    %cst_12 = arith.constant dense<0.000000e+00> : vector<256x256xf32>
    %10 = tpu.matmul %8, %1, %cst_12 {dimension_numbers = #tpu.dot_dimension_numbers<[1], [1], [0], [0], [0, 0, 1, 0], [], []>} : vector<256x8xf32>, vector<256x8xf32>, vector<256x256xf32> -> vector<256x256xf32>
    %11 = arith.addf %10, %7 : vector<256x256xf32>
    %cst_13 = arith.constant dense<0xFF800000> : vector<256xf32>
    %12 = vector.multi_reduction <maximumf>, %11, %cst_13 [1] : vector<256x256xf32> to vector<256xf32>
    %13 = vector.shape_cast %12 : vector<256xf32> to vector<256x1xf32>
    %14 = vector.broadcast %13 : vector<256x1xf32> to vector<256x256xf32>
    %15 = arith.subf %11, %14 : vector<256x256xf32>
    %16 = math.exp %15 : vector<256x256xf32>
    %cst_14 = arith.constant dense<0.000000e+00> : vector<256xf32>
    %17 = vector.multi_reduction <add>, %16, %cst_14 [1] : vector<256x256xf32> to vector<256xf32>
    %18 = vector.shape_cast %17 : vector<256xf32> to vector<256x1xf32>
    %19 = tpu.reciprocal %18 {approx = true} : vector<256x1xf32> -> vector<256x1xf32>
    %20 = vector.broadcast %19 : vector<256x1xf32> to vector<256x256xf32>
    %21 = arith.mulf %16, %20 : vector<256x256xf32>
    %cst_15 = arith.constant dense<0.000000e+00> : vector<256x8xf32>
    %22 = tpu.matmul %21, %9, %cst_15 {dimension_numbers = #tpu.dot_dimension_numbers<[1], [0], [0], [1], [0, 0, 1, 1], [], []>} : vector<256x256xf32>, vector<256x8xf32>, vector<256x8xf32> -> vector<256x8xf32>
    %23 = vector.extract_strided_slice %4 {offsets = [0, 8], sizes = [256, 8], strides = [1, 1]} : vector<256x16xf32> to vector<256x8xf32>
    %24 = vector.extract_strided_slice %6 {offsets = [0, 8], sizes = [256, 8], strides = [1, 1]} : vector<256x16xf32> to vector<256x8xf32>
    %cst_16 = arith.constant dense<0.000000e+00> : vector<256x256xf32>
    %25 = tpu.matmul %23, %1, %cst_16 {dimension_numbers = #tpu.dot_dimension_numbers<[1], [1], [0], [0], [0, 0, 1, 0], [], []>} : vector<256x8xf32>, vector<256x8xf32>, vector<256x256xf32> -> vector<256x256xf32>
    %26 = arith.addf %25, %7 : vector<256x256xf32>
    %cst_17 = arith.constant dense<0xFF800000> : vector<256xf32>
    %27 = vector.multi_reduction <maximumf>, %26, %cst_17 [1] : vector<256x256xf32> to vector<256xf32>
    %28 = vector.shape_cast %27 : vector<256xf32> to vector<256x1xf32>
    %29 = vector.broadcast %28 : vector<256x1xf32> to vector<256x256xf32>
    %30 = arith.subf %26, %29 : vector<256x256xf32>
    %31 = math.exp %30 : vector<256x256xf32>
    %cst_18 = arith.constant dense<0.000000e+00> : vector<256xf32>
    %32 = vector.multi_reduction <add>, %31, %cst_18 [1] : vector<256x256xf32> to vector<256xf32>
    %33 = vector.shape_cast %32 : vector<256xf32> to vector<256x1xf32>
    %34 = tpu.reciprocal %33 {approx = true} : vector<256x1xf32> -> vector<256x1xf32>
    %35 = vector.broadcast %34 : vector<256x1xf32> to vector<256x256xf32>
    %36 = arith.mulf %31, %35 : vector<256x256xf32>
    %cst_19 = arith.constant dense<0.000000e+00> : vector<256x8xf32>
    %37 = tpu.matmul %36, %24, %cst_19 {dimension_numbers = #tpu.dot_dimension_numbers<[1], [0], [0], [1], [0, 0, 1, 1], [], []>} : vector<256x256xf32>, vector<256x8xf32>, vector<256x8xf32> -> vector<256x8xf32>
    %38 = arith.addf %22, %37 : vector<256x8xf32>
    %c0_20 = arith.constant 0 : index
    %c0_21 = arith.constant 0 : index
    %39 = vector.load %arg7[%c0_20, %c0_21] : memref<256x8xf32, #tpu.memory_space<vmem>>, vector<256x8xf32>
    tpu.vector_store %arg7[%c0_20, %c0_21], %38 {strides = array<i32>} : memref<256x8xf32, #tpu.memory_space<vmem>>, vector<256x8xf32>,
    return
  }
  func.func @transform_0(%arg0: i32) -> (i32, i32) {
    %c0_i32 = arith.constant 0 : i32
    %c0_i32_0 = arith.constant 0 : i32
    return %arg0, %c0_i32 : i32, i32
  }
  func.func @transform_1(%arg0: i32) -> (i32, i32) {
    %c0_i32 = arith.constant 0 : i32
    %c0_i32_0 = arith.constant 0 : i32
    return %arg0, %c0_i32 : i32, i32
  }
  func.func @transform_2(%arg0: i32) -> (i32, i32) {
    %c0_i32 = arith.constant 0 : i32
    %c0_i32_0 = arith.constant 0 : i32
    return %arg0, %c0_i32 : i32, i32
  }
  func.func @transform_3(%arg0: i32) -> (i32, i32) {
    %c0_i32 = arith.constant 0 : i32
    %c0_i32_0 = arith.constant 0 : i32
    %c0_i32_1 = arith.constant 0 : i32
    return %c0_i32, %c0_i32_0 : i32, i32
  }
  func.func @transform_4(%arg0: i32) -> (i32, i32) {
    %c0_i32 = arith.constant 0 : i32
    %c0_i32_0 = arith.constant 0 : i32
    %c0_i32_1 = arith.constant 0 : i32
    return %c0_i32, %c0_i32_0 : i32, i32
  }
  func.func @transform_5(%arg0: i32) -> (i32, i32) {
    %c0_i32 = arith.constant 0 : i32
    %c0_i32_0 = arith.constant 0 : i32
    %c0_i32_1 = arith.constant 0 : i32
    return %c0_i32, %c0_i32_0 : i32, i32
  }
  func.func @transform_6(%arg0: i32) -> (i32, i32) {
    %c0_i32 = arith.constant 0 : i32
    %c0_i32_0 = arith.constant 0 : i32
    return %arg0, %c0_i32 : i32, i32
  }
}

</mosaic_0001>

<bundles_post_ra>
// kernel: tpu_custom_call.1
= control target key start
LH: loop header
LB: loop body
LE: loop exit
PB: predicated region body
PF: predicated region fallthrough
CT: control target
= control target key end

     0   :  { %vm120_vm0 = vcmask 64512   ;;  %s7418_s4 = inlined_call_operand.vmem [shape: f32[8,16], index: 4, kind: input, shape index: {}]   ;;  %s7419_s0 = inlined_call_operand.vmem [shape: f32[256,8], index: 0, kind: input, shape index: {}]   ;;  %s7420_s5 = inlined_call_operand.vmem [shape: f32[8,16], index: 5, kind: input, shape index: {}]   ;;  %s7421_s2 = inlined_call_operand.vmem [shape: f32[256,8], index: 2, kind: input, shape index: {}]   ;;  %s7422_s1 = inlined_call_operand.vmem [shape: f32[256,8], index: 1, kind: input, shape index: {}]   ;;  %s7423_s3 = inlined_call_operand.vmem [shape: f32[256,256], index: 3, kind: input, shape index: {}]   ;;  %s7424_s6 = inlined_call_operand.vmem [shape: f32[256,8], index: 6, kind: output, shape index: {}]  }
   0x1   :  { %v119_v0 = vld [vmem:[%s7418_s4] sm:$0xff]  ;;  %v24_v2 = vld [vmem:[%s7419_s0 + $0x8] sm:$0xff]  ;;  %v25_v3 = vld [vmem:[%s7419_s0 + $0x10] sm:$0xff] }
   0x2   :  { %v23_v1 = vld [vmem:[%s7419_s0] sm:$0xff]  ;;  %3686 = vmatprep.subr.mxu0 %v119_v0  ;;  %v26_v4 = vld [vmem:[%s7419_s0 + $0x18] sm:$0xff]  ;;  %v28_v6 = vld [vmem:[%s7419_s0 + $0x28] sm:$0xff] }
   0x3   :  { %3688 = vmatprep.mubr.msk.f32.mxu0 %vm120_vm0, %v23_v1  ;;  %3687 = vmatpush3.msra.mxu0 %v119_v0  ;;  %v27_v5 = vld [vmem:[%s7419_s0 + $0x20] sm:$0xff]  ;;  %v29_v7 = vld [vmem:[%s7419_s0 + $0x30] sm:$0xff]  ;;  %v30_v8 = vld [vmem:[%s7419_s0 + $0x38] sm:$0xff] }
   0x4   :  { %3689 = vmatmul.mubr.msk.f32.vlgmr.msra.gmra.mrb[0].mxu0 %vm120_vm0, %v24_v2  ;;  %v31_v9 = vld [vmem:[%s7419_s0 + $0x40] sm:$0xff]  ;;  %v88_v12 = vld [vmem:[%s7421_s2 + $0x8] sm:$0xff]  ;;  %vm4599_vm1 = vmpackc.low %vm120_vm0, %vm120_vm0 }
   0x5   :  { %3691 = vmatprep.mubr.msk.f32.mxu0 %vm120_vm0, %v25_v3  ;;  %v442_v10 = vld [vmem:[%s7420_s5] sm:$0xff]  ;;  %v72_v14 = vld [vmem:[%s7422_s1 + $0x88] sm:$0xff]  ;;  %v89_v19 = vld [vmem:[%s7421_s2 + $0x10] sm:$0xff] }
   0x6   :  { %v87_v11 = vld [vmem:[%s7421_s2] sm:$0xff]  ;;  %3736 = vmatprep.subr.mxu1 %v442_v10  ;;  %v56_v18 = vld [vmem:[%s7422_s1 + $0x8] sm:$0xff]  ;;  %v90_v20 = vld [vmem:[%s7421_s2 + $0x18] sm:$0xff] }
   0x7   :  { %v71_v13 = vld [vmem:[%s7422_s1 + $0x80] sm:$0xff]  ;;  %3737 = vmatpush3.msra.mxu1 %v442_v10  ;;  %3738 = vmatprep.mubr.msk.f32.mxu1 %vm120_vm0, %v87_v11  ;;  %v73_v21 = vld [vmem:[%s7422_s1 + $0x90] sm:$0xff]  ;;  %v74_v22 = vld [vmem:[%s7422_s1 + $0x98] sm:$0xff] }
   0x8   :  { %3692 = vmatmul.mubr.msk.f32.gmra.mrb[2].mxu0 %vm120_vm0, %v26_v4  ;;  %v4604_v16 = vpack.c.bf16 %v72_v14, %v71_v13  ;;  %v55_v17 = vld [vmem:[%s7422_s1] sm:$0xff]  ;;  %3739 = vmatmul.mubr.msk.f32.vlgmr.msra.gmra.mrb[0].mxu1 %vm120_vm0, %v88_v12  ;;  %v32_v23 = vld [vmem:[%s7419_s0 + $0x48] sm:$0xff]  ;;  %v33_v26 = vld [vmem:[%s7419_s0 + $0x50] sm:$0xff]  ;;  %v4642_v27 = vpack.c.bf16 %v74_v22, %v73_v21 }
   0x9   :  { %3694 = vmatprep.mubr.msk.f32.mxu0 %vm120_vm0, %v27_v5  ;;  %v4633_v24 = vpack.c.bf16 %v56_v18, %v55_v17  ;;  %3741 = vmatprep.mubr.msk.f32.mxu1 %vm120_vm0, %v89_v19  ;;  %v91_v25 = vld [vmem:[%s7421_s2 + $0x20] sm:$0xff]  ;;  %v92_v28 = vld [vmem:[%s7421_s2 + $0x28] sm:$0xff]  ;;  %v34_v29 = vld [vmem:[%s7419_s0 + $0x58] sm:$0xff] }
   0xa   :  { %3788 = vmatprep.subr.msk.bf16.mxu1 %vm4599_vm1, %v4604_v16  ;;  %v93_v30 = vld [vmem:[%s7421_s2 + $0x30] sm:$0xff]  ;;  %v35_v31 = vld [vmem:[%s7419_s0 + $0x60] sm:$0xff]  ;;  %v58_v33 = vld [vmem:[%s7422_s1 + $0x18] sm:$0xff] }
   0xb   :  { %v57_v32 = vld [vmem:[%s7422_s1 + $0x10] sm:$0xff]  ;;  %v75_v34 = vld [vmem:[%s7422_s1 + $0xa0] sm:$0xff]  ;;  %v76_v35 = vld [vmem:[%s7422_s1 + $0xa8] sm:$0xff] }
   0xc   :  { %3695 = vmatmul.mubr.msk.f32.gmra.mrb[4].mxu0 %vm120_vm0, %v28_v6  ;;  %3742 = vmatmul.mubr.msk.f32.gmra.mrb[2].mxu1 %vm120_vm0, %v90_v20  ;;  %v94_v36 = vld [vmem:[%s7421_s2 + $0x38] sm:$0xff]  ;;  %v36_v37 = vld [vmem:[%s7419_s0 + $0x68] sm:$0xff]  ;;  %v4688_v38 = vpack.c.bf16 %v58_v33, %v57_v32  ;;  %v95_v39 = vld [vmem:[%s7421_s2 + $0x40] sm:$0xff]  ;;  %v4696_v41 = vpack.c.bf16 %v76_v35, %v75_v34 }
   0xd   :  { %3697 = vmatprep.mubr.msk.f32.mxu0 %vm120_vm0, %v29_v7  ;;  %3744 = vmatprep.mubr.msk.f32.mxu1 %vm120_vm0, %v91_v25  ;;  %v37_v40 = vld [vmem:[%s7419_s0 + $0x70] sm:$0xff]  ;;  %v96_v42 = vld [vmem:[%s7421_s2 + $0x48] sm:$0xff]  ;;  %v38_v43 = vld [vmem:[%s7419_s0 + $0x78] sm:$0xff] }
   0xe   :  { %3791 = vmatpush3.bf16.xpose.msk.msra.mxu1 %vm4599_vm1, %v4633_v24  ;;  %v97_v44 = vld [vmem:[%s7421_s2 + $0x50] sm:$0xff]  ;;  %v39_v45 = vld [vmem:[%s7419_s0 + $0x80] sm:$0xff]  ;;  %v60_v47 = vld [vmem:[%s7422_s1 + $0x28] sm:$0xff] }
   0xf   :  { %3794 = vmatprep.subr.msk.bf16.mxu1 %vm4599_vm1, %v4642_v27  ;;  %v59_v46 = vld [vmem:[%s7422_s1 + $0x20] sm:$0xff]  ;;  %v77_v48 = vld [vmem:[%s7422_s1 + $0xb0] sm:$0xff]  ;;  %v78_v49 = vld [vmem:[%s7422_s1 + $0xb8] sm:$0xff] }
  0x10   :  { %3698 = vmatmul.mubr.msk.f32.gmra.mrb[6].mxu0 %vm120_vm0, %v30_v8  ;;  %3745 = vmatmul.mubr.msk.f32.gmra.mrb[4].mxu1 %vm120_vm0, %v92_v28  ;;  %v98_v50 = vld [vmem:[%s7421_s2 + $0x58] sm:$0xff]  ;;  %v40_v51 = vld [vmem:[%s7419_s0 + $0x88] sm:$0xff]  ;;  %v4742_v52 = vpack.c.bf16 %v60_v47, %v59_v46  ;;  %v99_v53 = vld [vmem:[%s7421_s2 + $0x60] sm:$0xff]  ;;  %v4750_v55 = vpack.c.bf16 %v78_v49, %v77_v48 }
  0x11   :  { %3700 = vmatprep.mubr.msk.f32.mxu0 %vm120_vm0, %v31_v9  ;;  %3747 = vmatprep.mubr.msk.f32.mxu1 %vm120_vm0, %v93_v30  ;;  %v41_v54 = vld [vmem:[%s7419_s0 + $0x90] sm:$0xff]  ;;  %v100_v56 = vld [vmem:[%s7421_s2 + $0x68] sm:$0xff]  ;;  %v42_v57 = vld [vmem:[%s7419_s0 + $0x98] sm:$0xff] }
  0x12   :  { %v101_v58 = vld [vmem:[%s7421_s2 + $0x70] sm:$0xff]  ;;  %v43_v59 = vld [vmem:[%s7419_s0 + $0xa0] sm:$0xff]  ;;  %v62_v61 = vld [vmem:[%s7422_s1 + $0x38] sm:$0xff] }
  0x13   :  { %v61_v60 = vld [vmem:[%s7422_s1 + $0x30] sm:$0xff]  ;;  %v79_v62 = vld [vmem:[%s7422_s1 + $0xc0] sm:$0xff]  ;;  %v80_v63 = vld [vmem:[%s7422_s1 + $0xc8] sm:$0xff] }
  0x14   :  { %3701 = vmatmul.mubr.msk.f32.gmra.mrb[8].mxu0 %vm120_vm0, %v32_v23  ;;  %3748 = vmatmul.mubr.msk.f32.gmra.mrb[6].mxu1 %vm120_vm0, %v94_v36  ;;  %v102_v0 = vld [vmem:[%s7421_s2 + $0x78] sm:$0xff]  ;;  %v44_v1 = vld [vmem:[%s7419_s0 + $0xa8] sm:$0xff]  ;;  %v4796_v2 = vpack.c.bf16 %v62_v61, %v61_v60  ;;  %v103_v3 = vld [vmem:[%s7421_s2 + $0x80] sm:$0xff]  ;;  %v4804_v5 = vpack.c.bf16 %v80_v63, %v79_v62 }
  0x15   :  { %3703 = vmatprep.mubr.msk.f32.mxu0 %vm120_vm0, %v33_v26  ;;  %3750 = vmatprep.mubr.msk.f32.mxu1 %vm120_vm0, %v95_v39  ;;  %v45_v4 = vld [vmem:[%s7419_s0 + $0xb0] sm:$0xff]  ;;  %v104_v6 = vld [vmem:[%s7421_s2 + $0x88] sm:$0xff]  ;;  %v46_v7 = vld [vmem:[%s7419_s0 + $0xb8] sm:$0xff] }
  0x16   :  { %3797 = vmatpush3.bf16.xpose.msk.msra.mxu1 %vm4599_vm1, %v4688_v38  ;;  %v105_v8 = vld [vmem:[%s7421_s2 + $0x90] sm:$0xff]  ;;  %v47_v9 = vld [vmem:[%s7419_s0 + $0xc0] sm:$0xff]  ;;  %v64_v11 = vld [vmem:[%s7422_s1 + $0x48] sm:$0xff] }
  0x17   :  { %3800 = vmatprep.subr.msk.bf16.mxu1 %vm4599_vm1, %v4696_v41  ;;  %v63_v10 = vld [vmem:[%s7422_s1 + $0x40] sm:$0xff]  ;;  %v81_v12 = vld [vmem:[%s7422_s1 + $0xd0] sm:$0xff]  ;;  %v82_v13 = vld [vmem:[%s7422_s1 + $0xd8] sm:$0xff] }
  0x18   :  { %3704 = vmatmul.mubr.msk.f32.gmra.mrb[10].mxu0 %vm120_vm0, %v34_v29  ;;  %3751 = vmatmul.mubr.msk.f32.gmra.mrb[8].mxu1 %vm120_vm0, %v96_v42  ;;  %v106_v14 = vld [vmem:[%s7421_s2 + $0x98] sm:$0xff]  ;;  %v48_v17 = vld [vmem:[%s7419_s0 + $0xc8] sm:$0xff]  ;;  %v4850_v18 = vpack.c.bf16 %v64_v11, %v63_v10  ;;  %v107_v19 = vld [vmem:[%s7421_s2 + $0xa0] sm:$0xff]  ;;  %v4858_v21 = vpack.c.bf16 %v82_v13, %v81_v12 }
  0x19   :  { %3706 = vmatprep.mubr.msk.f32.mxu0 %vm120_vm0, %v35_v31  ;;  %3753 = vmatprep.mubr.msk.f32.mxu1 %vm120_vm0, %v97_v44  ;;  %v49_v20 = vld [vmem:[%s7419_s0 + $0xd0] sm:$0xff]  ;;  %v108_v22 = vld [vmem:[%s7421_s2 + $0xa8] sm:$0xff]  ;;  %v50_v23 = vld [vmem:[%s7419_s0 + $0xd8] sm:$0xff] }
  0x1a   :  { %v109_v25 = vld [vmem:[%s7421_s2 + $0xb0] sm:$0xff]  ;;  %v51_v26 = vld [vmem:[%s7419_s0 + $0xe0] sm:$0xff]  ;;  %v66_v29 = vld [vmem:[%s7422_s1 + $0x58] sm:$0xff] }
  0x1b   :  { %v65_v28 = vld [vmem:[%s7422_s1 + $0x50] sm:$0xff]  ;;  %v83_v30 = vld [vmem:[%s7422_s1 + $0xe0] sm:$0xff]  ;;  %v84_v31 = vld [vmem:[%s7422_s1 + $0xe8] sm:$0xff] }
  0x1c   :  { %3707 = vmatmul.mubr.msk.f32.gmra.mrb[12].mxu0 %vm120_vm0, %v36_v37  ;;  %3754 = vmatmul.mubr.msk.f32.gmra.mrb[10].mxu1 %vm120_vm0, %v98_v50  ;;  %v110_v32 = vld [vmem:[%s7421_s2 + $0xb8] sm:$0xff]  ;;  %v52_v33 = vld [vmem:[%s7419_s0 + $0xe8] sm:$0xff]  ;;  %v4904_v34 = vpack.c.bf16 %v66_v29, %v65_v28  ;;  %v111_v35 = vld [vmem:[%s7421_s2 + $0xc0] sm:$0xff]  ;;  %v4912_v37 = vpack.c.bf16 %v84_v31, %v83_v30 }
  0x1d   :  { %3709 = vmatprep.mubr.msk.f32.mxu0 %vm120_vm0, %v37_v40  ;;  %3756 = vmatprep.mubr.msk.f32.mxu1 %vm120_vm0, %v99_v53  ;;  %v53_v36 = vld [vmem:[%s7419_s0 + $0xf0] sm:$0xff]  ;;  %v112_v39 = vld [vmem:[%s7421_s2 + $0xc8] sm:$0xff]  ;;  %v54_v40 = vld [vmem:[%s7419_s0 + $0xf8] sm:$0xff] }
  0x1e   :  { %3803 = vmatpush3.bf16.xpose.msk.msra.mxu1 %vm4599_vm1, %v4742_v52  ;;  %v113_v42 = vld [vmem:[%s7421_s2 + $0xd0] sm:$0xff]  ;;  %v68_v44 = vld [vmem:[%s7422_s1 + $0x68] sm:$0xff]  ;;  %v86_v46 = vld [vmem:[%s7422_s1 + $0xf8] sm:$0xff] }
  0x1f   :  { %3806 = vmatprep.subr.msk.bf16.mxu1 %vm4599_vm1, %v4750_v55  ;;  %v114_v47 = vld [vmem:[%s7421_s2 + $0xd8] sm:$0xff]  ;;  %v115_v49 = vld [vmem:[%s7421_s2 + $0xe0] sm:$0xff]  ;;  %v117_v53 = vld [vmem:[%s7421_s2 + $0xf0] sm:$0xff] }
  0x20   :  { %3710 = vmatmul.mubr.msk.f32.gmra.mrb[14].mxu0 %vm120_vm0, %v38_v43  ;;  %3757 = vmatmul.mubr.msk.f32.gmra.mrb[12].mxu1 %vm120_vm0, %v100_v56  ;;  %v67_v43 = vld [vmem:[%s7422_s1 + $0x60] sm:$0xff]  ;;  %v70_v56 = vld [vmem:[%s7422_s1 + $0x78] sm:$0xff] }
  0x21   :  { %3712 = vmatprep.mubr.msk.f32.mxu0 %vm120_vm0, %v39_v45  ;;  %3759 = vmatprep.mubr.msk.f32.mxu1 %vm120_vm0, %v101_v58  ;;  %v85_v45 = vld [vmem:[%s7422_s1 + $0xf0] sm:$0xff]  ;;  %v4951_v48 = vpack.c.bf16 %v68_v44, %v67_v43 }
  0x22   :  { %v4956_v50 = vpack.c.bf16 %v86_v46, %v85_v45 }
  0x24   :  { %3713 = vmatmul.mubr.msk.f32.gmra.mrb[16].mxu0 %vm120_vm0, %v40_v51  ;;  %3760 = vmatmul.mubr.msk.f32.gmra.mrb[14].mxu1 %vm120_vm0, %v102_v0  ;;  %v116_v51 = vld [vmem:[%s7421_s2 + $0xe8] sm:$0xff] }
  0x25   :  { %3715 = vmatprep.mubr.msk.f32.mxu0 %vm120_vm0, %v41_v54  ;;  %3762 = vmatprep.mubr.msk.f32.mxu1 %vm120_vm0, %v103_v3  ;;  %v69_v54 = vld [vmem:[%s7422_s1 + $0x70] sm:$0xff]  ;;  %s4508_s1 = smov 120  }
  0x26   :  { %3809 = vmatpush3.bf16.xpose.msk.msra.mxu1 %vm4599_vm1, %v4796_v2  ;;  %v4983_v58 = vpack.c.bf16 %v70_v56, %v69_v54 }
  0x27   :  { %3812 = vmatprep.subr.msk.bf16.mxu1 %vm4599_vm1, %v4804_v5 }
  0x28   :  { %3716 = vmatmul.mubr.msk.f32.gmra.mrb[18].mxu0 %vm120_vm0, %v42_v57  ;;  %3763 = vmatmul.mubr.msk.f32.gmra.mrb[16].mxu1 %vm120_vm0, %v104_v6  ;;  %v118_v57 = vld [vmem:[%s7421_s2 + $0xf8] sm:$0xff] }
  0x29   :  { %3718 = vmatprep.mubr.msk.f32.mxu0 %vm120_vm0, %v43_v59  ;;  %3765 = vmatprep.mubr.msk.f32.mxu1 %vm120_vm0, %v105_v8 }
  0x2c   :  { %3719 = vmatmul.mubr.msk.f32.gmra.mrb[20].mxu0 %vm120_vm0, %v44_v1  ;;  %3766 = vmatmul.mubr.msk.f32.gmra.mrb[18].mxu1 %vm120_vm0, %v106_v14 }
  0x2d   :  { %3721 = vmatprep.mubr.msk.f32.mxu0 %vm120_vm0, %v45_v4  ;;  %3768 = vmatprep.mubr.msk.f32.mxu1 %vm120_vm0, %v107_v19 }
  0x2e   :  { %3815 = vmatpush3.bf16.xpose.msk.msra.mxu1 %vm4599_vm1, %v4850_v18 }
  0x2f   :  { %3818 = vmatprep.subr.msk.bf16.mxu1 %vm4599_vm1, %v4858_v21 }
  0x30   :  { %3722 = vmatmul.mubr.msk.f32.gmra.mrb[22].mxu0 %vm120_vm0, %v46_v7  ;;  %3769 = vmatmul.mubr.msk.f32.gmra.mrb[20].mxu1 %vm120_vm0, %v108_v22 }
  0x31   :  { %3724 = vmatprep.mubr.msk.f32.mxu0 %vm120_vm0, %v47_v9  ;;  %3771 = vmatprep.mubr.msk.f32.mxu1 %vm120_vm0, %v109_v25 }
  0x34   :  { %3725 = vmatmul.mubr.msk.f32.gmra.mrb[24].mxu0 %vm120_vm0, %v48_v17  ;;  %3772 = vmatmul.mubr.msk.f32.gmra.mrb[22].mxu1 %vm120_vm0, %v110_v32 }
  0x35   :  { %3727 = vmatprep.mubr.msk.f32.mxu0 %vm120_vm0, %v49_v20  ;;  %3774 = vmatprep.mubr.msk.f32.mxu1 %vm120_vm0, %v111_v35 }
  0x36   :  { %3821 = vmatpush3.bf16.xpose.msk.msra.mxu1 %vm4599_vm1, %v4904_v34 }
  0x37   :  { %3824 = vmatprep.subr.msk.bf16.mxu1 %vm4599_vm1, %v4912_v37 }
  0x38   :  { %3728 = vmatmul.mubr.msk.f32.gmra.mrb[26].mxu0 %vm120_vm0, %v50_v23  ;;  %3775 = vmatmul.mubr.msk.f32.gmra.mrb[24].mxu1 %vm120_vm0, %v112_v39 }
  0x39   :  { %3730 = vmatprep.mubr.msk.f32.mxu0 %vm120_vm0, %v51_v26  ;;  %3777 = vmatprep.mubr.msk.f32.mxu1 %vm120_vm0, %v113_v42 }
  0x3c   :  { %3731 = vmatmul.mubr.msk.f32.gmra.mrb[28].mxu0 %vm120_vm0, %v52_v33  ;;  %3778 = vmatmul.mubr.msk.f32.gmra.mrb[26].mxu1 %vm120_vm0, %v114_v47 }
  0x3d   :  { %3733 = vmatprep.mubr.msk.f32.mxu0 %vm120_vm0, %v53_v36  ;;  %3780 = vmatprep.mubr.msk.f32.mxu1 %vm120_vm0, %v115_v49 }
  0x3e   :  { %3827 = vmatpush3.bf16.xpose.msk.msra.mxu1 %vm4599_vm1, %v4951_v48 }
  0x3f   :  { %3830 = vmatprep.subr.msk.bf16.mxu1 %vm4599_vm1, %v4956_v50 }
  0x40   :  { %3734 = vmatmul.mubr.msk.f32.gmra.mrb[30].mxu0 %vm120_vm0, %v54_v40  ;;  %3781 = vmatmul.mubr.msk.f32.gmra.mrb[28].mxu1 %vm120_vm0, %v116_v51 }
  0x41   :  { %3783 = vmatprep.mubr.msk.f32.mxu1 %vm120_vm0, %v117_v53 }
  0x44   :  { %3784 = vmatmul.mubr.msk.f32.gmra.mrb[30].mxu1 %vm120_vm0, %v118_v57 }
  0x46   :  { %3833 = vmatpush3.bf16.xpose.msk.msra.mxu1 %vm4599_vm1, %v4983_v58 }
  0x47   :  { %3836 = vmatprep.subr.msk.bf16.mxu1 %vm4599_vm1, %v4604_v16 }
  0xd7   :  { %v3690_v59 = vpop.f32.mrb[0].mxu0 }
  0xd8   :  { %v283_v60 = vpop.f32.mrb[1].mxu0 }
  0xd9   :  { %1757 = vrot.lane.b32.xlu0 %v283_v60, %s4508_s1  ;;  %3526 = vmatprep.mubr.msk.f32.mxu1 %vm120_vm0, %v283_v60 }
  0xda   :  { %3527 = vmatmul.mubr.msk.f32.vlgmr.msra.gmra.mrb[32].mxu1 %vm120_vm0, %v283_v60 }
  0xdb   :  { %3839 = vmatpush3.bf16.xpose.msk.msra.mxu1 %vm4599_vm1, %v4633_v24  ;;  %v3693_v61 = vpop.f32.mrb[2].mxu0  ;;  %3528 = vmatprep.mubr.msk.f32.mxu1 %vm120_vm0, %v3690_v59 }
  0xdc   :  { %v293_v62 = vpop.f32.mrb[3].mxu0  ;;  %3842 = vmatprep.subr.msk.bf16.mxu1 %vm4599_vm1, %v4642_v27 }
  0xdd   :  { %1759 = vrot.lane.b32.xlu0 %v3690_v59, %s4508_s1  ;;  %1761 = vrot.lane.b32.xlu1 %v293_v62, %s4508_s1 }
  0xde   :  { %3529 = vmatmul.mubr.msk.f32.gmra.mrb[34].mxu1 %vm120_vm0, %v3690_v59 }
  0xdf   :  { %3530 = vmatprep.mubr.msk.f32.mxu1 %vm120_vm0, %v293_v62  ;;  %v3696_v16 = vpop.f32.mrb[4].mxu0 }
  0xe0   :  { %v303_v63 = vpop.f32.mrb[5].mxu0 }
  0xe1   :  { %1763 = vrot.lane.b32.xlu1 %v3693_v61, %s4508_s1  ;;  %1765 = vrot.lane.b32.xlu0 %v303_v63, %s4508_s1 }
  0xe2   :  { %3531 = vmatmul.mubr.msk.f32.gmra.mrb[36].mxu1 %vm120_vm0, %v293_v62 }
  0xe3   :  { %3532 = vmatprep.mubr.msk.f32.mxu1 %vm120_vm0, %v3693_v61  ;;  %3845 = vmatpush3.bf16.xpose.msk.msra.mxu1 %vm4599_vm1, %v4688_v38  ;;  %v3699_v24 = vpop.f32.mrb[6].mxu0 }
  0xe4   :  { %v313_v27 = vpop.f32.mrb[7].mxu0  ;;  %3848 = vmatprep.subr.msk.bf16.mxu1 %vm4599_vm1, %v4696_v41  ;;  %v5029_v41 = vpop.f32.mrb[0].mxu1 }
  0xe5   :  { %1767 = vrot.lane.b32.xlu1 %v3696_v16, %s4508_s1  ;;  %1769 = vrot.lane.b32.xlu0 %v313_v27, %s4508_s1  ;;  %7630 = vst [vmem:[#allocation2_spill] sm:$0xff] %v5029_v41  ;;  %v5034_v4 = vpop.f32.mrb[1].mxu1 }
  0xe6   :  { %3533 = vmatmul.mubr.msk.f32.gmra.mrb[38].mxu1 %vm120_vm0, %v3693_v61  ;;  %7631 = vst [vmem:[#allocation3_spill] sm:$0xff] %v5034_v4  ;;  %v4044_v6 = vpack.i.bf16 %v5029_v41, %v5034_v4  ;;  %v5046_v8 = vpop.f32.mrb[2].mxu1 }
  0xe7   :  { %3534 = vmatprep.mubr.msk.f32.mxu1 %vm120_vm0, %v303_v63  ;;  %v3702_v0 = vpop.f32.mrb[8].mxu0  ;;  %7632 = vst [vmem:[#allocation4_spill] sm:$0xff] %v5046_v8  ;;  %v5050_v9 = vpop.f32.mrb[3].mxu1 }
  0xe8   :  { %v323_v1 = vpop.f32.mrb[9].mxu0  ;;  %7633 = vst [vmem:[#allocation5_spill] sm:$0xff] %v5050_v9  ;;  %v4049_v10 = vpack.i.bf16 %v5046_v8, %v5050_v9  ;;  %v5067_v13 = vpop.f32.mrb[4].mxu1 }
  0xe9   :  { %1771 = vrot.lane.b32.xlu1 %v3699_v24, %s4508_s1  ;;  %1773 = vrot.lane.b32.xlu0 %v323_v1, %s4508_s1  ;;  %7634 = vst [vmem:[#allocation6_spill] sm:$0xff] %v5067_v13  ;;  %v5074_v17 = vpop.f32.mrb[5].mxu1 }
  0xea   :  { %3535 = vmatmul.mubr.msk.f32.gmra.mrb[40].mxu1 %vm120_vm0, %v303_v63  ;;  %7635 = vst [vmem:[#allocation7_spill] sm:$0xff] %v5074_v17 }
  0xeb   :  { %3536 = vmatprep.mubr.msk.f32.mxu1 %vm120_vm0, %v3696_v16  ;;  %3851 = vmatpush3.bf16.xpose.msk.msra.mxu1 %vm4599_vm1, %v4742_v52  ;;  %v5027_v38 = vpop.f32.mrb[10].mxu0 }
  0xec   :  { %v333_v3 = vpop.f32.mrb[11].mxu0  ;;  %3854 = vmatprep.subr.msk.bf16.mxu1 %vm4599_vm1, %v4750_v55 }
  0xed   :  { %1775 = vrot.lane.b32.xlu1 %v3702_v0, %s4508_s1  ;;  %1777 = vrot.lane.b32.xlu0 %v333_v3, %s4508_s1 }
  0xee   :  { %3537 = vmatmul.mubr.msk.f32.gmra.mrb[42].mxu1 %vm120_vm0, %v3696_v16 }
  0xef   :  { %3538 = vmatprep.mubr.msk.f32.mxu1 %vm120_vm0, %v313_v27  ;;  %v5044_v7 = vpop.f32.mrb[12].mxu0 }
  0xf0   :  { %v5048_v55 = vpop.f32.mrb[13].mxu0 }
  0xf1   :  { %1779 = vrot.lane.b32.xlu1 %v5027_v38, %s4508_s1  ;;  %1781 = vrot.lane.b32.xlu0 %v5048_v55, %s4508_s1 }
  0xf2   :  { %3539 = vmatmul.mubr.msk.f32.gmra.mrb[44].mxu1 %vm120_vm0, %v313_v27 }
  0xf3   :  { %3540 = vmatprep.mubr.msk.f32.mxu1 %vm120_vm0, %v3699_v24  ;;  %3857 = vmatpush3.bf16.xpose.msk.msra.mxu1 %vm4599_vm1, %v4796_v2  ;;  %v5065_v12 = vpop.f32.mrb[14].mxu0  ;;  %v4054_v2 = vpack.i.bf16 %v5067_v13, %v5074_v17 }
  0xf4   :  { %v5069_v14 = vpop.f32.mrb[15].mxu0  ;;  %3860 = vmatprep.subr.msk.bf16.mxu1 %vm4599_vm1, %v4804_v5  ;;  %v5088_v5 = vpop.f32.mrb[6].mxu1 }
  0xf5   :  { %1783 = vrot.lane.b32.xlu1 %v5044_v7, %s4508_s1  ;;  %1785 = vrot.lane.b32.xlu0 %v5069_v14, %s4508_s1  ;;  %7636 = vst [vmem:[#allocation8_spill] sm:$0xff] %v5088_v5  ;;  %v5092_v23 = vpop.f32.mrb[7].mxu1 }
  0xf6   :  { %3541 = vmatmul.mubr.msk.f32.gmra.mrb[46].mxu1 %vm120_vm0, %v3699_v24  ;;  %7637 = vst [vmem:[#allocation9_spill] sm:$0xff] %v5092_v23  ;;  %v4059_v25 = vpack.i.bf16 %v5088_v5, %v5092_v23  ;;  %v5109_v29 = vpop.f32.mrb[8].mxu1 }
  0xf7   :  { %3542 = vmatprep.mubr.msk.f32.mxu1 %vm120_vm0, %v323_v1  ;;  %v5086_v20 = vpop.f32.mrb[16].mxu0  ;;  %7638 = vst [vmem:[#allocation10_spill] sm:$0xff] %v5109_v29  ;;  %v5116_v31 = vpop.f32.mrb[9].mxu1 }
  0xf8   :  { %v5090_v22 = vpop.f32.mrb[17].mxu0  ;;  %7639 = vst [vmem:[#allocation11_spill] sm:$0xff] %v5116_v31 }
  0xf9   :  { %1787 = vrot.lane.b32.xlu1 %v5065_v12, %s4508_s1  ;;  %1789 = vrot.lane.b32.xlu0 %v5090_v22, %s4508_s1 }
  0xfa   :  { %3543 = vmatmul.mubr.msk.f32.gmra.mrb[48].mxu1 %vm120_vm0, %v323_v1 }
  0xfb   :  { %3544 = vmatprep.mubr.msk.f32.mxu1 %vm120_vm0, %v3702_v0  ;;  %3863 = vmatpush3.bf16.xpose.msk.msra.mxu1 %vm4599_vm1, %v4850_v18  ;;  %v5107_v28 = vpop.f32.mrb[18].mxu0  ;;  %v4064_v18 = vpack.i.bf16 %v5109_v29, %v5116_v31 }
  0xfc   :  { %v5111_v30 = vpop.f32.mrb[19].mxu0  ;;  %3866 = vmatprep.subr.msk.bf16.mxu1 %vm4599_vm1, %v4858_v21  ;;  %v5130_v21 = vpop.f32.mrb[10].mxu1 }
  0xfd   :  { %1791 = vrot.lane.b32.xlu1 %v5086_v20, %s4508_s1  ;;  %1793 = vrot.lane.b32.xlu0 %v5111_v30, %s4508_s1  ;;  %7640 = vst [vmem:[#allocation12_spill] sm:$0xff] %v5130_v21  ;;  %v5134_v36 = vpop.f32.mrb[11].mxu1 }
  0xfe   :  { %3545 = vmatmul.mubr.msk.f32.gmra.mrb[50].mxu1 %vm120_vm0, %v3702_v0  ;;  %7641 = vst [vmem:[#allocation13_spill] sm:$0xff] %v5134_v36  ;;  %v4069_v39 = vpack.i.bf16 %v5130_v21, %v5134_v36  ;;  %v5152_v43 = vpop.f32.mrb[12].mxu1 }
  0xff   :  { %3546 = vmatprep.mubr.msk.f32.mxu1 %vm120_vm0, %v333_v3  ;;  %v5128_v33 = vpop.f32.mrb[20].mxu0  ;;  %7642 = vst [vmem:[#allocation14_spill] sm:$0xff] %v5152_v43  ;;  %v5159_v45 = vpop.f32.mrb[13].mxu1 }
 0x100   :  { %v5132_v35 = vpop.f32.mrb[21].mxu0  ;;  %7643 = vst [vmem:[#allocation15_spill] sm:$0xff] %v5159_v45  ;;  %v5175_v47 = vpop.f32.mrb[14].mxu1 }
 0x101   :  { %1795 = vrot.lane.b32.xlu1 %v5107_v28, %s4508_s1  ;;  %1797 = vrot.lane.b32.xlu0 %v5132_v35, %s4508_s1  ;;  %7644 = vst [vmem:[#allocation16_spill] sm:$0xff] %v5175_v47  ;;  %v5179_v51 = vpop.f32.mrb[15].mxu1 }
 0x102   :  { %3547 = vmatmul.mubr.msk.f32.gmra.mrb[52].mxu1 %vm120_vm0, %v333_v3  ;;  %7645 = vst [vmem:[#allocation17_spill] sm:$0xff] %v5179_v51  ;;  %v4079_v53 = vpack.i.bf16 %v5175_v47, %v5179_v51  ;;  %v5198_v57 = vpop.f32.mrb[16].mxu1 }
 0x103   :  { %3548 = vmatprep.mubr.msk.f32.mxu1 %vm120_vm0, %v5027_v38  ;;  %3869 = vmatpush3.bf16.xpose.msk.msra.mxu1 %vm4599_vm1, %v4904_v34  ;;  %v5150_v42 = vpop.f32.mrb[22].mxu0  ;;  %v4074_v34 = vpack.i.bf16 %v5152_v43, %v5159_v45  ;;  %7646 = vst [vmem:[#allocation18_spill] sm:$0xff] %v5198_v57  ;;  %v5205_v60 = vpop.f32.mrb[17].mxu1 }
 0x104   :  { %v5154_v44 = vpop.f32.mrb[23].mxu0  ;;  %3872 = vmatprep.subr.msk.bf16.mxu1 %vm4599_vm1, %v4912_v37  ;;  %7647 = vst [vmem:[#allocation19_spill] sm:$0xff] %v5205_v60  ;;  %v5221_v62 = vpop.f32.mrb[18].mxu1 }
 0x105   :  { %1799 = vrot.lane.b32.xlu1 %v5128_v33, %s4508_s1  ;;  %1801 = vrot.lane.b32.xlu0 %v5154_v44, %s4508_s1  ;;  %7648 = vst [vmem:[#allocation20_spill] sm:$0xff] %v5221_v62  ;;  %v5225_v63 = vpop.f32.mrb[19].mxu1 }
 0x106   :  { %3549 = vmatmul.mubr.msk.f32.gmra.mrb[54].mxu1 %vm120_vm0, %v5027_v38  ;;  %7649 = vst [vmem:[#allocation21_spill] sm:$0xff] %v5225_v63  ;;  %v4089_v24 = vpack.i.bf16 %v5221_v62, %v5225_v63  ;;  %v5244_v1 = vpop.f32.mrb[20].mxu1 }
 0x107   :  { %3550 = vmatprep.mubr.msk.f32.mxu1 %vm120_vm0, %v5048_v55  ;;  %v5173_v37 = vpop.f32.mrb[24].mxu0  ;;  %7650 = vst [vmem:[#allocation22_spill] sm:$0xff] %v5244_v1  ;;  %v5248_v3 = vpop.f32.mrb[21].mxu1 }
 0x108   :  { %v5177_v49 = vpop.f32.mrb[25].mxu0  ;;  %7651 = vst [vmem:[#allocation23_spill] sm:$0xff] %v5248_v3 }
 0x109   :  { %1803 = vrot.lane.b32.xlu1 %v5150_v42, %s4508_s1  ;;  %1805 = vrot.lane.b32.xlu0 %v5177_v49, %s4508_s1 }
 0x10a   :  { %3551 = vmatmul.mubr.msk.f32.gmra.mrb[56].mxu1 %vm120_vm0, %v5048_v55 }
 0x10b   :  { %3552 = vmatprep.mubr.msk.f32.mxu1 %vm120_vm0, %v5044_v7  ;;  %3875 = vmatpush3.bf16.xpose.msk.msra.mxu1 %vm4599_vm1, %v4951_v48  ;;  %v5196_v56 = vpop.f32.mrb[26].mxu0  ;;  %v4084_v48 = vpack.i.bf16 %v5198_v57, %v5205_v60 }
 0x10c   :  { %v5200_v59 = vpop.f32.mrb[27].mxu0  ;;  %3878 = vmatprep.subr.msk.bf16.mxu1 %vm4599_vm1, %v4956_v50 }
 0x10d   :  { %1807 = vrot.lane.b32.xlu1 %v5173_v37, %s4508_s1  ;;  %1809 = vrot.lane.b32.xlu0 %v5200_v59, %s4508_s1 }
 0x10e   :  { %3553 = vmatmul.mubr.msk.f32.gmra.mrb[58].mxu1 %vm120_vm0, %v5044_v7  ;;  %v4094_v7 = vpack.i.bf16 %v5244_v1, %v5248_v3 }
 0x10f   :  { %3554 = vmatprep.mubr.msk.f32.mxu1 %vm120_vm0, %v5069_v14  ;;  %v5219_v50 = vpop.f32.mrb[28].mxu0 }
 0x110   :  { %v5223_v16 = vpop.f32.mrb[29].mxu0 }
 0x111   :  { %1811 = vrot.lane.b32.xlu1 %v5196_v56, %s4508_s1  ;;  %1813 = vrot.lane.b32.xlu0 %v5223_v16, %s4508_s1 }
 0x112   :  { %3555 = vmatmul.mubr.msk.f32.gmra.mrb[60].mxu1 %vm120_vm0, %v5069_v14 }
 0x113   :  { %3556 = vmatprep.mubr.msk.f32.mxu1 %vm120_vm0, %v5065_v12  ;;  %3881 = vmatpush3.bf16.xpose.msk.msra.mxu1 %vm4599_vm1, %v4983_v58  ;;  %v5242_v0 = vpop.f32.mrb[30].mxu0  ;;  %v5262_v58 = vpop.f32.mrb[22].mxu1 }
 0x114   :  { %v5246_v38 = vpop.f32.mrb[31].mxu0  ;;  %7652 = vst [vmem:[#allocation24_spill] sm:$0xff] %v5262_v58  ;;  %v5264_v55 = vpop.f32.mrb[23].mxu1 }
 0x115   :  { %1815 = vrot.lane.b32.xlu1 %v5219_v50, %s4508_s1  ;;  %1817 = vrot.lane.b32.xlu0 %v5246_v38, %s4508_s1  ;;  %7653 = vst [vmem:[#allocation25_spill] sm:$0xff] %v5264_v55  ;;  %v4099_v14 = vpack.i.bf16 %v5262_v58, %v5264_v55  ;;  %v5280_v15 = vpop.f32.mrb[24].mxu1 }
 0x116   :  { %3557 = vmatmul.mubr.msk.f32.gmra.mrb[62].mxu1 %vm120_vm0, %v5065_v12  ;;  %7654 = vst [vmem:[#allocation26_spill] sm:$0xff] %v5280_v15  ;;  %v5282_v27 = vpop.f32.mrb[25].mxu1 }
 0x117   :  { %3558 = vmatprep.mubr.msk.f32.mxu1 %vm120_vm0, %v5090_v22  ;;  %7655 = vst [vmem:[#allocation27_spill] sm:$0xff] %v5282_v27  ;;  %v5300_v12 = vpop.f32.mrb[26].mxu1 }
 0x118   :  { %7656 = vst [vmem:[#allocation28_spill] sm:$0xff] %v5300_v12 }
 0x119   :  { %1819 = vrot.lane.b32.xlu1 %v5242_v0, %s4508_s1  ;;  %4050 = vrot.lane.b32.xlu0 %v4049_v10, %s4508_s1  ;;  %v4104_v10 = vpack.i.bf16 %v5280_v15, %v5282_v27 }
 0x11a   :  { %3559 = vmatmul.mubr.msk.f32.gmra.mrb[64].mxu1 %vm120_vm0, %v5090_v22 }
 0x11b   :  { %3560 = vmatprep.mubr.msk.f32.mxu1 %vm120_vm0, %v5086_v20 }
 0x11d   :  { %4045 = vrot.lane.b32.xlu1 %v4044_v6, %s4508_s1  ;;  %4055 = vrot.lane.b32.xlu0 %v4054_v2, %s4508_s1  ;;  %v5302_v6 = vpop.f32.mrb[27].mxu1 }
 0x11e   :  { %3561 = vmatmul.mubr.msk.f32.gmra.mrb[66].mxu1 %vm120_vm0, %v5086_v20  ;;  %7657 = vst [vmem:[#allocation29_spill] sm:$0xff] %v5302_v6  ;;  %v4109_v2 = vpack.i.bf16 %v5300_v12, %v5302_v6  ;;  %v5320_v22 = vpop.f32.mrb[28].mxu1 }
 0x11f   :  { %3562 = vmatprep.mubr.msk.f32.mxu1 %vm120_vm0, %v5111_v30  ;;  %7658 = vst [vmem:[#allocation30_spill] sm:$0xff] %v5320_v22 }
 0x121   :  { %4060 = vrot.lane.b32.xlu1 %v4059_v25, %s4508_s1  ;;  %4065 = vrot.lane.b32.xlu0 %v4064_v18, %s4508_s1  ;;  %v5322_v25 = vpop.f32.mrb[29].mxu1 }
 0x122   :  { %3563 = vmatmul.mubr.msk.f32.gmra.mrb[68].mxu1 %vm120_vm0, %v5111_v30  ;;  %7659 = vst [vmem:[#allocation31_spill] sm:$0xff] %v5322_v25  ;;  %v5340_v20 = vpop.f32.mrb[30].mxu1 }
 0x123   :  { %3564 = vmatprep.mubr.msk.f32.mxu1 %vm120_vm0, %v5107_v28  ;;  %7660 = vst [vmem:[#allocation32_spill] sm:$0xff] %v5340_v20 }
 0x125   :  { %4070 = vrot.lane.b32.xlu0 %v4069_v39, %s4508_s1  ;;  %4075 = vrot.lane.b32.xlu1 %v4074_v34, %s4508_s1  ;;  %v5342_v39 = vpop.f32.mrb[31].mxu1 }
 0x126   :  { %3565 = vmatmul.mubr.msk.f32.gmra.mrb[70].mxu1 %vm120_vm0, %v5107_v28  ;;  %7661 = vst [vmem:[#allocation33_spill] sm:$0xff] %v5342_v39 }
 0x127   :  { %3566 = vmatprep.mubr.msk.f32.mxu1 %vm120_vm0, %v5132_v35 }
 0x129   :  { %4080 = vrot.lane.b32.xlu0 %v4079_v53, %s4508_s1  ;;  %4085 = vrot.lane.b32.xlu1 %v4084_v48, %s4508_s1 }
 0x12a   :  { %3567 = vmatmul.mubr.msk.f32.gmra.mrb[72].mxu1 %vm120_vm0, %v5132_v35 }
 0x12b   :  { %3568 = vmatprep.mubr.msk.f32.mxu1 %vm120_vm0, %v5128_v33 }
 0x12d   :  { %4090 = vrot.lane.b32.xlu0 %v4089_v24, %s4508_s1  ;;  %4095 = vrot.lane.b32.xlu1 %v4094_v7, %s4508_s1 }
 0x12e   :  { %3569 = vmatmul.mubr.msk.f32.gmra.mrb[74].mxu1 %vm120_vm0, %v5128_v33 }
 0x12f   :  { %3570 = vmatprep.mubr.msk.f32.mxu1 %vm120_vm0, %v5154_v44 }
 0x131   :  { %4100 = vrot.lane.b32.xlu0 %v4099_v14, %s4508_s1  ;;  %4105 = vrot.lane.b32.xlu1 %v4104_v10, %s4508_s1 }
 0x132   :  { %3571 = vmatmul.mubr.msk.f32.gmra.mrb[76].mxu1 %vm120_vm0, %v5154_v44 }
 0x133   :  { %3572 = vmatprep.mubr.msk.f32.mxu1 %vm120_vm0, %v5150_v42 }
 0x135   :  { %4110 = vrot.lane.b32.xlu0 %v4109_v2, %s4508_s1 }
 0x136   :  { %3573 = vmatmul.mubr.msk.f32.gmra.mrb[78].mxu1 %vm120_vm0, %v5150_v42 }
 0x137   :  { %3574 = vmatprep.mubr.msk.f32.mxu1 %vm120_vm0, %v5177_v49 }
 0x13a   :  { %3575 = vmatmul.mubr.msk.f32.gmra.mrb[80].mxu1 %vm120_vm0, %v5177_v49 }
 0x13b   :  { %3576 = vmatprep.mubr.msk.f32.mxu1 %vm120_vm0, %v5173_v37 }
 0x13e   :  { %3577 = vmatmul.mubr.msk.f32.gmra.mrb[82].mxu1 %vm120_vm0, %v5173_v37 }
 0x13f   :  { %3578 = vmatprep.mubr.msk.f32.mxu1 %vm120_vm0, %v5200_v59 }
 0x142   :  { %3579 = vmatmul.mubr.msk.f32.gmra.mrb[84].mxu1 %vm120_vm0, %v5200_v59 }
 0x143   :  { %3580 = vmatprep.mubr.msk.f32.mxu1 %vm120_vm0, %v5196_v56 }
 0x146   :  { %3581 = vmatmul.mubr.msk.f32.gmra.mrb[86].mxu1 %vm120_vm0, %v5196_v56 }
 0x147   :  { %3582 = vmatprep.mubr.msk.f32.mxu1 %vm120_vm0, %v5223_v16 }
 0x14a   :  { %3583 = vmatmul.mubr.msk.f32.gmra.mrb[88].mxu1 %vm120_vm0, %v5223_v16 }
 0x14b   :  { %v1758_v33 = vpop.permute.xlu0 %1757  ;;  %3584 = vmatprep.mubr.msk.f32.mxu1 %vm120_vm0, %v5219_v50 }
 0x14e   :  { %3585 = vmatmul.mubr.msk.f32.gmra.mrb[90].mxu1 %vm120_vm0, %v5219_v50 }
 0x14f   :  { %v1760_v35 = vpop.permute.xlu0 %1759  ;;  %v1762_v42 = vpop.permute.xlu1 %1761  ;;  %3586 = vmatprep.mubr.msk.f32.mxu1 %vm120_vm0, %v5246_v38 }
 0x152   :  { %3587 = vmatmul.mubr.msk.f32.gmra.mrb[92].mxu1 %vm120_vm0, %v5246_v38 }
 0x153   :  { %v1764_v44 = vpop.permute.xlu1 %1763  ;;  %3588 = vmatprep.mubr.msk.f32.mxu1 %vm120_vm0, %v5242_v0  ;;  %v1766_v37 = vpop.permute.xlu0 %1765 }
 0x156   :  { %3589 = vmatmul.mubr.msk.f32.gmra.mrb[94].mxu1 %vm120_vm0, %v5242_v0  ;;  %v7426_v0 = vmov 0.0|0.0  }
 0x157   :  { %3622 = vmatprep.mubr.msk.f32.mxu1 %vm120_vm0, %v1758_v33  ;;  %v1768_v49 = vpop.permute.xlu1 %1767  ;;  %v1770_v53 = vpop.permute.xlu0 %1769  ;;  %3882 = vmatprep.subr.bf16.mxu0 %v7426_v0 }
 0x15a   :  { %3623 = vmatmul.mubr.msk.f32.vlgmr.msra.gmra.mrb[96].mxu1 %vm120_vm0, %v1758_v33 }
 0x15b   :  { %3624 = vmatprep.mubr.msk.f32.mxu1 %vm120_vm0, %v1760_v35  ;;  %v1772_v56 = vpop.permute.xlu1 %1771  ;;  %v1774_v59 = vpop.permute.xlu0 %1773 }
 0x15e   :  { %3625 = vmatmul.mubr.msk.f32.gmra.mrb[98].mxu1 %vm120_vm0, %v1760_v35 }
 0x15f   :  { %3626 = vmatprep.mubr.msk.f32.mxu1 %vm120_vm0, %v1762_v42  ;;  %v1776_v48 = vpop.permute.xlu1 %1775  ;;  %v1778_v50 = vpop.permute.xlu0 %1777 }
 0x162   :  { %3627 = vmatmul.mubr.msk.f32.gmra.mrb[100].mxu1 %vm120_vm0, %v1762_v42 }
 0x163   :  { %3628 = vmatprep.mubr.msk.f32.mxu1 %vm120_vm0, %v1764_v44  ;;  %v1780_v16 = vpop.permute.xlu1 %1779  ;;  %v1782_v24 = vpop.permute.xlu0 %1781 }
 0x166   :  { %3629 = vmatmul.mubr.msk.f32.gmra.mrb[102].mxu1 %vm120_vm0, %v1764_v44 }
 0x167   :  { %3630 = vmatprep.mubr.msk.f32.mxu1 %vm120_vm0, %v1766_v37  ;;  %v1784_v38 = vpop.permute.xlu1 %1783  ;;  %v1786_v7 = vpop.permute.xlu0 %1785 }
 0x16a   :  { %3631 = vmatmul.mubr.msk.f32.gmra.mrb[104].mxu1 %vm120_vm0, %v1766_v37 }
 0x16b   :  { %3632 = vmatprep.mubr.msk.f32.mxu1 %vm120_vm0, %v1768_v49  ;;  %v1788_v14 = vpop.permute.xlu1 %1787  ;;  %v1790_v10 = vpop.permute.xlu0 %1789 }
 0x16e   :  { %3633 = vmatmul.mubr.msk.f32.gmra.mrb[106].mxu1 %vm120_vm0, %v1768_v49 }
 0x16f   :  { %3634 = vmatprep.mubr.msk.f32.mxu1 %vm120_vm0, %v1770_v53  ;;  %v5418_v2 = vpop.permute.xlu1 %1791  ;;  %v5420_v33 = vpop.permute.xlu0 %1793 }
 0x172   :  { %3635 = vmatmul.mubr.msk.f32.gmra.mrb[108].mxu1 %vm120_vm0, %v1770_v53 }
 0x173   :  { %3636 = vmatprep.mubr.msk.f32.mxu1 %vm120_vm0, %v1772_v56  ;;  %v5424_v35 = vpop.permute.xlu1 %1795  ;;  %v5426_v42 = vpop.permute.xlu0 %1797 }
 0x176   :  { %3637 = vmatmul.mubr.msk.f32.gmra.mrb[110].mxu1 %vm120_vm0, %v1772_v56 }
 0x177   :  { %3638 = vmatprep.mubr.msk.f32.mxu1 %vm120_vm0, %v1774_v59  ;;  %v5430_v44 = vpop.permute.xlu1 %1799  ;;  %v5432_v37 = vpop.permute.xlu0 %1801 }
 0x17a   :  { %3639 = vmatmul.mubr.msk.f32.gmra.mrb[112].mxu1 %vm120_vm0, %v1774_v59 }
 0x17b   :  { %3640 = vmatprep.mubr.msk.f32.mxu1 %vm120_vm0, %v1776_v48  ;;  %v5436_v49 = vpop.permute.xlu1 %1803  ;;  %v5438_v53 = vpop.permute.xlu0 %1805 }
 0x17e   :  { %3641 = vmatmul.mubr.msk.f32.gmra.mrb[114].mxu1 %vm120_vm0, %v1776_v48 }
 0x17f   :  { %3642 = vmatprep.mubr.msk.f32.mxu1 %vm120_vm0, %v1778_v50  ;;  %v5442_v28 = vpop.permute.xlu1 %1807  ;;  %v5444_v56 = vpop.permute.xlu0 %1809 }
 0x182   :  { %3643 = vmatmul.mubr.msk.f32.gmra.mrb[116].mxu1 %vm120_vm0, %v1778_v50 }
 0x183   :  { %3644 = vmatprep.mubr.msk.f32.mxu1 %vm120_vm0, %v1780_v16  ;;  %v5448_v18 = vpop.permute.xlu1 %1811  ;;  %v5450_v59 = vpop.permute.xlu0 %1813 }
 0x186   :  { %3645 = vmatmul.mubr.msk.f32.gmra.mrb[118].mxu1 %vm120_vm0, %v1780_v16 }
 0x187   :  { %3646 = vmatprep.mubr.msk.f32.mxu1 %vm120_vm0, %v1782_v24  ;;  %v5454_v61 = vpop.permute.xlu1 %1815  ;;  %v5456_v48 = vpop.permute.xlu0 %1817 }
 0x18a   :  { %3647 = vmatmul.mubr.msk.f32.gmra.mrb[120].mxu1 %vm120_vm0, %v1782_v24 }
 0x18b   :  { %3648 = vmatprep.mubr.msk.f32.mxu1 %vm120_vm0, %v1784_v38  ;;  %v5460_v54 = vpop.permute.xlu1 %1819  ;;  %v4051_v50 = vpop.permute.xlu0 %4050 }
 0x18c   :  { %v4053_v32 = vunpack.i.h.bf16 %v4051_v50  ;;  %v4052_v26 = vunpack.i.l.bf16 %v4051_v50 }
 0x18e   :  { %3649 = vmatmul.mubr.msk.f32.gmra.mrb[122].mxu1 %vm120_vm0, %v1784_v38  ;;  %v3886_v24 = vpack.c.bf16 %v4053_v32, %v4052_v26 }
 0x18f   :  { %3650 = vmatprep.mubr.msk.f32.mxu1 %vm120_vm0, %v1786_v7  ;;  %v4046_v46 = vpop.permute.xlu1 %4045  ;;  %v4056_v19 = vpop.permute.xlu0 %4055 }
 0x190   :  { %v4048_v40 = vunpack.i.h.bf16 %v4046_v46  ;;  %v4047_v16 = vunpack.i.l.bf16 %v4046_v46  ;;  %v4058_v52 = vunpack.i.h.bf16 %v4056_v19  ;;  %v4057_v34 = vunpack.i.l.bf16 %v4056_v19 }
 0x192   :  { %3651 = vmatmul.mubr.msk.f32.gmra.mrb[124].mxu1 %vm120_vm0, %v1786_v7  ;;  %v3883_v11 = vpack.c.bf16 %v4048_v40, %v4047_v16  ;;  %v3889_v30 = vpack.c.bf16 %v4058_v52, %v4057_v34 }
 0x193   :  { %3652 = vmatprep.mubr.msk.f32.mxu1 %vm120_vm0, %v1788_v14  ;;  %v4061_v38 = vpop.permute.xlu1 %4060  ;;  %v4066_v46 = vpop.permute.xlu0 %4065 }
 0x194   :  { %3884 = vmatpush1.bf16.msra.mxu0 %v3883_v11  ;;  %v4063_v50 = vunpack.i.h.bf16 %v4061_v38  ;;  %v4062_v6 = vunpack.i.l.bf16 %v4061_v38  ;;  %v4068_v19 = vunpack.i.h.bf16 %v4066_v46  ;;  %v4067_v26 = vunpack.i.l.bf16 %v4066_v46 }
 0x195   :  { %3885 = vmatprep.subr.bf16.mxu0 %v7426_v0 }
 0x196   :  { %3653 = vmatmul.mubr.msk.f32.gmra.mrb[126].mxu1 %vm120_vm0, %v1788_v14  ;;  %v3892_v11 = vpack.c.bf16 %v4063_v50, %v4062_v6  ;;  %v3895_v52 = vpack.c.bf16 %v4068_v19, %v4067_v26 }
 0x197   :  { %3654 = vmatprep.mubr.msk.f32.mxu1 %vm120_vm0, %v1790_v10  ;;  %v4071_v32 = vpop.permute.xlu0 %4070  ;;  %v4076_v7 = vpop.permute.xlu1 %4075 }
 0x198   :  { %3887 = vmatpush1.bf16.msra.mxu0 %v3886_v24  ;;  %v4073_v40 = vunpack.i.h.bf16 %v4071_v32  ;;  %v4072_v34 = vunpack.i.l.bf16 %v4071_v32  ;;  %v4077_v14 = vunpack.i.l.bf16 %v4076_v7 }
 0x199   :  { %3888 = vmatprep.subr.bf16.mxu0 %v7426_v0 }
 0x19a   :  { %3655 = vmatmul.mubr.msk.f32.gmra.mrb[128].mxu1 %vm120_vm0, %v1790_v10  ;;  %v3898_v6 = vpack.c.bf16 %v4073_v40, %v4072_v34 }
 0x19b   :  { %3656 = vmatprep.mubr.msk.f32.mxu1 %vm120_vm0, %v5418_v2  ;;  %v4081_v10 = vpop.permute.xlu0 %4080  ;;  %v4086_v24 = vpop.permute.xlu1 %4085 }
 0x19c   :  { %3890 = vmatpush1.bf16.msra.mxu0 %v3889_v30  ;;  %v4078_v30 = vunpack.i.h.bf16 %v4076_v7  ;;  %v4083_v16 = vunpack.i.h.bf16 %v4081_v10  ;;  %v4088_v46 = vunpack.i.h.bf16 %v4086_v24 }
 0x19d   :  { %3891 = vmatprep.subr.bf16.mxu0 %v7426_v0 }
 0x19e   :  { %3657 = vmatmul.mubr.msk.f32.gmra.mrb[130].mxu1 %vm120_vm0, %v5418_v2  ;;  %v3901_v2 = vpack.c.bf16 %v4078_v30, %v4077_v14 }
 0x19f   :  { %3658 = vmatprep.mubr.msk.f32.mxu1 %vm120_vm0, %v5420_v33  ;;  %v4096_v40 = vpop.permute.xlu1 %4095 }
 0x1a0   :  { %3893 = vmatpush1.bf16.msra.mxu0 %v3892_v11  ;;  %v4091_v11 = vpop.permute.xlu0 %4090  ;;  %v4098_v7 = vunpack.i.h.bf16 %v4096_v40 }
 0x1a1   :  { %3894 = vmatprep.subr.bf16.mxu0 %v7426_v0  ;;  %v4093_v26 = vunpack.i.h.bf16 %v4091_v11  ;;  %v4092_v32 = vunpack.i.l.bf16 %v4091_v11 }
 0x1a2   :  { %3659 = vmatmul.mubr.msk.f32.gmra.mrb[132].mxu1 %vm120_vm0, %v5420_v33  ;;  %v4082_v33 = vunpack.i.l.bf16 %v4081_v10 }
 0x1a3   :  { %3660 = vmatprep.mubr.msk.f32.mxu1 %vm120_vm0, %v5424_v35 }
 0x1a4   :  { %3896 = vmatpush1.bf16.msra.mxu0 %v3895_v52  ;;  %v3904_v38 = vpack.c.bf16 %v4083_v16, %v4082_v33  ;;  %v4101_v14 = vpop.permute.xlu0 %4100 }
 0x1a5   :  { %3897 = vmatprep.subr.bf16.mxu0 %v7426_v0  ;;  %v4102_v16 = vunpack.i.l.bf16 %v4101_v14 }
 0x1a6   :  { %3661 = vmatmul.mubr.msk.f32.gmra.mrb[134].mxu1 %vm120_vm0, %v5424_v35  ;;  %v4087_v35 = vunpack.i.l.bf16 %v4086_v24  ;;  %v4106_v24 = vpop.permute.xlu1 %4105 }
 0x1a7   :  { %3662 = vmatprep.mubr.msk.f32.mxu1 %vm120_vm0, %v5426_v42 }
 0x1a8   :  { %3899 = vmatpush1.bf16.msra.mxu0 %v3898_v6  ;;  %v4097_v6 = vunpack.i.l.bf16 %v4096_v40 }
 0x1a9   :  { %3900 = vmatprep.subr.bf16.mxu0 %v7426_v0 }
 0x1aa   :  { %3663 = vmatmul.mubr.msk.f32.gmra.mrb[136].mxu1 %vm120_vm0, %v5426_v42  ;;  %v3907_v42 = vpack.c.bf16 %v4088_v46, %v4087_v35  ;;  %v4108_v46 = vunpack.i.h.bf16 %v4106_v24  ;;  %v4107_v35 = vunpack.i.l.bf16 %v4106_v24 }
 0x1ab   :  { %3664 = vmatprep.mubr.msk.f32.mxu1 %vm120_vm0, %v5430_v44 }
 0x1ac   :  { %3902 = vmatpush1.bf16.msra.mxu0 %v3901_v2  ;;  %v4103_v2 = vunpack.i.h.bf16 %v4101_v14 }
 0x1ad   :  { %v5493_v50 = vpop.f32.mrb[32].mxu1  ;;  %3903 = vmatprep.subr.bf16.mxu0 %v7426_v0 }
 0x1ae   :  { %v5496_v19 = vpop.f32.mrb[33].mxu1  ;;  %3665 = vmatmul.mubr.msk.f32.gmra.mrb[138].mxu1 %vm120_vm0, %v5430_v44  ;;  %v3910_v44 = vpack.c.bf16 %v4093_v26, %v4092_v32 }
 0x1af   :  { %3666 = vmatprep.mubr.msk.f32.mxu1 %vm120_vm0, %v5432_v37 }
 0x1b0   :  { %3905 = vmatpush1.bf16.msra.mxu0 %v3904_v38 }
 0x1b1   :  { %v5502_v52 = vpop.f32.mrb[34].mxu1  ;;  %3906 = vmatprep.subr.bf16.mxu0 %v7426_v0 }
 0x1b2   :  { %v5505_v34 = vpop.f32.mrb[35].mxu1  ;;  %3667 = vmatmul.mubr.msk.f32.gmra.mrb[140].mxu1 %vm120_vm0, %v5432_v37  ;;  %v3913_v37 = vpack.c.bf16 %v4098_v7, %v4097_v6 }
 0x1b3   :  { %3668 = vmatprep.mubr.msk.f32.mxu1 %vm120_vm0, %v5436_v49 }
 0x1b4   :  { %3908 = vmatpush1.bf16.msra.mxu0 %v3907_v42  ;;  %v4111_v42 = vpop.permute.xlu0 %4110 }
 0x1b5   :  { %v5511_v30 = vpop.f32.mrb[36].mxu1  ;;  %3909 = vmatprep.subr.bf16.mxu0 %v7426_v0  ;;  %v4113_v32 = vunpack.i.h.bf16 %v4111_v42  ;;  %v4112_v40 = vunpack.i.l.bf16 %v4111_v42 }
 0x1b6   :  { %7662 = vst [vmem:[#allocation34_spill] sm:$0xff] %v5511_v30  ;;  %v5514_v10 = vpop.f32.mrb[37].mxu1  ;;  %3669 = vmatmul.mubr.msk.f32.gmra.mrb[142].mxu1 %vm120_vm0, %v5436_v49  ;;  %v3916_v49 = vpack.c.bf16 %v4103_v2, %v4102_v16 }
 0x1b7   :  { %7663 = vst [vmem:[#allocation35_spill] sm:$0xff] %v5514_v10  ;;  %3670 = vmatprep.mubr.msk.f32.mxu1 %vm120_vm0, %v5438_v53 }
 0x1b8   :  { %3911 = vmatpush1.bf16.msra.mxu0 %v3910_v44 }
 0x1b9   :  { %v5520_v33 = vpop.f32.mrb[38].mxu1  ;;  %3912 = vmatprep.subr.bf16.mxu0 %v7426_v0 }
 0x1ba   :  { %7664 = vst [vmem:[#allocation36_spill] sm:$0xff] %v5520_v33  ;;  %v5523_v38 = vpop.f32.mrb[39].mxu1  ;;  %3671 = vmatmul.mubr.msk.f32.gmra.mrb[144].mxu1 %vm120_vm0, %v5438_v53  ;;  %v3919_v53 = vpack.c.bf16 %v4108_v46, %v4107_v35 }
 0x1bb   :  { %7665 = vst [vmem:[#allocation37_spill] sm:$0xff] %v5523_v38  ;;  %3672 = vmatprep.mubr.msk.f32.mxu1 %vm120_vm0, %v5442_v28 }
 0x1bc   :  { %3914 = vmatpush1.bf16.msra.mxu0 %v3913_v37 }
 0x1bd   :  { %v5529_v11 = vpop.f32.mrb[40].mxu1  ;;  %3915 = vmatprep.subr.bf16.mxu0 %v7426_v0 }
 0x1be   :  { %7666 = vst [vmem:[#allocation38_spill] sm:$0xff] %v5529_v11  ;;  %v5532_v26 = vpop.f32.mrb[41].mxu1  ;;  %3673 = vmatmul.mubr.msk.f32.gmra.mrb[146].mxu1 %vm120_vm0, %v5442_v28  ;;  %v3922_v28 = vpack.c.bf16 %v4113_v32, %v4112_v40  ;;  %v5985_v11 = vld [vmem:[%s7423_s3 + $0x118] sm:$0xff] }
 0x1bf   :  { %7667 = vst [vmem:[#allocation39_spill] sm:$0xff] %v5532_v26  ;;  %3674 = vmatprep.mubr.msk.f32.mxu1 %vm120_vm0, %v5444_v56  ;;  %v5967_v26 = vld [vmem:[%s7423_s3 + $0x108] sm:$0xff]  ;;  %7759 = vst [vmem:[#allocation131_spill] sm:$0xff] %v5985_v11 }
 0x1c0   :  { %3917 = vmatpush1.bf16.msra.mxu0 %v3916_v49  ;;  %7755 = vst [vmem:[#allocation127_spill] sm:$0xff] %v5967_v26 }
 0x1c1   :  { %v5538_v44 = vpop.f32.mrb[42].mxu1  ;;  %3918 = vmatprep.subr.bf16.mxu0 %v7426_v0 }
 0x1c2   :  { %7668 = vst [vmem:[#allocation40_spill] sm:$0xff] %v5538_v44  ;;  %v5541_v7 = vpop.f32.mrb[43].mxu1  ;;  %3675 = vmatmul.mubr.msk.f32.gmra.mrb[148].mxu1 %vm120_vm0, %v5444_v56  ;;  %v5949_v44 = vld [vmem:[%s7423_s3 + $0xf8] sm:$0xff] }
 0x1c3   :  { %7669 = vst [vmem:[#allocation41_spill] sm:$0xff] %v5541_v7  ;;  %3676 = vmatprep.mubr.msk.f32.mxu1 %vm120_vm0, %v5448_v18  ;;  %v5931_v7 = vld [vmem:[%s7423_s3 + $0xe8] sm:$0xff]  ;;  %7751 = vst [vmem:[#allocation123_spill] sm:$0xff] %v5949_v44 }
 0x1c4   :  { %3920 = vmatpush1.bf16.msra.mxu0 %v3919_v53  ;;  %7747 = vst [vmem:[#allocation119_spill] sm:$0xff] %v5931_v7 }
 0x1c5   :  { %v5547_v6 = vpop.f32.mrb[44].mxu1  ;;  %3921 = vmatprep.subr.bf16.mxu0 %v7426_v0 }
 0x1c6   :  { %7670 = vst [vmem:[#allocation42_spill] sm:$0xff] %v5547_v6  ;;  %v5550_v14 = vpop.f32.mrb[45].mxu1  ;;  %3677 = vmatmul.mubr.msk.f32.gmra.mrb[150].mxu1 %vm120_vm0, %v5448_v18  ;;  %v5913_v6 = vld [vmem:[%s7423_s3 + $0xd8] sm:$0xff] }
 0x1c7   :  { %7671 = vst [vmem:[#allocation43_spill] sm:$0xff] %v5550_v14  ;;  %3678 = vmatprep.mubr.msk.f32.mxu1 %vm120_vm0, %v5450_v59  ;;  %v5895_v14 = vld [vmem:[%s7423_s3 + $0xc8] sm:$0xff]  ;;  %7745 = vst [vmem:[#allocation117_spill] sm:$0xff] %v5913_v6 }
 0x1c8   :  { %3923 = vmatpush1.bf16.msra.mxu0 %v3922_v28  ;;  %7743 = vst [vmem:[#allocation115_spill] sm:$0xff] %v5895_v14 }
 0x1c9   :  { %v5556_v37 = vpop.f32.mrb[46].mxu1  ;;  %3924 = vmatprep.subr.bf16.mxu0 %v7426_v0 }
 0x1ca   :  { %7672 = vst [vmem:[#allocation44_spill] sm:$0xff] %v5556_v37  ;;  %v5559_v56 = vpop.f32.mrb[47].mxu1  ;;  %3679 = vmatmul.mubr.msk.f32.gmra.mrb[152].mxu1 %vm120_vm0, %v5450_v59  ;;  %v5877_v37 = vld [vmem:[%s7423_s3 + $0xb8] sm:$0xff] }
 0x1cb   :  { %7673 = vst [vmem:[#allocation45_spill] sm:$0xff] %v5559_v56  ;;  %3680 = vmatprep.mubr.msk.f32.mxu1 %vm120_vm0, %v5454_v61  ;;  %v5859_v56 = vld [vmem:[%s7423_s3 + $0xa8] sm:$0xff]  ;;  %7741 = vst [vmem:[#allocation113_spill] sm:$0xff] %v5877_v37 }
 0x1cc   :  { %7739 = vst [vmem:[#allocation111_spill] sm:$0xff] %v5859_v56 }
 0x1cd   :  { %v5565_v2 = vpop.f32.mrb[48].mxu1 }
 0x1ce   :  { %7674 = vst [vmem:[#allocation46_spill] sm:$0xff] %v5565_v2  ;;  %v5567_v16 = vpop.f32.mrb[49].mxu1  ;;  %3681 = vmatmul.mubr.msk.f32.gmra.mrb[154].mxu1 %vm120_vm0, %v5454_v61 }
 0x1cf   :  { %7675 = vst [vmem:[#allocation47_spill] sm:$0xff] %v5567_v16  ;;  %3682 = vmatprep.mubr.msk.f32.mxu1 %vm120_vm0, %v5456_v48  ;;  %v5841_v16 = vld [vmem:[%s7423_s3 + $0x98] sm:$0xff] }
 0x1d0   :  { %7737 = vst [vmem:[#allocation109_spill] sm:$0xff] %v5841_v16 }
 0x1d1   :  { %v5573_v18 = vpop.f32.mrb[50].mxu1 }
 0x1d2   :  { %7676 = vst [vmem:[#allocation48_spill] sm:$0xff] %v5573_v18  ;;  %v5575_v24 = vpop.f32.mrb[51].mxu1  ;;  %3683 = vmatmul.mubr.msk.f32.gmra.mrb[156].mxu1 %vm120_vm0, %v5456_v48 }
 0x1d3   :  { %7677 = vst [vmem:[#allocation49_spill] sm:$0xff] %v5575_v24  ;;  %3684 = vmatprep.mubr.msk.f32.mxu1 %vm120_vm0, %v5460_v54 }
 0x1d5   :  { %v5581_v59 = vpop.f32.mrb[52].mxu1 }
 0x1d6   :  { %7678 = vst [vmem:[#allocation50_spill] sm:$0xff] %v5581_v59  ;;  %v5583_v49 = vpop.f32.mrb[53].mxu1  ;;  %3685 = vmatmul.mubr.msk.f32.gmra.mrb[158].mxu1 %vm120_vm0, %v5460_v54  ;;  %v5834_v59 = vld [vmem:[%s7423_s3 + $0x90] sm:$0xff] }
 0x1d7   :  { %7679 = vst [vmem:[#allocation51_spill] sm:$0xff] %v5583_v49  ;;  %v5823_v49 = vld [vmem:[%s7423_s3 + $0x88] sm:$0xff]  ;;  %7736 = vst [vmem:[#allocation108_spill] sm:$0xff] %v5834_v59 }
 0x1d8   :  { %7735 = vst [vmem:[#allocation107_spill] sm:$0xff] %v5823_v49 }
 0x1d9   :  { %v5587_v61 = vpop.f32.mrb[54].mxu1 }
 0x1da   :  { %7680 = vst [vmem:[#allocation52_spill] sm:$0xff] %v5587_v61  ;;  %v5589_v46 = vpop.f32.mrb[55].mxu1 }
 0x1db   :  { %7681 = vst [vmem:[#allocation53_spill] sm:$0xff] %v5589_v46 }
 0x1dd   :  { %v5591_v35 = vpop.f32.mrb[56].mxu1 }
 0x1de   :  { %7682 = vst [vmem:[#allocation54_spill] sm:$0xff] %v5591_v35  ;;  %v5593_v42 = vpop.f32.mrb[57].mxu1  ;;  %v5816_v35 = vld [vmem:[%s7423_s3 + $0x80] sm:$0xff] }
 0x1df   :  { %7683 = vst [vmem:[#allocation55_spill] sm:$0xff] %v5593_v42  ;;  %v5805_v42 = vld [vmem:[%s7423_s3 + $0x78] sm:$0xff]  ;;  %7734 = vst [vmem:[#allocation106_spill] sm:$0xff] %v5816_v35 }
 0x1e0   :  { %7733 = vst [vmem:[#allocation105_spill] sm:$0xff] %v5805_v42 }
 0x1e1   :  { %v5595_v53 = vpop.f32.mrb[58].mxu1 }
 0x1e2   :  { %7684 = vst [vmem:[#allocation56_spill] sm:$0xff] %v5595_v53  ;;  %v5597_v48 = vpop.f32.mrb[59].mxu1 }
 0x1e3   :  { %7685 = vst [vmem:[#allocation57_spill] sm:$0xff] %v5597_v48 }
 0x1e5   :  { %v5599_v32 = vpop.f32.mrb[60].mxu1 }
 0x1e6   :  { %7686 = vst [vmem:[#allocation58_spill] sm:$0xff] %v5599_v32  ;;  %v5601_v40 = vpop.f32.mrb[61].mxu1  ;;  %v5798_v32 = vld [vmem:[%s7423_s3 + $0x70] sm:$0xff] }
 0x1e7   :  { %7687 = vst [vmem:[#allocation59_spill] sm:$0xff] %v5601_v40  ;;  %v5787_v40 = vld [vmem:[%s7423_s3 + $0x68] sm:$0xff]  ;;  %7732 = vst [vmem:[#allocation104_spill] sm:$0xff] %v5798_v32 }
 0x1e8   :  { %7731 = vst [vmem:[#allocation103_spill] sm:$0xff] %v5787_v40 }
 0x1e9   :  { %v5603_v28 = vpop.f32.mrb[62].mxu1 }
 0x1ea   :  { %7688 = vst [vmem:[#allocation60_spill] sm:$0xff] %v5603_v28  ;;  %v5605_v0 = vpop.f32.mrb[63].mxu1 }
 0x1eb   :  { %7689 = vst [vmem:[#allocation61_spill] sm:$0xff] %v5605_v0 }
 0x1ed   :  { %v5607_v54 = vpop.f32.mrb[64].mxu1 }
 0x1ee   :  { %7690 = vst [vmem:[#allocation62_spill] sm:$0xff] %v5607_v54  ;;  %v5609_v12 = vpop.f32.mrb[65].mxu1  ;;  %v5780_v54 = vld [vmem:[%s7423_s3 + $0x60] sm:$0xff] }
 0x1ef   :  { %7691 = vst [vmem:[#allocation63_spill] sm:$0xff] %v5609_v12  ;;  %v5769_v12 = vld [vmem:[%s7423_s3 + $0x58] sm:$0xff]  ;;  %7730 = vst [vmem:[#allocation102_spill] sm:$0xff] %v5780_v54 }
 0x1f0   :  { %7729 = vst [vmem:[#allocation101_spill] sm:$0xff] %v5769_v12 }
 0x1f1   :  { %v5611_v27 = vpop.f32.mrb[66].mxu1 }
 0x1f2   :  { %7692 = vst [vmem:[#allocation64_spill] sm:$0xff] %v5611_v27  ;;  %v5613_v15 = vpop.f32.mrb[67].mxu1 }
 0x1f3   :  { %7693 = vst [vmem:[#allocation65_spill] sm:$0xff] %v5613_v15 }
 0x1f5   :  { %v5615_v55 = vpop.f32.mrb[68].mxu1 }
 0x1f6   :  { %7694 = vst [vmem:[#allocation66_spill] sm:$0xff] %v5615_v55  ;;  %v5617_v58 = vpop.f32.mrb[69].mxu1  ;;  %v5762_v55 = vld [vmem:[%s7423_s3 + $0x50] sm:$0xff] }
 0x1f7   :  { %7695 = vst [vmem:[#allocation67_spill] sm:$0xff] %v5617_v58  ;;  %v5751_v58 = vld [vmem:[%s7423_s3 + $0x48] sm:$0xff]  ;;  %7728 = vst [vmem:[#allocation100_spill] sm:$0xff] %v5762_v55 }
 0x1f8   :  { %7727 = vst [vmem:[#allocation99_spill] sm:$0xff] %v5751_v58 }
 0x1f9   :  { %v5619_v3 = vpop.f32.mrb[70].mxu1 }
 0x1fa   :  { %7696 = vst [vmem:[#allocation68_spill] sm:$0xff] %v5619_v3  ;;  %v5621_v1 = vpop.f32.mrb[71].mxu1 }
 0x1fb   :  { %7697 = vst [vmem:[#allocation69_spill] sm:$0xff] %v5621_v1 }
 0x1fd   :  { %v5623_v63 = vpop.f32.mrb[72].mxu1 }
 0x1fe   :  { %7698 = vst [vmem:[#allocation70_spill] sm:$0xff] %v5623_v63  ;;  %v5625_v62 = vpop.f32.mrb[73].mxu1  ;;  %v5744_v63 = vld [vmem:[%s7423_s3 + $0x40] sm:$0xff] }
 0x1ff   :  { %7699 = vst [vmem:[#allocation71_spill] sm:$0xff] %v5625_v62  ;;  %v5733_v62 = vld [vmem:[%s7423_s3 + $0x38] sm:$0xff]  ;;  %7726 = vst [vmem:[#allocation98_spill] sm:$0xff] %v5744_v63 }
 0x200   :  { %7725 = vst [vmem:[#allocation97_spill] sm:$0xff] %v5733_v62 }
 0x201   :  { %v5627_v60 = vpop.f32.mrb[74].mxu1 }
 0x202   :  { %7700 = vst [vmem:[#allocation72_spill] sm:$0xff] %v5627_v60  ;;  %v5629_v57 = vpop.f32.mrb[75].mxu1 }
 0x203   :  { %7701 = vst [vmem:[#allocation73_spill] sm:$0xff] %v5629_v57 }
 0x205   :  { %v5631_v51 = vpop.f32.mrb[76].mxu1 }
 0x206   :  { %7702 = vst [vmem:[#allocation74_spill] sm:$0xff] %v5631_v51  ;;  %v5633_v47 = vpop.f32.mrb[77].mxu1  ;;  %v5726_v51 = vld [vmem:[%s7423_s3 + $0x30] sm:$0xff] }
 0x207   :  { %7703 = vst [vmem:[#allocation75_spill] sm:$0xff] %v5633_v47  ;;  %v5715_v47 = vld [vmem:[%s7423_s3 + $0x28] sm:$0xff]  ;;  %7724 = vst [vmem:[#allocation96_spill] sm:$0xff] %v5726_v51 }
 0x208   :  { %7723 = vst [vmem:[#allocation95_spill] sm:$0xff] %v5715_v47 }
 0x209   :  { %v5635_v45 = vpop.f32.mrb[78].mxu1 }
 0x20a   :  { %7704 = vst [vmem:[#allocation76_spill] sm:$0xff] %v5635_v45  ;;  %v5637_v43 = vpop.f32.mrb[79].mxu1 }
 0x20b   :  { %7705 = vst [vmem:[#allocation77_spill] sm:$0xff] %v5637_v43 }
 0x20d   :  { %v5639_v36 = vpop.f32.mrb[80].mxu1 }
 0x20e   :  { %7706 = vst [vmem:[#allocation78_spill] sm:$0xff] %v5639_v36  ;;  %v5641_v21 = vpop.f32.mrb[81].mxu1  ;;  %v5708_v36 = vld [vmem:[%s7423_s3 + $0x20] sm:$0xff] }
 0x20f   :  { %7707 = vst [vmem:[#allocation79_spill] sm:$0xff] %v5641_v21  ;;  %7722 = vst [vmem:[#allocation94_spill] sm:$0xff] %v5708_v36 }
 0x211   :  { %v5643_v31 = vpop.f32.mrb[82].mxu1 }
 0x212   :  { %7708 = vst [vmem:[#allocation80_spill] sm:$0xff] %v5643_v31  ;;  %v5645_v29 = vpop.f32.mrb[83].mxu1 }
 0x213   :  { %7709 = vst [vmem:[#allocation81_spill] sm:$0xff] %v5645_v29 }
 0x215   :  { %v5647_v23 = vpop.f32.mrb[84].mxu1 }
 0x216   :  { %7710 = vst [vmem:[#allocation82_spill] sm:$0xff] %v5647_v23  ;;  %v5649_v5 = vpop.f32.mrb[85].mxu1 }
 0x217   :  { %7711 = vst [vmem:[#allocation83_spill] sm:$0xff] %v5649_v5 }
 0x219   :  { %v5651_v17 = vpop.f32.mrb[86].mxu1 }
 0x21a   :  { %7712 = vst [vmem:[#allocation84_spill] sm:$0xff] %v5651_v17  ;;  %v5653_v13 = vpop.f32.mrb[87].mxu1  ;;  %v5697_v17 = vld [vmem:[%s7423_s3 + $0x18] sm:$0xff] }
 0x21b   :  { %7713 = vst [vmem:[#allocation85_spill] sm:$0xff] %v5653_v13  ;;  %v5674_v13 = vld [vmem:[%s7423_s3] sm:$0xff] }
 0x21d   :  { %v5655_v9 = vpop.f32.mrb[88].mxu1 }
 0x21e   :  { %7714 = vst [vmem:[#allocation86_spill] sm:$0xff] %v5655_v9  ;;  %v5657_v8 = vpop.f32.mrb[89].mxu1 }
 0x21f   :  { %7715 = vst [vmem:[#allocation87_spill] sm:$0xff] %v5657_v8 }
 0x221   :  { %v5659_v4 = vpop.f32.mrb[90].mxu1 }
 0x222   :  { %7716 = vst [vmem:[#allocation88_spill] sm:$0xff] %v5659_v4  ;;  %v5661_v41 = vpop.f32.mrb[91].mxu1  ;;  %v5679_v4 = vld [vmem:[%s7423_s3 + $0x8] sm:$0xff] }
 0x223   :  { %7717 = vst [vmem:[#allocation89_spill] sm:$0xff] %v5661_v41 }
 0x225   :  { %v5663_v21 = vpop.f32.mrb[92].mxu1 }
 0x226   :  { %7718 = vst [vmem:[#allocation90_spill] sm:$0xff] %v5663_v21  ;;  %v5665_v31 = vpop.f32.mrb[93].mxu1 }
 0x227   :  { %7719 = vst [vmem:[#allocation91_spill] sm:$0xff] %v5665_v31 }
 0x229   :  { %v5667_v29 = vpop.f32.mrb[94].mxu1 }
 0x22a   :  { %7720 = vst [vmem:[#allocation92_spill] sm:$0xff] %v5667_v29  ;;  %v5669_v23 = vpop.f32.mrb[95].mxu1 }
 0x22b   :  { %7721 = vst [vmem:[#allocation93_spill] sm:$0xff] %v5669_v23  ;;  %v5690_v23 = vld [vmem:[%s7423_s3 + $0x10] sm:$0xff] }
 0x22d   :  { %v1951_v9 = vpop.f32.mrb[96].mxu1 }
 0x22e   :  { %v5682_v41 = vadd.f32 %v1951_v9, %v5674_v13  ;;  %v1953_v21 = vpop.f32.mrb[97].mxu1 }
 0x22f   :  { %v5685_v31 = vadd.f32 %v1953_v21, %v5679_v4 }
 0x231   :  { %v1957_v29 = vpop.f32.mrb[98].mxu1  ;;  %v2142_v8 = vmax.f32 %v5682_v41, %v5685_v31 }
 0x232   :  { %v5700_v9 = vadd.f32 %v1957_v29, %v5690_v23  ;;  %v1959_v5 = vpop.f32.mrb[99].mxu1 }
 0x233   :  { %v5703_v21 = vadd.f32 %v1959_v5, %v5697_v17  ;;  %2143 = vmax.xlane.f32.xlu0 %v2142_v8 }
 0x235   :  { %v1963_v43 = vpop.f32.mrb[100].mxu1  ;;  %v2145_v45 = vmax.f32 %v5700_v9, %v5703_v21 }
 0x236   :  { %v5718_v29 = vadd.f32 %v1963_v43, %v5708_v36  ;;  %v1965_v5 = vpop.f32.mrb[101].mxu1  ;;  %v6058_v36 = vld [vmem:[%s7423_s3 + $0x140] sm:$0xff] }
 0x237   :  { %v5721_v8 = vadd.f32 %v1965_v5, %v5715_v47  ;;  %2146 = vmax.xlane.f32.xlu1 %v2145_v45  ;;  %7775 = vst [vmem:[#allocation145_spill] sm:$0xff] %v6058_v36 }
 0x239   :  { %v1969_v57 = vpop.f32.mrb[102].mxu1  ;;  %v2148_v60 = vmax.f32 %v5718_v29, %v5721_v8 }
 0x23a   :  { %v5736_v43 = vadd.f32 %v1969_v57, %v5726_v51  ;;  %v1971_v5 = vpop.f32.mrb[103].mxu1 }
 0x23b   :  { %v5739_v45 = vadd.f32 %v1971_v5, %v5733_v62  ;;  %2149 = vmax.xlane.f32.xlu0 %v2148_v60 }
 0x23d   :  { %v1975_v1 = vpop.f32.mrb[104].mxu1  ;;  %v2151_v3 = vmax.f32 %v5736_v43, %v5739_v45 }
 0x23e   :  { %v5754_v57 = vadd.f32 %v1975_v1, %v5744_v63  ;;  %v1977_v5 = vpop.f32.mrb[105].mxu1 }
 0x23f   :  { %v5757_v60 = vadd.f32 %v1977_v5, %v5751_v58  ;;  %2152 = vmax.xlane.f32.xlu0 %v2151_v3 }
 0x241   :  { %v1981_v15 = vpop.f32.mrb[106].mxu1  ;;  %v2154_v27 = vmax.f32 %v5754_v57, %v5757_v60 }
 0x242   :  { %v5772_v1 = vadd.f32 %v1981_v15, %v5762_v55  ;;  %v1983_v5 = vpop.f32.mrb[107].mxu1 }
 0x243   :  { %v5775_v3 = vadd.f32 %v1983_v5, %v5769_v12  ;;  %2155 = vmax.xlane.f32.xlu1 %v2154_v27 }
 0x245   :  { %v1987_v0 = vpop.f32.mrb[108].mxu1  ;;  %v2157_v28 = vmax.f32 %v5772_v1, %v5775_v3 }
 0x246   :  { %v5790_v15 = vadd.f32 %v1987_v0, %v5780_v54  ;;  %v1989_v5 = vpop.f32.mrb[109].mxu1 }
 0x247   :  { %v5793_v27 = vadd.f32 %v1989_v5, %v5787_v40  ;;  %2158 = vmax.xlane.f32.xlu0 %v2157_v28 }
 0x249   :  { %v1993_v48 = vpop.f32.mrb[110].mxu1  ;;  %v2160_v53 = vmax.f32 %v5790_v15, %v5793_v27 }
 0x24a   :  { %v5808_v0 = vadd.f32 %v1993_v48, %v5798_v32  ;;  %v1995_v5 = vpop.f32.mrb[111].mxu1 }
 0x24b   :  { %v5811_v28 = vadd.f32 %v1995_v5, %v5805_v42  ;;  %2161 = vmax.xlane.f32.xlu1 %v2160_v53 }
 0x24d   :  { %v1999_v46 = vpop.f32.mrb[112].mxu1  ;;  %v2163_v61 = vmax.f32 %v5808_v0, %v5811_v28 }
 0x24e   :  { %v5826_v48 = vadd.f32 %v1999_v46, %v5816_v35  ;;  %v2001_v5 = vpop.f32.mrb[113].mxu1 }
 0x24f   :  { %v5829_v53 = vadd.f32 %v2001_v5, %v5823_v49  ;;  %2164 = vmax.xlane.f32.xlu0 %v2163_v61  ;;  %v5852_v49 = vld [vmem:[%s7423_s3 + $0xa0] sm:$0xff] }
 0x250   :  { %7738 = vst [vmem:[#allocation110_spill] sm:$0xff] %v5852_v49 }
 0x251   :  { %v2005_v24 = vpop.f32.mrb[114].mxu1  ;;  %v2166_v18 = vmax.f32 %v5826_v48, %v5829_v53 }
 0x252   :  { %v5844_v46 = vadd.f32 %v2005_v24, %v5834_v59  ;;  %v2007_v5 = vpop.f32.mrb[115].mxu1 }
 0x253   :  { %v5847_v61 = vadd.f32 %v2007_v5, %v5841_v16  ;;  %2167 = vmax.xlane.f32.xlu1 %v2166_v18  ;;  %v5870_v16 = vld [vmem:[%s7423_s3 + $0xb0] sm:$0xff] }
 0x254   :  { %7740 = vst [vmem:[#allocation112_spill] sm:$0xff] %v5870_v16 }
 0x255   :  { %v2011_v2 = vpop.f32.mrb[116].mxu1  ;;  %v2169_v35 = vmax.f32 %v5844_v46, %v5847_v61 }
 0x256   :  { %v5862_v24 = vadd.f32 %v2011_v2, %v5852_v49  ;;  %v2013_v5 = vpop.f32.mrb[117].mxu1 }
 0x257   :  { %v5865_v18 = vadd.f32 %v2013_v5, %v5859_v56  ;;  %2170 = vmax.xlane.f32.xlu0 %v2169_v35  ;;  %v5888_v56 = vld [vmem:[%s7423_s3 + $0xc0] sm:$0xff] }
 0x258   :  { %7742 = vst [vmem:[#allocation114_spill] sm:$0xff] %v5888_v56 }
 0x259   :  { %v2017_v59 = vpop.f32.mrb[118].mxu1  ;;  %v2172_v42 = vmax.f32 %v5862_v24, %v5865_v18 }
 0x25a   :  { %v5880_v2 = vadd.f32 %v2017_v59, %v5870_v16  ;;  %v2019_v5 = vpop.f32.mrb[119].mxu1 }
 0x25b   :  { %v5883_v35 = vadd.f32 %v2019_v5, %v5877_v37  ;;  %2173 = vmax.xlane.f32.xlu1 %v2172_v42  ;;  %v5906_v37 = vld [vmem:[%s7423_s3 + $0xd0] sm:$0xff] }
 0x25c   :  { %7744 = vst [vmem:[#allocation116_spill] sm:$0xff] %v5906_v37 }
 0x25d   :  { %v2023_v49 = vpop.f32.mrb[120].mxu1  ;;  %v2175_v32 = vmax.f32 %v5880_v2, %v5883_v35 }
 0x25e   :  { %v5898_v59 = vadd.f32 %v2023_v49, %v5888_v56  ;;  %v2025_v5 = vpop.f32.mrb[121].mxu1 }
 0x25f   :  { %v5901_v42 = vadd.f32 %v2025_v5, %v5895_v14  ;;  %2176 = vmax.xlane.f32.xlu0 %v2175_v32  ;;  %v5924_v14 = vld [vmem:[%s7423_s3 + $0xe0] sm:$0xff] }
 0x260   :  { %7746 = vst [vmem:[#allocation118_spill] sm:$0xff] %v5924_v14 }
 0x261   :  { %v2029_v16 = vpop.f32.mrb[122].mxu1  ;;  %v2178_v40 = vmax.f32 %v5898_v59, %v5901_v42 }
 0x262   :  { %v5916_v49 = vadd.f32 %v2029_v16, %v5906_v37  ;;  %v2031_v5 = vpop.f32.mrb[123].mxu1 }
 0x263   :  { %v5919_v32 = vadd.f32 %v2031_v5, %v5913_v6  ;;  %2179 = vmax.xlane.f32.xlu1 %v2178_v40  ;;  %v5942_v6 = vld [vmem:[%s7423_s3 + $0xf0] sm:$0xff] }
 0x264   :  { %7750 = vst [vmem:[#allocation122_spill] sm:$0xff] %v5942_v6 }
 0x265   :  { %v2035_v56 = vpop.f32.mrb[124].mxu1  ;;  %v2181_v54 = vmax.f32 %v5916_v49, %v5919_v32 }
 0x266   :  { %v5934_v16 = vadd.f32 %v2035_v56, %v5924_v14  ;;  %v2037_v5 = vpop.f32.mrb[125].mxu1 }
 0x267   :  { %v5937_v40 = vadd.f32 %v2037_v5, %v5931_v7  ;;  %2182 = vmax.xlane.f32.xlu0 %v2181_v54  ;;  %v5960_v7 = vld [vmem:[%s7423_s3 + $0x100] sm:$0xff] }
 0x268   :  { %7748 = vst [vmem:[#allocation120_spill] sm:$0xff] %v5934_v16  ;;  %7754 = vst [vmem:[#allocation126_spill] sm:$0xff] %v5960_v7 }
 0x269   :  { %7749 = vst [vmem:[#allocation121_spill] sm:$0xff] %v5937_v40  ;;  %v2041_v37 = vpop.f32.mrb[126].mxu1  ;;  %v2184_v12 = vmax.f32 %v5934_v16, %v5937_v40  ;;  %v6063_v40 = vld [vmem:[%s7423_s3 + $0x148] sm:$0xff] }
 0x26a   :  { %v5952_v56 = vadd.f32 %v2041_v37, %v5942_v6  ;;  %v2043_v5 = vpop.f32.mrb[127].mxu1  ;;  %7776 = vst [vmem:[#allocation146_spill] sm:$0xff] %v6063_v40 }
 0x26b   :  { %v5955_v54 = vadd.f32 %v2043_v5, %v5949_v44  ;;  %2185 = vmax.xlane.f32.xlu0 %v2184_v12  ;;  %v5978_v44 = vld [vmem:[%s7423_s3 + $0x110] sm:$0xff] }
 0x26c   :  { %7752 = vst [vmem:[#allocation124_spill] sm:$0xff] %v5952_v56  ;;  %7758 = vst [vmem:[#allocation130_spill] sm:$0xff] %v5978_v44 }
 0x26d   :  { %7753 = vst [vmem:[#allocation125_spill] sm:$0xff] %v5955_v54  ;;  %v2047_v14 = vpop.f32.mrb[128].mxu1  ;;  %v2187_v55 = vmax.f32 %v5952_v56, %v5955_v54 }
 0x26e   :  { %v5970_v37 = vadd.f32 %v2047_v14, %v5960_v7  ;;  %v2049_v5 = vpop.f32.mrb[129].mxu1 }
 0x26f   :  { %v5973_v12 = vadd.f32 %v2049_v5, %v5967_v26  ;;  %2188 = vmax.xlane.f32.xlu1 %v2187_v55 }
 0x270   :  { %7756 = vst [vmem:[#allocation128_spill] sm:$0xff] %v5970_v37 }
 0x271   :  { %7757 = vst [vmem:[#allocation129_spill] sm:$0xff] %v5973_v12  ;;  %v2053_v6 = vpop.f32.mrb[130].mxu1  ;;  %v2190_v58 = vmax.f32 %v5970_v37, %v5973_v12  ;;  %v5998_v12 = vld [vmem:[%s7423_s3 + $0x130] sm:$0xff] }
 0x272   :  { %v5988_v14 = vadd.f32 %v2053_v6, %v5978_v44  ;;  %v2055_v5 = vpop.f32.mrb[131].mxu1  ;;  %7762 = vst [vmem:[#allocation134_spill] sm:$0xff] %v5998_v12  ;;  %v6003_v6 = vld [vmem:[%s7423_s3 + $0x138] sm:$0xff] }
 0x273   :  { %v5991_v55 = vadd.f32 %v2055_v5, %v5985_v11  ;;  %2191 = vmax.xlane.f32.xlu0 %v2190_v58  ;;  %7763 = vst [vmem:[#allocation135_spill] sm:$0xff] %v6003_v6 }
 0x274   :  { %7760 = vst [vmem:[#allocation132_spill] sm:$0xff] %v5988_v14 }
 0x275   :  { %7761 = vst [vmem:[#allocation133_spill] sm:$0xff] %v5991_v55  ;;  %v2059_v26 = vpop.f32.mrb[132].mxu1  ;;  %v2193_v7 = vmax.f32 %v5988_v14, %v5991_v55  ;;  %v7766_v14 = vpack.i.bf16 %v5320_v22, %v5322_v25 }
 0x276   :  { %v2061_v63 = vpop.f32.mrb[133].mxu1 }
 0x277   :  { %2194 = vmax.xlane.f32.xlu0 %v2193_v7 }
 0x279   :  { %v2065_v37 = vpop.f32.mrb[134].mxu1 }
 0x27a   :  { %v6006_v5 = vadd.f32 %v2065_v37, %v5998_v12  ;;  %v2067_v58 = vpop.f32.mrb[135].mxu1  ;;  %v6020_v37 = vld [vmem:[%s7423_s3 + $0x150] sm:$0xff] }
 0x27b   :  { %v6009_v11 = vadd.f32 %v2067_v58, %v6003_v6  ;;  %7767 = vst [vmem:[#allocation138_spill] sm:$0xff] %v6020_v37  ;;  %v6025_v58 = vld [vmem:[%s7423_s3 + $0x158] sm:$0xff] }
 0x27c   :  { %7764 = vst [vmem:[#allocation136_spill] sm:$0xff] %v6006_v5  ;;  %7768 = vst [vmem:[#allocation139_spill] sm:$0xff] %v6025_v58 }
 0x27d   :  { %7765 = vst [vmem:[#allocation137_spill] sm:$0xff] %v6009_v11  ;;  %v2071_v44 = vpop.f32.mrb[136].mxu1  ;;  %v2199_v7 = vmax.f32 %v6006_v5, %v6009_v11 }
 0x27e   :  { %v2073_v55 = vpop.f32.mrb[137].mxu1 }
 0x27f   :  { %2200 = vmax.xlane.f32.xlu0 %v2199_v7 }
 0x280   :  { %4115 = vrot.lane.b32.xlu1 %v7766_v14, %s4508_s1 }
 0x281   :  { %v2077_v12 = vpop.f32.mrb[138].mxu1 }
 0x282   :  { %v6028_v6 = vadd.f32 %v2077_v12, %v6020_v37  ;;  %v2079_v7 = vpop.f32.mrb[139].mxu1 }
 0x283   :  { %v6031_v11 = vadd.f32 %v2079_v7, %v6025_v58  ;;  %v6038_v7 = vld [vmem:[%s7423_s3 + $0x120] sm:$0xff]  ;;  %v6043_v58 = vld [vmem:[%s7423_s3 + $0x128] sm:$0xff] }
 0x284   :  { %7769 = vst [vmem:[#allocation140_spill] sm:$0xff] %v6028_v6  ;;  %7771 = vst [vmem:[#allocation142_spill] sm:$0xff] %v6038_v7  ;;  %v6053_v47 = vadd.f32 %v2061_v63, %v6043_v58 }
 0x285   :  { %7770 = vst [vmem:[#allocation141_spill] sm:$0xff] %v6031_v11  ;;  %v2083_v25 = vpop.f32.mrb[140].mxu1  ;;  %v2205_v14 = vmax.f32 %v6028_v6, %v6031_v11  ;;  %7772 = vst [vmem:[#allocation143_spill] sm:$0xff] %v6043_v58  ;;  %v7773_v11 = vpack.i.bf16 %v5340_v20, %v5342_v39  ;;  %v6050_v6 = vadd.f32 %v2059_v26, %v6038_v7  ;;  %v6076_v20 = vld [vmem:[%s7423_s3 + $0x160] sm:$0xff]  ;;  %v6081_v58 = vld [vmem:[%s7423_s3 + $0x168] sm:$0xff] }
 0x286   :  { %v2085_v22 = vpop.f32.mrb[141].mxu1  ;;  %7774 = vst [vmem:[#allocation144_spill] sm:$0xff] %v6053_v47  ;;  %v6069_v26 = vadd.f32 %v2073_v55, %v6063_v40  ;;  %7779 = vst [vmem:[#allocation149_spill] sm:$0xff] %v6076_v20  ;;  %v6094_v7 = vld [vmem:[%s7423_s3 + $0x170] sm:$0xff] }
 0x287   :  { %2206 = vmax.xlane.f32.xlu0 %v2205_v14  ;;  %v2196_v39 = vmax.f32 %v6050_v6, %v6053_v47  ;;  %7780 = vst [vmem:[#allocation150_spill] sm:$0xff] %v6081_v58  ;;  %v6087_v55 = vadd.f32 %v2085_v22, %v6081_v58  ;;  %7781 = vst [vmem:[#allocation151_spill] sm:$0xff] %v6094_v7  ;;  %v6099_v47 = vld [vmem:[%s7423_s3 + $0x178] sm:$0xff] }
 0x288   :  { %7778 = vst [vmem:[#allocation148_spill] sm:$0xff] %v6069_v26  ;;  %7782 = vst [vmem:[#allocation152_spill] sm:$0xff] %v6099_v47 }
 0x289   :  { %v2089_v5 = vpop.f32.mrb[142].mxu1 }
 0x28a   :  { %v2091_v38 = vpop.f32.mrb[143].mxu1  ;;  %v6104_v22 = vadd.f32 %v2089_v5, %v6094_v7  ;;  %v6139_v7 = vld [vmem:[%s7423_s3 + $0x198] sm:$0xff] }
 0x28b   :  { %v6107_v58 = vadd.f32 %v2091_v38, %v6099_v47  ;;  %7786 = vst [vmem:[#allocation156_spill] sm:$0xff] %v6139_v7 }
 0x28d   :  { %v2095_v62 = vpop.f32.mrb[144].mxu1  ;;  %v2211_v47 = vmax.f32 %v6104_v22, %v6107_v58 }
 0x28e   :  { %v2097_v33 = vpop.f32.mrb[145].mxu1 }
 0x291   :  { %v2101_v51 = vpop.f32.mrb[146].mxu1 }
 0x292   :  { %v2103_v54 = vpop.f32.mrb[147].mxu1 }
 0x295   :  { %v2107_v56 = vpop.f32.mrb[148].mxu1 }
 0x296   :  { %v2109_v10 = vpop.f32.mrb[149].mxu1 }
 0x299   :  { %v2113_v12 = vpop.f32.mrb[150].mxu1 }
 0x29a   :  { %v2115_v37 = vpop.f32.mrb[151].mxu1 }
 0x29d   :  { %v2119_v14 = vpop.f32.mrb[152].mxu1  ;;  %4120 = vrot.lane.b32.xlu0 %v7773_v11, %s4508_s1  ;;  %v6066_v11 = vadd.f32 %v2071_v44, %v6058_v36  ;;  %v6084_v36 = vadd.f32 %v2083_v25, %v6076_v20 }
 0x29e   :  { %v2121_v30 = vpop.f32.mrb[153].mxu1 }
 0x29f   :  { %7777 = vst [vmem:[#allocation147_spill] sm:$0xff] %v6066_v11 }
 0x2a1   :  { %v2125_v16 = vpop.f32.mrb[154].mxu1 }
 0x2a2   :  { %v2127_v63 = vpop.f32.mrb[155].mxu1 }
 0x2a4   :  { %2197 = vmax.xlane.f32.xlu1 %v2196_v39  ;;  %v2202_v39 = vmax.f32 %v6066_v11, %v6069_v26  ;;  %v6116_v26 = vld [vmem:[%s7423_s3 + $0x180] sm:$0xff]  ;;  %v6121_v11 = vld [vmem:[%s7423_s3 + $0x188] sm:$0xff] }
 0x2a5   :  { %v2131_v44 = vpop.f32.mrb[156].mxu1  ;;  %7783 = vst [vmem:[#allocation153_spill] sm:$0xff] %v6116_v26  ;;  %7784 = vst [vmem:[#allocation154_spill] sm:$0xff] %v6121_v11  ;;  %v6124_v5 = vadd.f32 %v2095_v62, %v6116_v26  ;;  %v6127_v38 = vadd.f32 %v2097_v33, %v6121_v11  ;;  %v6145_v33 = vadd.f32 %v2103_v54, %v6139_v7  ;;  %v6157_v26 = vld [vmem:[%s7423_s3 + $0x1a8] sm:$0xff] }
 0x2a6   :  { %v2133_v40 = vpop.f32.mrb[157].mxu1  ;;  %7789 = vst [vmem:[#allocation159_spill] sm:$0xff] %v6157_v26  ;;  %v6163_v54 = vadd.f32 %v2109_v10, %v6157_v26 }
 0x2a7   :  { %7787 = vst [vmem:[#allocation157_spill] sm:$0xff] %v6145_v33  ;;  %v2214_v11 = vmax.f32 %v6124_v5, %v6127_v38 }
 0x2a8   :  { %2203 = vmax.xlane.f32.xlu1 %v2202_v39  ;;  %v2208_v39 = vmax.f32 %v6084_v36, %v6087_v55  ;;  %7791 = vst [vmem:[#allocation161_spill] sm:$0xff] %v6163_v54 }
 0x2a9   :  { %v6101_v25 = vpop.f32.mrb[158].mxu1 }
 0x2aa   :  { %v6109_v20 = vpop.f32.mrb[159].mxu1 }
 0x2ac   :  { %2209 = vmax.xlane.f32.xlu1 %v2208_v39  ;;  %v6134_v39 = vld [vmem:[%s7423_s3 + $0x190] sm:$0xff] }
 0x2ad   :  { %7785 = vst [vmem:[#allocation155_spill] sm:$0xff] %v6134_v39  ;;  %v6142_v62 = vadd.f32 %v2101_v51, %v6134_v39  ;;  %v6175_v39 = vld [vmem:[%s7423_s3 + $0x1b8] sm:$0xff] }
 0x2ae   :  { %7793 = vst [vmem:[#allocation163_spill] sm:$0xff] %v6175_v39  ;;  %v6181_v10 = vadd.f32 %v2115_v37, %v6175_v39 }
 0x2af   :  { %v2217_v7 = vmax.f32 %v6142_v62, %v6145_v33  ;;  %v6226_v33 = vld [vmem:[%s7423_s3 + $0x1e0] sm:$0xff] }
 0x2b0   :  { %2212 = vmax.xlane.f32.xlu1 %v2211_v47  ;;  %v6152_v47 = vld [vmem:[%s7423_s3 + $0x1a0] sm:$0xff]  ;;  %7795 = vst [vmem:[#allocation165_spill] sm:$0xff] %v6181_v10 }
 0x2b1   :  { %7788 = vst [vmem:[#allocation158_spill] sm:$0xff] %v6152_v47  ;;  %v6160_v51 = vadd.f32 %v2107_v56, %v6152_v47  ;;  %v6193_v47 = vld [vmem:[%s7423_s3 + $0x1c8] sm:$0xff] }
 0x2b2   :  { %7797 = vst [vmem:[#allocation167_spill] sm:$0xff] %v6193_v47  ;;  %v6199_v37 = vadd.f32 %v2121_v30, %v6193_v47 }
 0x2b3   :  { %7790 = vst [vmem:[#allocation160_spill] sm:$0xff] %v6160_v51  ;;  %v2220_v26 = vmax.f32 %v6160_v51, %v6163_v54  ;;  %v6211_v54 = vld [vmem:[%s7423_s3 + $0x1d8] sm:$0xff] }
 0x2b4   :  { %2215 = vmax.xlane.f32.xlu1 %v2214_v11  ;;  %v6170_v11 = vld [vmem:[%s7423_s3 + $0x1b0] sm:$0xff]  ;;  %7798 = vst [vmem:[#allocation168_spill] sm:$0xff] %v6211_v54 }
 0x2b5   :  { %7792 = vst [vmem:[#allocation162_spill] sm:$0xff] %v6170_v11  ;;  %v6178_v56 = vadd.f32 %v2113_v12, %v6170_v11  ;;  %v6206_v11 = vld [vmem:[%s7423_s3 + $0x1d0] sm:$0xff] }
 0x2b6   :  { %v6216_v47 = vadd.f32 %v2125_v16, %v6206_v11 }
 0x2b7   :  { %7794 = vst [vmem:[#allocation164_spill] sm:$0xff] %v6178_v56  ;;  %v2223_v39 = vmax.f32 %v6178_v56, %v6181_v10 }
 0x2b8   :  { %2218 = vmax.xlane.f32.xlu1 %v2217_v7  ;;  %v6188_v7 = vld [vmem:[%s7423_s3 + $0x1c0] sm:$0xff] }
 0x2b9   :  { %7796 = vst [vmem:[#allocation166_spill] sm:$0xff] %v6188_v7  ;;  %v6196_v12 = vadd.f32 %v2119_v14, %v6188_v7 }
 0x2bb   :  { %v2226_v7 = vmax.f32 %v6196_v12, %v6199_v37 }
 0x2bc   :  { %2221 = vmax.xlane.f32.xlu1 %v2220_v26 }
 0x2c0   :  { %2224 = vmax.xlane.f32.xlu1 %v2223_v39  ;;  %v2144_v26 = vpop.xlane.xlu0 %2143  ;;  %v6219_v39 = vadd.f32 %v2127_v63, %v6211_v54  ;;  %v6236_v63 = vadd.f32 %v2131_v44, %v6226_v33 }
 0x2c1   :  { %v2238_v14 = vsub.f32 %v5682_v41, %v2144_v26  ;;  %v2239_v30 = vsub.f32 %v5685_v31, %v2144_v26  ;;  %v6231_v41 = vld [vmem:[%s7423_s3 + $0x1e8] sm:$0xff] }
 0x2c2   :  { %v2229_v26 = vmax.f32 %v6216_v47, %v6219_v39 }
 0x2c3   :  { %v2302_v10 = vmul.f32 1.442695, %v2238_v14  ;;  %v2304_v56 = vmul.f32 1.442695, %v2239_v30 }
 0x2c4   :  { %2227 = vmax.xlane.f32.xlu1 %v2226_v7  ;;  %v2147_v51 = vpop.xlane.xlu1 %2146  ;;  %v6239_v7 = vadd.f32 %v2133_v40, %v6231_v41 }
 0x2c5   :  { %4124 = vpow2.f32 %v2302_v10  ;;  %v2240_v31 = vsub.f32 %v5700_v9, %v2147_v51  ;;  %v2241_v16 = vsub.f32 %v5703_v21, %v2147_v51 }
 0x2c6   :  { %4126 = vpow2.f32 %v2304_v56  ;;  %v2232_v21 = vmax.f32 %v6236_v63, %v6239_v7 }
 0x2c7   :  { %v2306_v14 = vmul.f32 1.442695, %v2240_v31  ;;  %v2308_v30 = vmul.f32 1.442695, %v2241_v16 }
 0x2c8   :  { %2230 = vmax.xlane.f32.xlu1 %v2229_v26  ;;  %v2150_v54 = vpop.xlane.xlu0 %2149 }
 0x2c9   :  { %4128 = vpow2.f32 %v2306_v14  ;;  %v2242_v10 = vsub.f32 %v5718_v29, %v2150_v54  ;;  %v2243_v9 = vsub.f32 %v5721_v8, %v2150_v54 }
 0x2ca   :  { %4130 = vpow2.f32 %v2308_v30 }
 0x2cb   :  { %v2310_v44 = vmul.f32 1.442695, %v2242_v10  ;;  %v2312_v40 = vmul.f32 1.442695, %v2243_v9 }
 0x2cc   :  { %2233 = vmax.xlane.f32.xlu1 %v2232_v21  ;;  %v2153_v51 = vpop.xlane.xlu0 %2152 }
 0x2cd   :  { %4132 = vpow2.f32 %v2310_v44  ;;  %v2244_v56 = vsub.f32 %v5736_v43, %v2153_v51  ;;  %v2245_v31 = vsub.f32 %v5739_v45, %v2153_v51 }
 0x2ce   :  { %4134 = vpow2.f32 %v2312_v40 }
 0x2cf   :  { %v6249_v16 = vpop.eup %4124  ;;  %v2314_v26 = vmul.f32 1.442695, %v2244_v56  ;;  %v2316_v29 = vmul.f32 1.442695, %v2245_v31 }
 0x2d0   :  { %v6251_v14 = vpop.eup %4126  ;;  %v2156_v8 = vpop.xlane.xlu1 %2155 }
 0x2d1   :  { %4136 = vpow2.f32 %v2314_v26  ;;  %v2246_v54 = vsub.f32 %v5754_v57, %v2156_v8  ;;  %v2247_v30 = vsub.f32 %v5757_v60, %v2156_v8  ;;  %v2430_v10 = vadd.f32 %v6251_v14, %v6249_v16 }
 0x2d2   :  { %4138 = vpow2.f32 %v2316_v29 }
 0x2d3   :  { %v6257_v43 = vpop.eup %4128  ;;  %v2318_v45 = vmul.f32 1.442695, %v2246_v54  ;;  %v2320_v9 = vmul.f32 1.442695, %v2247_v30  ;;  %2431 = vadd.xlane.f32.xlu0 %v2430_v10 }
 0x2d4   :  { %v6259_v21 = vpop.eup %4130  ;;  %v2159_v44 = vpop.xlane.xlu0 %2158 }
 0x2d5   :  { %4140 = vpow2.f32 %v2318_v45  ;;  %v2248_v40 = vsub.f32 %v5772_v1, %v2159_v44  ;;  %v2249_v51 = vsub.f32 %v5775_v3, %v2159_v44  ;;  %v2433_v57 = vadd.f32 %v6259_v21, %v6257_v43 }
 0x2d6   :  { %4142 = vpow2.f32 %v2320_v9 }
 0x2d7   :  { %v6265_v60 = vpop.eup %4132  ;;  %v2322_v56 = vmul.f32 1.442695, %v2248_v40  ;;  %v2324_v31 = vmul.f32 1.442695, %v2249_v51  ;;  %2434 = vadd.xlane.f32.xlu0 %v2433_v57 }
 0x2d8   :  { %v6267_v26 = vpop.eup %4134  ;;  %v2162_v29 = vpop.xlane.xlu1 %2161 }
 0x2d9   :  { %4144 = vpow2.f32 %v2322_v56  ;;  %v2250_v8 = vsub.f32 %v5790_v15, %v2162_v29  ;;  %v2251_v54 = vsub.f32 %v5793_v27, %v2162_v29  ;;  %v2436_v1 = vadd.f32 %v6267_v26, %v6265_v60 }
 0x2da   :  { %4146 = vpow2.f32 %v2324_v31 }
 0x2db   :  { %v6273_v3 = vpop.eup %4136  ;;  %v2326_v30 = vmul.f32 1.442695, %v2250_v8  ;;  %v2328_v10 = vmul.f32 1.442695, %v2251_v54  ;;  %2437 = vadd.xlane.f32.xlu0 %v2436_v1 }
 0x2dc   :  { %v6275_v45 = vpop.eup %4138  ;;  %v2165_v9 = vpop.xlane.xlu0 %2164 }
 0x2dd   :  { %4148 = vpow2.f32 %v2326_v30  ;;  %v2252_v44 = vsub.f32 %v5808_v0, %v2165_v9  ;;  %v2253_v40 = vsub.f32 %v5811_v28, %v2165_v9  ;;  %v2439_v15 = vadd.f32 %v6275_v45, %v6273_v3 }
 0x2de   :  { %4150 = vpow2.f32 %v2328_v10 }
 0x2df   :  { %v6281_v27 = vpop.eup %4140  ;;  %v2330_v51 = vmul.f32 1.442695, %v2252_v44  ;;  %v2332_v57 = vmul.f32 1.442695, %v2253_v40  ;;  %2440 = vadd.xlane.f32.xlu0 %v2439_v15 }
 0x2e0   :  { %v6283_v56 = vpop.eup %4142  ;;  %v2168_v31 = vpop.xlane.xlu1 %2167 }
 0x2e1   :  { %4152 = vpow2.f32 %v2330_v51  ;;  %v2254_v29 = vsub.f32 %v5826_v48, %v2168_v31  ;;  %v2255_v8 = vsub.f32 %v5829_v53, %v2168_v31  ;;  %v2442_v0 = vadd.f32 %v6283_v56, %v6281_v27 }
 0x2e2   :  { %4154 = vpow2.f32 %v2332_v57 }
 0x2e3   :  { %v6289_v28 = vpop.eup %4144  ;;  %v2334_v54 = vmul.f32 1.442695, %v2254_v29  ;;  %v2336_v1 = vmul.f32 1.442695, %v2255_v8  ;;  %2443 = vadd.xlane.f32.xlu0 %v2442_v0 }
 0x2e4   :  { %v6291_v30 = vpop.eup %4146  ;;  %v2171_v10 = vpop.xlane.xlu0 %2170 }
 0x2e5   :  { %4156 = vpow2.f32 %v2334_v54  ;;  %v2256_v9 = vsub.f32 %v5844_v46, %v2171_v10  ;;  %v2257_v44 = vsub.f32 %v5847_v61, %v2171_v10  ;;  %v2445_v48 = vadd.f32 %v6291_v30, %v6289_v28 }
 0x2e6   :  { %4158 = vpow2.f32 %v2336_v1 }
 0x2e7   :  { %v6297_v53 = vpop.eup %4148  ;;  %v2338_v40 = vmul.f32 1.442695, %v2256_v9  ;;  %v2340_v15 = vmul.f32 1.442695, %v2257_v44  ;;  %2446 = vadd.xlane.f32.xlu0 %v2445_v48  ;;  %v6318_v44 = vld [vmem:[%s7423_s3 + $0x1f0] sm:$0xff]  ;;  %v6323_v48 = vld [vmem:[%s7423_s3 + $0x1f8] sm:$0xff] }
 0x2e8   :  { %v6299_v51 = vpop.eup %4150  ;;  %v2174_v57 = vpop.xlane.xlu1 %2173 }
 0x2e9   :  { %4160 = vpow2.f32 %v2338_v40  ;;  %v2258_v31 = vsub.f32 %v5862_v24, %v2174_v57  ;;  %v2259_v29 = vsub.f32 %v5865_v18, %v2174_v57  ;;  %v2448_v46 = vadd.f32 %v6299_v51, %v6297_v53 }
 0x2ea   :  { %4162 = vpow2.f32 %v2340_v15  ;;  %v6329_v15 = vadd.f32 %v6101_v25, %v6318_v44  ;;  %v6333_v57 = vadd.f32 %v6109_v20, %v6323_v48  ;;  %v6345_v20 = vadd.f32 %v5493_v50, %v5674_v13 }
 0x2eb   :  { %v6305_v61 = vpop.eup %4152  ;;  %v2342_v8 = vmul.f32 1.442695, %v2258_v31  ;;  %v2344_v0 = vmul.f32 1.442695, %v2259_v29  ;;  %2449 = vadd.xlane.f32.xlu0 %v2448_v46 }
 0x2ec   :  { %v6307_v54 = vpop.eup %4154  ;;  %v2177_v1 = vpop.xlane.xlu0 %2176 }
 0x2ed   :  { %4164 = vpow2.f32 %v2342_v8  ;;  %v2260_v10 = vsub.f32 %v5880_v2, %v2177_v1  ;;  %v2261_v9 = vsub.f32 %v5883_v35, %v2177_v1  ;;  %v2451_v24 = vadd.f32 %v6307_v54, %v6305_v61 }
 0x2ee   :  { %4166 = vpow2.f32 %v2344_v0 }
 0x2ef   :  { %v6313_v18 = vpop.eup %4156  ;;  %v2346_v40 = vmul.f32 1.442695, %v2260_v10  ;;  %v2348_v2 = vmul.f32 1.442695, %v2261_v9  ;;  %2452 = vadd.xlane.f32.xlu1 %v2451_v24  ;;  %v2235_v9 = vmax.f32 %v6329_v15, %v6333_v57 }
 0x2f0   :  { %7799 = vst [vmem:[#allocation169_spill] sm:$0xff] %v6313_v18  ;;  %v6325_v35 = vpop.eup %4158  ;;  %v2180_v31 = vpop.xlane.xlu1 %2179 }
 0x2f1   :  { %4168 = vpow2.f32 %v2346_v40  ;;  %v2262_v29 = vsub.f32 %v5898_v59, %v2180_v31  ;;  %v2263_v46 = vsub.f32 %v5901_v42, %v2180_v31  ;;  %v2454_v8 = vadd.f32 %v6325_v35, %v6313_v18 }
 0x2f2   :  { %4170 = vpow2.f32 %v2348_v2  ;;  %v6349_v59 = vadd.f32 %v5496_v19, %v5679_v4  ;;  %v6363_v19 = vadd.f32 %v5502_v52, %v5690_v23 }
 0x2f3   :  { %v6339_v0 = vpop.eup %4160  ;;  %v2350_v1 = vmul.f32 1.442695, %v2262_v29  ;;  %v2352_v10 = vmul.f32 1.442695, %v2263_v46  ;;  %2455 = vadd.xlane.f32.xlu1 %v2454_v8  ;;  %v7806_v46 = vld [vmem:[#allocation120_spill] sm:$0xff] }
 0x2f4   :  { %7800 = vst [vmem:[#allocation170_spill] sm:$0xff] %v6339_v0  ;;  %v6341_v25 = vpop.eup %4162  ;;  %v2183_v42 = vpop.xlane.xlu0 %2182  ;;  %7804 = vst [vmem:[#allocation174_spill] sm:$0xff] %v6363_v19  ;;  %v1277_v29 = vmax.f32 %v6345_v20, %v6349_v59 }
 0x2f5   :  { %7801 = vst [vmem:[#allocation171_spill] sm:$0xff] %v6341_v25  ;;  %4172 = vpow2.f32 %v2350_v1  ;;  %v2264_v24 = vsub.f32 %v5916_v49, %v2183_v42  ;;  %v2265_v40 = vsub.f32 %v5919_v32, %v2183_v42  ;;  %v2457_v2 = vadd.f32 %v6341_v25, %v6339_v0  ;;  %v7807_v1 = vld [vmem:[#allocation121_spill] sm:$0xff] }
 0x2f6   :  { %4174 = vpow2.f32 %v2352_v10  ;;  %v6367_v49 = vadd.f32 %v5505_v34, %v5697_v17  ;;  %v7810_v34 = vld [vmem:[#allocation94_spill] sm:$0xff] }
 0x2f7   :  { %v6357_v31 = vpop.eup %4164  ;;  %v2354_v13 = vmul.f32 1.442695, %v2264_v24  ;;  %v2356_v50 = vmul.f32 1.442695, %v2265_v40  ;;  %2236 = vmax.xlane.f32.xlu1 %v2235_v9  ;;  %2458 = vadd.xlane.f32.xlu0 %v2457_v2  ;;  %v7811_v24 = vld [vmem:[#allocation34_spill] sm:$0xff]  ;;  %v7813_v2 = vld [vmem:[#allocation95_spill] sm:$0xff] }
 0x2f8   :  { %7802 = vst [vmem:[#allocation172_spill] sm:$0xff] %v6357_v31  ;;  %v6359_v4 = vpop.eup %4166  ;;  %7805 = vst [vmem:[#allocation175_spill] sm:$0xff] %v6367_v49  ;;  %v2186_v32 = vpop.xlane.xlu0 %2185  ;;  %v6381_v40 = vadd.f32 %v7811_v24, %v7810_v34 }
 0x2f9   :  { %7803 = vst [vmem:[#allocation173_spill] sm:$0xff] %v6359_v4  ;;  %4176 = vpow2.f32 %v2354_v13  ;;  %v2266_v8 = vsub.f32 %v7806_v46, %v2186_v32  ;;  %v2267_v10 = vsub.f32 %v7807_v1, %v2186_v32  ;;  %v2460_v42 = vadd.f32 %v6359_v4, %v6357_v31  ;;  %v7814_v13 = vld [vmem:[#allocation35_spill] sm:$0xff]  ;;  %v7816_v1 = vld [vmem:[#allocation124_spill] sm:$0xff] }
 0x2fa   :  { %4178 = vpow2.f32 %v2356_v50  ;;  %7812 = vst [vmem:[#allocation94_spill] sm:$0xff] %v6381_v40  ;;  %v6385_v46 = vadd.f32 %v7814_v13, %v7813_v2  ;;  %v1280_v50 = vmax.f32 %v6363_v19, %v6367_v49  ;;  %v7820_v13 = vld [vmem:[#allocation96_spill] sm:$0xff]  ;;  %v7830_v19 = vld [vmem:[#allocation98_spill] sm:$0xff] }
 0x2fb   :  { %v6375_v9 = vpop.eup %4168  ;;  %v2358_v23 = vmul.f32 1.442695, %v2266_v8  ;;  %v2360_v52 = vmul.f32 1.442695, %v2267_v10  ;;  %1278 = vmax.xlane.f32.xlu1 %v1277_v29  ;;  %2461 = vadd.xlane.f32.xlu0 %v2460_v42  ;;  %v7817_v10 = vld [vmem:[#allocation125_spill] sm:$0xff]  ;;  %v7821_v4 = vld [vmem:[#allocation36_spill] sm:$0xff] }
 0x2fc   :  { %7808 = vst [vmem:[#allocation120_spill] sm:$0xff] %v6375_v9  ;;  %v6377_v17 = vpop.eup %4170  ;;  %7815 = vst [vmem:[#allocation34_spill] sm:$0xff] %v6385_v46  ;;  %v2189_v32 = vpop.xlane.xlu1 %2188  ;;  %v6399_v0 = vadd.f32 %v7821_v4, %v7820_v13 }
 0x2fd   :  { %7809 = vst [vmem:[#allocation121_spill] sm:$0xff] %v6377_v17  ;;  %4180 = vpow2.f32 %v2358_v23  ;;  %v2268_v8 = vsub.f32 %v7816_v1, %v2189_v32  ;;  %v2269_v29 = vsub.f32 %v7817_v10, %v2189_v32  ;;  %v2463_v42 = vadd.f32 %v6377_v17, %v6375_v9  ;;  %v7823_v23 = vld [vmem:[#allocation97_spill] sm:$0xff] }
 0x2fe   :  { %4182 = vpow2.f32 %v2360_v52  ;;  %7822 = vst [vmem:[#allocation124_spill] sm:$0xff] %v6399_v0  ;;  %v7824_v1 = vld [vmem:[#allocation37_spill] sm:$0xff]  ;;  %v1283_v52 = vmax.f32 %v6381_v40, %v6385_v46  ;;  %v7831_v46 = vld [vmem:[#allocation38_spill] sm:$0xff]  ;;  %v7834_v40 = vld [vmem:[#allocation39_spill] sm:$0xff] }
 0x2ff   :  { %v6393_v31 = vpop.eup %4172  ;;  %v2362_v34 = vmul.f32 1.442695, %v2268_v8  ;;  %v2364_v24 = vmul.f32 1.442695, %v2269_v29  ;;  %1281 = vmax.xlane.f32.xlu1 %v1280_v50  ;;  %2464 = vadd.xlane.f32.xlu0 %v2463_v42  ;;  %v6403_v25 = vadd.f32 %v7824_v1, %v7823_v23  ;;  %v7826_v50 = vld [vmem:[#allocation128_spill] sm:$0xff]  ;;  %v7827_v9 = vld [vmem:[#allocation129_spill] sm:$0xff] }
 0x300   :  { %7818 = vst [vmem:[#allocation95_spill] sm:$0xff] %v6393_v31  ;;  %v6395_v2 = vpop.eup %4174  ;;  %v4116_v32 = vpop.permute.xlu1 %4115 }
 0x301   :  { %7819 = vst [vmem:[#allocation35_spill] sm:$0xff] %v6395_v2  ;;  %7825 = vst [vmem:[#allocation125_spill] sm:$0xff] %v6403_v25  ;;  %v2192_v10 = vpop.xlane.xlu0 %2191  ;;  %4184 = vpow2.f32 %v2362_v34  ;;  %v4118_v8 = vunpack.i.h.bf16 %v4116_v32  ;;  %v4117_v29 = vunpack.i.l.bf16 %v4116_v32  ;;  %v2466_v4 = vadd.f32 %v6395_v2, %v6393_v31  ;;  %v7833_v32 = vld [vmem:[#allocation99_spill] sm:$0xff]  ;;  %v7857_v31 = vld [vmem:[#allocation104_spill] sm:$0xff] }
 0x302   :  { %v2270_v42 = vsub.f32 %v7826_v50, %v2192_v10  ;;  %4186 = vpow2.f32 %v2364_v24  ;;  %v2271_v17 = vsub.f32 %v7827_v9, %v2192_v10  ;;  %v6417_v34 = vadd.f32 %v7831_v46, %v7830_v19  ;;  %v7860_v2 = vld [vmem:[#allocation105_spill] sm:$0xff] }
 0x303   :  { %v6411_v13 = vpop.eup %4176  ;;  %v3925_v23 = vpack.c.bf16 %v4118_v8, %v4117_v29  ;;  %1284 = vmax.xlane.f32.xlu1 %v1283_v52  ;;  %v6421_v50 = vadd.f32 %v7834_v40, %v7833_v32  ;;  %2467 = vadd.xlane.f32.xlu0 %v2466_v4  ;;  %v1286_v10 = vmax.f32 %v6399_v0, %v6403_v25  ;;  %v7836_v8 = vld [vmem:[#allocation132_spill] sm:$0xff]  ;;  %v7837_v52 = vld [vmem:[#allocation133_spill] sm:$0xff]  ;;  %v7838_v46 = vmov 0.0|0.0  }
 0x304   :  { %7828 = vst [vmem:[#allocation96_spill] sm:$0xff] %v6411_v13  ;;  %v2366_v1 = vmul.f32 1.442695, %v2270_v42  ;;  %v6413_v49 = vpop.eup %4178  ;;  %7832 = vst [vmem:[#allocation97_spill] sm:$0xff] %v6417_v34  ;;  %v2368_v24 = vmul.f32 1.442695, %v2271_v17 }
 0x305   :  { %7829 = vst [vmem:[#allocation36_spill] sm:$0xff] %v6413_v49  ;;  %7835 = vst [vmem:[#allocation37_spill] sm:$0xff] %v6421_v50  ;;  %v2195_v9 = vpop.xlane.xlu0 %2194  ;;  %3926 = vmatpush1.bf16.msra.mxu0 %v3925_v23  ;;  %v2469_v19 = vadd.f32 %v6413_v49, %v6411_v13  ;;  %v7845_v13 = vld [vmem:[#allocation41_spill] sm:$0xff] }
 0x306   :  { %4188 = vpow2.f32 %v2366_v1  ;;  %v2272_v29 = vsub.f32 %v7836_v8, %v2195_v9  ;;  %v2273_v42 = vsub.f32 %v7837_v52, %v2195_v9  ;;  %3927 = vmatprep.subr.bf16.mxu0 %v7838_v46  ;;  %v1289_v1 = vmax.f32 %v6417_v34, %v6421_v50  ;;  %v7841_v8 = vld [vmem:[#allocation100_spill] sm:$0xff]  ;;  %v7844_v52 = vld [vmem:[#allocation101_spill] sm:$0xff] }
 0x307   :  { %4190 = vpow2.f32 %v2368_v24  ;;  %v6430_v40 = vpop.eup %4180  ;;  %1287 = vmax.xlane.f32.xlu1 %v1286_v10  ;;  %2470 = vadd.xlane.f32.xlu0 %v2469_v19  ;;  %v7842_v9 = vld [vmem:[#allocation40_spill] sm:$0xff]  ;;  %v6442_v24 = vadd.f32 %v7845_v13, %v7844_v52  ;;  %v7852_v13 = vld [vmem:[#allocation103_spill] sm:$0xff] }
 0x308   :  { %7839 = vst [vmem:[#allocation128_spill] sm:$0xff] %v6430_v40  ;;  %v2370_v17 = vmul.f32 1.442695, %v2272_v29  ;;  %v2372_v4 = vmul.f32 1.442695, %v2273_v42  ;;  %v6432_v32 = vpop.eup %4182  ;;  %v6438_v23 = vadd.f32 %v7842_v9, %v7841_v8  ;;  %v7849_v8 = vld [vmem:[#allocation102_spill] sm:$0xff] }
 0x309   :  { %7840 = vst [vmem:[#allocation129_spill] sm:$0xff] %v6432_v32  ;;  %7846 = vst [vmem:[#allocation38_spill] sm:$0xff] %v6442_v24  ;;  %v2472_v29 = vadd.f32 %v6432_v32, %v6430_v40  ;;  %v7850_v9 = vld [vmem:[#allocation42_spill] sm:$0xff]  ;;  %v7853_v52 = vld [vmem:[#allocation43_spill] sm:$0xff] }
 0x30a   :  { %7843 = vst [vmem:[#allocation98_spill] sm:$0xff] %v6438_v23  ;;  %4192 = vpow2.f32 %v2370_v17  ;;  %v1292_v19 = vmax.f32 %v6438_v23, %v6442_v24  ;;  %v6454_v49 = vadd.f32 %v7850_v9, %v7849_v8  ;;  %v6458_v17 = vadd.f32 %v7853_v52, %v7852_v13  ;;  %v7858_v8 = vld [vmem:[#allocation44_spill] sm:$0xff]  ;;  %v7861_v13 = vld [vmem:[#allocation45_spill] sm:$0xff]  ;;  %v7866_v24 = vld [vmem:[#allocation46_spill] sm:$0xff] }
 0x30b   :  { %4194 = vpow2.f32 %v2372_v4  ;;  %v6446_v10 = vpop.eup %4184  ;;  %1290 = vmax.xlane.f32.xlu1 %v1289_v1  ;;  %2473 = vadd.xlane.f32.xlu0 %v2472_v29  ;;  %v6470_v9 = vadd.f32 %v7858_v8, %v7857_v31  ;;  %v6474_v52 = vadd.f32 %v7861_v13, %v7860_v2 }
 0x30c   :  { %7847 = vst [vmem:[#allocation99_spill] sm:$0xff] %v6446_v10  ;;  %v6448_v42 = vpop.eup %4186  ;;  %7851 = vst [vmem:[#allocation132_spill] sm:$0xff] %v6454_v49  ;;  %v2201_v29 = vpop.xlane.xlu0 %2200  ;;  %v1295_v32 = vmax.f32 %v6454_v49, %v6458_v17  ;;  %v7869_v49 = vld [vmem:[#allocation47_spill] sm:$0xff] }
 0x30d   :  { %7848 = vst [vmem:[#allocation39_spill] sm:$0xff] %v6448_v42  ;;  %7854 = vst [vmem:[#allocation133_spill] sm:$0xff] %v6458_v17  ;;  %v2475_v4 = vadd.f32 %v6448_v42, %v6446_v10  ;;  %v7868_v17 = vld [vmem:[#allocation107_spill] sm:$0xff]  ;;  %v1298_v2 = vmax.f32 %v6470_v9, %v6474_v52 }
 0x30e   :  { %7859 = vst [vmem:[#allocation101_spill] sm:$0xff] %v6470_v9  ;;  %7862 = vst [vmem:[#allocation41_spill] sm:$0xff] %v6474_v52  ;;  %v6488_v31 = vadd.f32 %v7869_v49, %v7868_v17  ;;  %v7874_v49 = vld [vmem:[#allocation109_spill] sm:$0xff] }
 0x30f   :  { %1293 = vmax.xlane.f32.xlu1 %v1292_v19  ;;  %2476 = vadd.xlane.f32.xlu0 %v2475_v4  ;;  %v7865_v4 = vld [vmem:[#allocation106_spill] sm:$0xff] }
 0x310   :  { %v6462_v40 = vpop.eup %4188  ;;  %v6484_v23 = vadd.f32 %v7866_v24, %v7865_v4  ;;  %7870 = vst [vmem:[#allocation43_spill] sm:$0xff] %v6488_v31  ;;  %v7871_v4 = vld [vmem:[#allocation108_spill] sm:$0xff] }
 0x311   :  { %7855 = vst [vmem:[#allocation100_spill] sm:$0xff] %v6462_v40  ;;  %v6464_v1 = vpop.eup %4190 }
 0x312   :  { %7856 = vst [vmem:[#allocation40_spill] sm:$0xff] %v6464_v1  ;;  %v2478_v10 = vadd.f32 %v6464_v1, %v6462_v40  ;;  %7867 = vst [vmem:[#allocation103_spill] sm:$0xff] %v6484_v23  ;;  %v7872_v40 = vld [vmem:[#allocation48_spill] sm:$0xff] }
 0x313   :  { %1296 = vmax.xlane.f32.xlu1 %v1295_v32  ;;  %v1301_v32 = vmax.f32 %v6484_v23, %v6488_v31  ;;  %v6500_v1 = vadd.f32 %v7872_v40, %v7871_v4  ;;  %v7881_v23 = vld [vmem:[#allocation51_spill] sm:$0xff]  ;;  %v7887_v4 = vld [vmem:[#allocation53_spill] sm:$0xff] }
 0x314   :  { %v6478_v42 = vpop.eup %4192  ;;  %2479 = vadd.xlane.f32.xlu0 %v2478_v10  ;;  %v6490_v8 = vpop.xlane.xlu0 %2206  ;;  %v7875_v10 = vld [vmem:[#allocation49_spill] sm:$0xff] }
 0x315   :  { %7863 = vst [vmem:[#allocation102_spill] sm:$0xff] %v6478_v42  ;;  %v6480_v19 = vpop.eup %4194  ;;  %7873 = vst [vmem:[#allocation104_spill] sm:$0xff] %v6500_v1  ;;  %v6504_v17 = vadd.f32 %v7875_v10, %v7874_v49  ;;  %v7892_v10 = vld [vmem:[#allocation115_spill] sm:$0xff] }
 0x316   :  { %7864 = vst [vmem:[#allocation42_spill] sm:$0xff] %v6480_v19  ;;  %v2481_v13 = vadd.f32 %v6480_v19, %v6478_v42  ;;  %v7877_v42 = vld [vmem:[#allocation110_spill] sm:$0xff] }
 0x317   :  { %1299 = vmax.xlane.f32.xlu1 %v1298_v2  ;;  %7876 = vst [vmem:[#allocation44_spill] sm:$0xff] %v6504_v17  ;;  %v1304_v2 = vmax.f32 %v6500_v1, %v6504_v17  ;;  %v7878_v19 = vld [vmem:[#allocation50_spill] sm:$0xff] }
 0x318   :  { %2482 = vadd.xlane.f32.xlu0 %v2481_v13  ;;  %v4121_v24 = vpop.permute.xlu0 %4120  ;;  %v6510_v31 = vadd.f32 %v7878_v19, %v7877_v42  ;;  %v7880_v13 = vld [vmem:[#allocation111_spill] sm:$0xff]  ;;  %v7889_v42 = vld [vmem:[#allocation114_spill] sm:$0xff] }
 0x319   :  { %v4123_v50 = vunpack.i.h.bf16 %v4121_v24  ;;  %v4122_v34 = vunpack.i.l.bf16 %v4121_v24  ;;  %v6514_v9 = vadd.f32 %v7881_v23, %v7880_v13  ;;  %v7886_v24 = vld [vmem:[#allocation113_spill] sm:$0xff]  ;;  %v7914_v1 = vld [vmem:[#allocation126_spill] sm:$0xff] }
 0x31a   :  { %7879 = vst [vmem:[#allocation105_spill] sm:$0xff] %v6510_v31  ;;  %v6525_v49 = vadd.f32 %v7887_v4, %v7886_v24  ;;  %v7899_v4 = vld [vmem:[#allocation57_spill] sm:$0xff] }
 0x31b   :  { %v3928_v52 = vpack.c.bf16 %v4123_v50, %v4122_v34  ;;  %1302 = vmax.xlane.f32.xlu1 %v1301_v32  ;;  %7882 = vst [vmem:[#allocation45_spill] sm:$0xff] %v6514_v9  ;;  %v1307_v40 = vmax.f32 %v6510_v31, %v6514_v9  ;;  %v7883_v34 = vld [vmem:[#allocation112_spill] sm:$0xff] }
 0x31c   :  { %v7884_v50 = vld [vmem:[#allocation52_spill] sm:$0xff]  ;;  %7888 = vst [vmem:[#allocation46_spill] sm:$0xff] %v6525_v49 }
 0x31d   :  { %3929 = vmatpush1.bf16.msra.mxu0 %v3928_v52  ;;  %v6521_v32 = vadd.f32 %v7884_v50, %v7883_v34  ;;  %v7890_v52 = vld [vmem:[#allocation54_spill] sm:$0xff]  ;;  %v7895_v50 = vld [vmem:[#allocation116_spill] sm:$0xff] }
 0x31e   :  { %3930 = vmatprep.subr.bf16.mxu0 %v7838_v46  ;;  %v6531_v19 = vadd.f32 %v7890_v52, %v7889_v42  ;;  %v7896_v9 = vld [vmem:[#allocation56_spill] sm:$0xff]  ;;  %v7901_v52 = vld [vmem:[#allocation118_spill] sm:$0xff] }
 0x31f   :  { %1305 = vmax.xlane.f32.xlu1 %v1304_v2  ;;  %7885 = vst [vmem:[#allocation106_spill] sm:$0xff] %v6521_v32  ;;  %v1310_v23 = vmax.f32 %v6521_v32, %v6525_v49  ;;  %v7893_v2 = vld [vmem:[#allocation55_spill] sm:$0xff]  ;;  %v6541_v24 = vadd.f32 %v7896_v9, %v7895_v50  ;;  %v7902_v49 = vld [vmem:[#allocation58_spill] sm:$0xff] }
 0x320   :  { %7891 = vst [vmem:[#allocation107_spill] sm:$0xff] %v6531_v19  ;;  %v6535_v13 = vadd.f32 %v7893_v2, %v7892_v10  ;;  %v6551_v10 = vadd.f32 %v7902_v49, %v7901_v52  ;;  %v7905_v2 = vld [vmem:[#allocation59_spill] sm:$0xff]  ;;  %v7912_v49 = vld [vmem:[#allocation137_spill] sm:$0xff] }
 0x321   :  { %7897 = vst [vmem:[#allocation108_spill] sm:$0xff] %v6541_v24  ;;  %v2277_v52 = vsub.f32 %v7912_v49, %v2201_v29 }
 0x322   :  { %7894 = vst [vmem:[#allocation47_spill] sm:$0xff] %v6535_v13  ;;  %v1313_v34 = vmax.f32 %v6531_v19, %v6535_v13  ;;  %7903 = vst [vmem:[#allocation109_spill] sm:$0xff] %v6551_v10  ;;  %v7907_v13 = vld [vmem:[#allocation136_spill] sm:$0xff]  ;;  %v7910_v19 = vld [vmem:[#allocation123_spill] sm:$0xff] }
 0x323   :  { %1308 = vmax.xlane.f32.xlu1 %v1307_v40  ;;  %v7898_v40 = vld [vmem:[#allocation117_spill] sm:$0xff]  ;;  %v2276_v9 = vsub.f32 %v7907_v13, %v2201_v29  ;;  %v7915_v13 = vld [vmem:[#allocation62_spill] sm:$0xff] }
 0x324   :  { %v6545_v31 = vadd.f32 %v7899_v4, %v7898_v40  ;;  %v7908_v40 = vld [vmem:[#allocation122_spill] sm:$0xff]  ;;  %v7909_v4 = vld [vmem:[#allocation60_spill] sm:$0xff]  ;;  %v6573_v25 = vadd.f32 %v7915_v13, %v7914_v1  ;;  %v7926_v13 = vld [vmem:[#allocation65_spill] sm:$0xff] }
 0x326   :  { %7900 = vst [vmem:[#allocation48_spill] sm:$0xff] %v6545_v31  ;;  %v1316_v42 = vmax.f32 %v6541_v24, %v6545_v31  ;;  %v7911_v31 = vld [vmem:[#allocation61_spill] sm:$0xff]  ;;  %7916 = vst [vmem:[#allocation110_spill] sm:$0xff] %v6573_v25 }
 0x327   :  { %1311 = vmax.xlane.f32.xlu1 %v1310_v23  ;;  %v7904_v23 = vld [vmem:[#allocation119_spill] sm:$0xff]  ;;  %v6566_v24 = vadd.f32 %v7911_v31, %v7910_v19  ;;  %v2380_v19 = vmul.f32 1.442695, %v2277_v52 }
 0x328   :  { %v6555_v32 = vadd.f32 %v7905_v2, %v7904_v23  ;;  %v7913_v2 = vld [vmem:[#allocation144_spill] sm:$0xff] }
 0x32a   :  { %7906 = vst [vmem:[#allocation49_spill] sm:$0xff] %v6555_v32  ;;  %v1319_v50 = vmax.f32 %v6551_v10, %v6555_v32  ;;  %v7917_v32 = vld [vmem:[#allocation127_spill] sm:$0xff] }
 0x32b   :  { %1314 = vmax.xlane.f32.xlu1 %v1313_v34  ;;  %v6562_v34 = vadd.f32 %v7909_v4, %v7908_v40  ;;  %v7918_v10 = vld [vmem:[#allocation63_spill] sm:$0xff]  ;;  %v2378_v40 = vmul.f32 1.442695, %v2276_v9 }
 0x32c   :  { %v6577_v0 = vadd.f32 %v7918_v10, %v7917_v32  ;;  %v7922_v32 = vld [vmem:[#allocation130_spill] sm:$0xff]  ;;  %v7923_v10 = vld [vmem:[#allocation64_spill] sm:$0xff] }
 0x32d   :  { %v1322_v29 = vmax.f32 %v6562_v34, %v6566_v24  ;;  %v6587_v9 = vadd.f32 %v7923_v10, %v7922_v32  ;;  %v7931_v32 = vld [vmem:[#allocation143_spill] sm:$0xff] }
 0x32e   :  { %7919 = vst [vmem:[#allocation50_spill] sm:$0xff] %v6577_v0  ;;  %v1325_v1 = vmax.f32 %v6573_v25, %v6577_v0  ;;  %v7929_v0 = vld [vmem:[#allocation66_spill] sm:$0xff] }
 0x32f   :  { %1317 = vmax.xlane.f32.xlu1 %v1316_v42 }
 0x331   :  { %v2198_v17 = vpop.xlane.xlu1 %2197 }
 0x332   :  { %v2274_v23 = vsub.f32 %v6050_v6, %v2198_v17  ;;  %v2275_v42 = vsub.f32 %v7913_v2, %v2198_v17  ;;  %v7920_v6 = vld [vmem:[#allocation147_spill] sm:$0xff]  ;;  %v7921_v2 = vld [vmem:[#allocation148_spill] sm:$0xff] }
 0x333   :  { %1320 = vmax.xlane.f32.xlu1 %v1319_v50  ;;  %v7924_v50 = vld [vmem:[#allocation140_spill] sm:$0xff] }
 0x334   :  { %v2374_v4 = vmul.f32 1.442695, %v2274_v23  ;;  %v2376_v31 = vmul.f32 1.442695, %v2275_v42  ;;  %v2280_v23 = vsub.f32 %v7924_v50, %v6490_v8  ;;  %v7925_v42 = vld [vmem:[#allocation131_spill] sm:$0xff] }
 0x335   :  { %v2204_v49 = vpop.xlane.xlu1 %2203 }
 0x336   :  { %4196 = vpow2.f32 %v2374_v4  ;;  %v2278_v17 = vsub.f32 %v7920_v6, %v2204_v49  ;;  %v2279_v18 = vsub.f32 %v7921_v2, %v2204_v49  ;;  %v6593_v4 = vadd.f32 %v7926_v13, %v7925_v42  ;;  %v7927_v49 = vld [vmem:[#allocation141_spill] sm:$0xff] }
 0x337   :  { %4198 = vpow2.f32 %v2376_v31  ;;  %1323 = vmax.xlane.f32.xlu1 %v1322_v29  ;;  %v2281_v6 = vsub.f32 %v7927_v49, %v6490_v8  ;;  %v7928_v29 = vld [vmem:[#allocation142_spill] sm:$0xff] }
 0x338   :  { %4200 = vpow2.f32 %v2378_v40  ;;  %v2382_v52 = vmul.f32 1.442695, %v2278_v17  ;;  %v2384_v2 = vmul.f32 1.442695, %v2279_v18  ;;  %v6599_v25 = vadd.f32 %v7929_v0, %v7928_v29  ;;  %v7932_v40 = vld [vmem:[#allocation67_spill] sm:$0xff]  ;;  %v7935_v49 = vld [vmem:[#allocation134_spill] sm:$0xff] }
 0x339   :  { %4202 = vpow2.f32 %v2380_v19  ;;  %v2210_v31 = vpop.xlane.xlu1 %2209  ;;  %v6603_v10 = vadd.f32 %v7932_v40, %v7931_v32  ;;  %v2386_v17 = vmul.f32 1.442695, %v2280_v23  ;;  %v1328_v19 = vmax.f32 %v6587_v9, %v6593_v4 }
 0x33a   :  { %7930 = vst [vmem:[#allocation111_spill] sm:$0xff] %v6599_v25  ;;  %4204 = vpow2.f32 %v2382_v52  ;;  %v2282_v50 = vsub.f32 %v6084_v36, %v2210_v31  ;;  %v2388_v42 = vmul.f32 1.442695, %v2281_v6  ;;  %v2283_v18 = vsub.f32 %v6087_v55, %v2210_v31  ;;  %v7938_v6 = vld [vmem:[#allocation135_spill] sm:$0xff] }
 0x33b   :  { %7933 = vst [vmem:[#allocation51_spill] sm:$0xff] %v6603_v10  ;;  %1326 = vmax.xlane.f32.xlu1 %v1325_v1  ;;  %4206 = vpow2.f32 %v2384_v2  ;;  %v1331_v0 = vmax.f32 %v6599_v25, %v6603_v10  ;;  %v7936_v1 = vld [vmem:[#allocation68_spill] sm:$0xff]  ;;  %v7939_v2 = vld [vmem:[#allocation69_spill] sm:$0xff]  ;;  %v7945_v10 = vld [vmem:[#allocation146_spill] sm:$0xff] }
 0x33c   :  { %v6615_v23 = vadd.f32 %v7936_v1, %v7935_v49  ;;  %4208 = vpow2.f32 %v2386_v17  ;;  %v2390_v36 = vmul.f32 1.442695, %v2282_v50  ;;  %v6622_v55 = vadd.f32 %v7939_v2, %v7938_v6  ;;  %v7942_v50 = vld [vmem:[#allocation145_spill] sm:$0xff]  ;;  %v7946_v25 = vld [vmem:[#allocation71_spill] sm:$0xff] }
 0x33d   :  { %v2213_v8 = vpop.xlane.xlu1 %2212  ;;  %4210 = vpow2.f32 %v2388_v42  ;;  %v2392_v31 = vmul.f32 1.442695, %v2283_v18  ;;  %v6637_v6 = vadd.f32 %v7946_v25, %v7945_v10 }
 0x33e   :  { %v2284_v52 = vsub.f32 %v6104_v22, %v2213_v8  ;;  %v2285_v32 = vsub.f32 %v6107_v58, %v2213_v8  ;;  %v7943_v22 = vld [vmem:[#allocation70_spill] sm:$0xff]  ;;  %4212 = vpow2.f32 %v2390_v36  ;;  %v1334_v18 = vmax.f32 %v6615_v23, %v6622_v55  ;;  %v7951_v36 = vld [vmem:[#allocation72_spill] sm:$0xff] }
 0x33f   :  { %1329 = vmax.xlane.f32.xlu1 %v1328_v19  ;;  %v6633_v1 = vadd.f32 %v7943_v22, %v7942_v50  ;;  %7947 = vst [vmem:[#allocation54_spill] sm:$0xff] %v6637_v6  ;;  %4214 = vpow2.f32 %v2392_v31 }
 0x340   :  { %v6611_v13 = vpop.eup %4196  ;;  %v2394_v42 = vmul.f32 1.442695, %v2284_v52  ;;  %v2396_v8 = vmul.f32 1.442695, %v2285_v32  ;;  %v7953_v32 = vld [vmem:[#allocation139_spill] sm:$0xff] }
 0x341   :  { %7934 = vst [vmem:[#allocation112_spill] sm:$0xff] %v6611_v13  ;;  %v6618_v29 = vpop.eup %4198  ;;  %v2216_v40 = vpop.xlane.xlu1 %2215  ;;  %7944 = vst [vmem:[#allocation114_spill] sm:$0xff] %v6633_v1 }
 0x342   :  { %7937 = vst [vmem:[#allocation52_spill] sm:$0xff] %v6618_v29  ;;  %v6625_v19 = vpop.eup %4200  ;;  %v2484_v49 = vadd.f32 %v6618_v29, %v6611_v13  ;;  %v2286_v58 = vsub.f32 %v6124_v5, %v2216_v40  ;;  %v2287_v2 = vsub.f32 %v6127_v38, %v2216_v40  ;;  %v7950_v5 = vld [vmem:[#allocation138_spill] sm:$0xff]  ;;  %4216 = vpow2.f32 %v2394_v42  ;;  %v7954_v40 = vld [vmem:[#allocation73_spill] sm:$0xff] }
 0x343   :  { %7940 = vst [vmem:[#allocation113_spill] sm:$0xff] %v6625_v19  ;;  %v6629_v17 = vpop.eup %4202  ;;  %1332 = vmax.xlane.f32.xlu1 %v1331_v0  ;;  %v1337_v0 = vmax.f32 %v6633_v1, %v6637_v6  ;;  %v6653_v52 = vadd.f32 %v7951_v36, %v7950_v5  ;;  %4218 = vpow2.f32 %v2396_v8  ;;  %v7959_v42 = vld [vmem:[#allocation149_spill] sm:$0xff]  ;;  %v7962_v36 = vld [vmem:[#allocation75_spill] sm:$0xff] }
 0x344   :  { %7941 = vst [vmem:[#allocation53_spill] sm:$0xff] %v6629_v17  ;;  %2485 = vadd.xlane.f32.xlu0 %v2484_v49  ;;  %v6643_v50 = vpop.eup %4204  ;;  %v2487_v25 = vadd.f32 %v6629_v17, %v6625_v19  ;;  %v2398_v31 = vmul.f32 1.442695, %v2286_v58  ;;  %v6658_v49 = vadd.f32 %v7954_v40, %v7953_v32  ;;  %v2400_v22 = vmul.f32 1.442695, %v2287_v2  ;;  %v7956_v19 = vld [vmem:[#allocation157_spill] sm:$0xff] }
 0x345   :  { %v2219_v13 = vpop.xlane.xlu1 %2218  ;;  %7948 = vst [vmem:[#allocation115_spill] sm:$0xff] %v6643_v50  ;;  %v6647_v10 = vpop.eup %4206  ;;  %7952 = vst [vmem:[#allocation116_spill] sm:$0xff] %v6653_v52  ;;  %v7960_v58 = vld [vmem:[#allocation74_spill] sm:$0xff] }
 0x346   :  { %7949 = vst [vmem:[#allocation55_spill] sm:$0xff] %v6647_v10  ;;  %v2288_v38 = vsub.f32 %v6142_v62, %v2219_v13  ;;  %7955 = vst [vmem:[#allocation56_spill] sm:$0xff] %v6658_v49  ;;  %v2289_v17 = vsub.f32 %v7956_v19, %v2219_v13  ;;  %v6661_v6 = vpop.eup %4208  ;;  %v6669_v62 = vadd.f32 %v7960_v58, %v7959_v42  ;;  %4220 = vpow2.f32 %v2398_v31  ;;  %v7964_v13 = vld [vmem:[#allocation160_spill] sm:$0xff]  ;;  %v7967_v31 = vld [vmem:[#allocation151_spill] sm:$0xff] }
 0x347   :  { %1335 = vmax.xlane.f32.xlu1 %v1334_v18  ;;  %7957 = vst [vmem:[#allocation117_spill] sm:$0xff] %v6661_v6  ;;  %v2490_v18 = vadd.f32 %v6647_v10, %v6643_v50  ;;  %v6665_v5 = vpop.eup %4210  ;;  %v1340_v2 = vmax.f32 %v6653_v52, %v6658_v49  ;;  %4222 = vpow2.f32 %v2400_v22  ;;  %v7965_v50 = vld [vmem:[#allocation161_spill] sm:$0xff]  ;;  %v7969_v22 = vld [vmem:[#allocation164_spill] sm:$0xff] }
 0x348   :  { %2488 = vadd.xlane.f32.xlu0 %v2487_v25  ;;  %7958 = vst [vmem:[#allocation57_spill] sm:$0xff] %v6665_v5  ;;  %v7961_v25 = vld [vmem:[#allocation150_spill] sm:$0xff]  ;;  %v2402_v8 = vmul.f32 1.442695, %v2288_v38  ;;  %v2404_v40 = vmul.f32 1.442695, %v2289_v17  ;;  %v6679_v42 = vpop.eup %4212  ;;  %v2493_v58 = vadd.f32 %v6665_v5, %v6661_v6 }
 0x349   :  { %v2222_v29 = vpop.xlane.xlu1 %2221  ;;  %v6673_v32 = vadd.f32 %v7962_v36, %v7961_v25  ;;  %7966 = vst [vmem:[#allocation58_spill] sm:$0xff] %v6679_v42  ;;  %v6683_v25 = vpop.eup %4214  ;;  %v7968_v38 = vld [vmem:[#allocation76_spill] sm:$0xff]  ;;  %v7971_v36 = vld [vmem:[#allocation77_spill] sm:$0xff] }
 0x34a   :  { %v2290_v19 = vsub.f32 %v7964_v13, %v2222_v29  ;;  %v2291_v10 = vsub.f32 %v7965_v50, %v2222_v29  ;;  %4224 = vpow2.f32 %v2402_v8  ;;  %v7970_v50 = vld [vmem:[#allocation152_spill] sm:$0xff]  ;;  %v7972_v5 = vld [vmem:[#allocation165_spill] sm:$0xff] }
 0x34b   :  { %7963 = vst [vmem:[#allocation118_spill] sm:$0xff] %v6673_v32  ;;  %1338 = vmax.xlane.f32.xlu1 %v1337_v0  ;;  %v1343_v0 = vmax.f32 %v6669_v62, %v6673_v32  ;;  %v6694_v13 = vadd.f32 %v7971_v36, %v7970_v50  ;;  %4226 = vpow2.f32 %v2404_v40  ;;  %v7974_v8 = vld [vmem:[#allocation153_spill] sm:$0xff] }
 0x34c   :  { %2491 = vadd.xlane.f32.xlu0 %v2490_v18  ;;  %v6689_v18 = vadd.f32 %v7968_v38, %v7967_v31  ;;  %v2406_v17 = vmul.f32 1.442695, %v2290_v19  ;;  %v2408_v6 = vmul.f32 1.442695, %v2291_v10  ;;  %v6697_v32 = vpop.eup %4216  ;;  %v7975_v19 = vld [vmem:[#allocation78_spill] sm:$0xff] }
 0x34d   :  { %v2225_v1 = vpop.xlane.xlu1 %2224  ;;  %7973 = vst [vmem:[#allocation119_spill] sm:$0xff] %v6697_v32  ;;  %v6701_v31 = vpop.eup %4218  ;;  %v6705_v38 = vadd.f32 %v7975_v19, %v7974_v8 }
 0x34e   :  { %v2292_v29 = vsub.f32 %v7969_v22, %v2225_v1  ;;  %v2293_v49 = vsub.f32 %v7972_v5, %v2225_v1  ;;  %v7977_v22 = vld [vmem:[#allocation79_spill] sm:$0xff]  ;;  %4228 = vpow2.f32 %v2406_v17  ;;  %v1346_v5 = vmax.f32 %v6689_v18, %v6694_v13 }
 0x34f   :  { %1341 = vmax.xlane.f32.xlu1 %v1340_v2  ;;  %v2496_v2 = vadd.f32 %v6683_v25, %v6679_v42  ;;  %4230 = vpow2.f32 %v2408_v6 }
 0x350   :  { %2494 = vadd.xlane.f32.xlu0 %v2493_v58  ;;  %v7976_v58 = vld [vmem:[#allocation154_spill] sm:$0xff]  ;;  %v2410_v10 = vmul.f32 1.442695, %v2292_v29  ;;  %v2412_v40 = vmul.f32 1.442695, %v2293_v49  ;;  %v6715_v8 = vpop.eup %4220 }
 0x351   :  { %v2228_v52 = vpop.xlane.xlu1 %2227  ;;  %v6709_v50 = vadd.f32 %v7977_v22, %v7976_v58  ;;  %7978 = vst [vmem:[#allocation59_spill] sm:$0xff] %v6715_v8  ;;  %v6719_v19 = vpop.eup %4222  ;;  %v7983_v58 = vld [vmem:[#allocation81_spill] sm:$0xff] }
 0x352   :  { %v2294_v1 = vsub.f32 %v6196_v12, %v2228_v52  ;;  %v2295_v36 = vsub.f32 %v6199_v37, %v2228_v52  ;;  %7979 = vst [vmem:[#allocation136_spill] sm:$0xff] %v6719_v19  ;;  %4232 = vpow2.f32 %v2410_v10  ;;  %v7980_v37 = vld [vmem:[#allocation155_spill] sm:$0xff]  ;;  %v7981_v52 = vld [vmem:[#allocation80_spill] sm:$0xff]  ;;  %v2502_v10 = vadd.f32 %v6719_v19, %v6715_v8 }
 0x353   :  { %1344 = vmax.xlane.f32.xlu1 %v1343_v0  ;;  %v2499_v0 = vadd.f32 %v6701_v31, %v6697_v32  ;;  %v1349_v12 = vmax.f32 %v6705_v38, %v6709_v50  ;;  %v6727_v49 = vadd.f32 %v7981_v52, %v7980_v37  ;;  %4234 = vpow2.f32 %v2412_v40  ;;  %v7987_v52 = vld [vmem:[#allocation82_spill] sm:$0xff]  ;;  %v7989_v8 = vld [vmem:[#allocation83_spill] sm:$0xff] }
 0x354   :  { %2497 = vadd.xlane.f32.xlu0 %v2496_v2  ;;  %v2414_v29 = vmul.f32 1.442695, %v2294_v1  ;;  %v7982_v2 = vld [vmem:[#allocation156_spill] sm:$0xff]  ;;  %v2416_v32 = vmul.f32 1.442695, %v2295_v36  ;;  %v7986_v36 = vld [vmem:[#allocation158_spill] sm:$0xff] }
 0x355   :  { %v2231_v42 = vpop.xlane.xlu1 %2230  ;;  %v6731_v22 = vadd.f32 %v7983_v58, %v7982_v2  ;;  %v6745_v2 = vadd.f32 %v7987_v52, %v7986_v36  ;;  %v7988_v58 = vld [vmem:[#allocation159_spill] sm:$0xff]  ;;  %v7995_v52 = vld [vmem:[#allocation85_spill] sm:$0xff] }
 0x356   :  { %v2296_v17 = vsub.f32 %v6216_v47, %v2231_v42  ;;  %v2297_v6 = vsub.f32 %v6219_v39, %v2231_v42  ;;  %4236 = vpow2.f32 %v2414_v29  ;;  %v6749_v19 = vadd.f32 %v7989_v8, %v7988_v58  ;;  %v7992_v8 = vld [vmem:[#allocation162_spill] sm:$0xff]  ;;  %v7994_v36 = vld [vmem:[#allocation163_spill] sm:$0xff] }
 0x357   :  { %1347 = vmax.xlane.f32.xlu1 %v1346_v5  ;;  %v6733_v5 = vpop.eup %4224  ;;  %v1352_v40 = vmax.f32 %v6727_v49, %v6731_v22  ;;  %4238 = vpow2.f32 %v2416_v32  ;;  %v6765_v58 = vadd.f32 %v7995_v52, %v7994_v36 }
 0x358   :  { %2500 = vadd.xlane.f32.xlu0 %v2499_v0  ;;  %7984 = vst [vmem:[#allocation122_spill] sm:$0xff] %v6733_v5  ;;  %v6737_v1 = vpop.eup %4226  ;;  %v2418_v39 = vmul.f32 1.442695, %v2296_v17  ;;  %v2420_v0 = vmul.f32 1.442695, %v2297_v6 }
 0x359   :  { %v2234_v47 = vpop.xlane.xlu1 %2233  ;;  %7985 = vst [vmem:[#allocation60_spill] sm:$0xff] %v6737_v1  ;;  %v6751_v17 = vpop.eup %4228 }
 0x35a   :  { %v2298_v42 = vsub.f32 %v6236_v63, %v2234_v47  ;;  %v2299_v37 = vsub.f32 %v6239_v7, %v2234_v47  ;;  %7990 = vst [vmem:[#allocation123_spill] sm:$0xff] %v6751_v17  ;;  %v2505_v63 = vadd.f32 %v6737_v1, %v6733_v5  ;;  %4240 = vpow2.f32 %v2418_v39 }
 0x35b   :  { %1350 = vmax.xlane.f32.xlu1 %v1349_v12  ;;  %v6755_v12 = vpop.eup %4230  ;;  %4242 = vpow2.f32 %v2420_v0  ;;  %v1355_v47 = vmax.f32 %v6745_v2, %v6749_v19 }
 0x35c   :  { %2503 = vadd.xlane.f32.xlu0 %v2502_v10  ;;  %7991 = vst [vmem:[#allocation61_spill] sm:$0xff] %v6755_v12  ;;  %v2422_v7 = vmul.f32 1.442695, %v2298_v42  ;;  %v2424_v29 = vmul.f32 1.442695, %v2299_v37  ;;  %v7993_v10 = vld [vmem:[#allocation84_spill] sm:$0xff]  ;;  %v6767_v5 = vpop.eup %4232  ;;  %v2508_v39 = vadd.f32 %v6755_v12, %v6751_v17 }
 0x35d   :  { %v6761_v32 = vadd.f32 %v7993_v10, %v7992_v8  ;;  %7996 = vst [vmem:[#allocation137_spill] sm:$0xff] %v6767_v5  ;;  %v6771_v42 = vpop.eup %4234  ;;  %v8001_v10 = vld [vmem:[#allocation87_spill] sm:$0xff] }
 0x35e   :  { %7997 = vst [vmem:[#allocation144_spill] sm:$0xff] %v6771_v42 }
 0x35f   :  { %1353 = vmax.xlane.f32.xlu1 %v1352_v40  ;;  %v1358_v37 = vmax.f32 %v6761_v32, %v6765_v58  ;;  %v7998_v40 = vld [vmem:[#allocation166_spill] sm:$0xff] }
 0x360   :  { %2506 = vadd.xlane.f32.xlu0 %v2505_v63  ;;  %v2432_v6 = vpop.xlane.xlu0 %2431  ;;  %v7999_v63 = vld [vmem:[#allocation86_spill] sm:$0xff]  ;;  %v6783_v52 = vpop.eup %4236 }
 0x361   :  { %4244 = vrcp.f32 %v2432_v6  ;;  %v6777_v8 = vadd.f32 %v7999_v63, %v7998_v40  ;;  %v8000_v6 = vld [vmem:[#allocation167_spill] sm:$0xff]  ;;  %8002 = vst [vmem:[#allocation126_spill] sm:$0xff] %v6783_v52  ;;  %v8004_v63 = vld [vmem:[#allocation88_spill] sm:$0xff] }
 0x362   :  { %4246 = vpow2.f32 %v2422_v7  ;;  %v6781_v36 = vadd.f32 %v8001_v10, %v8000_v6  ;;  %v2511_v7 = vadd.f32 %v6771_v42, %v6767_v5  ;;  %v6795_v6 = vadd.f32 %v8004_v63, %v6206_v11  ;;  %v8006_v10 = vld [vmem:[#allocation89_spill] sm:$0xff] }
 0x363   :  { %1356 = vmax.xlane.f32.xlu1 %v1355_v47  ;;  %4248 = vpow2.f32 %v2424_v29  ;;  %v6787_v29 = vpop.eup %4238 }
 0x364   :  { %2509 = vadd.xlane.f32.xlu0 %v2508_v39  ;;  %v2435_v0 = vpop.xlane.xlu0 %2434  ;;  %8003 = vst [vmem:[#allocation62_spill] sm:$0xff] %v6787_v29  ;;  %v6789_v39 = vpop.eup %4240  ;;  %v1361_v40 = vmax.f32 %v6777_v8, %v6781_v36 }
 0x365   :  { %4250 = vrcp.f32 %v2435_v0  ;;  %v8005_v0 = vld [vmem:[#allocation168_spill] sm:$0xff]  ;;  %v6801_v5 = vpop.eup %4242 }
 0x366   :  { %v6799_v17 = vadd.f32 %v8006_v10, %v8005_v0  ;;  %v8008_v10 = vld [vmem:[#allocation91_spill] sm:$0xff] }
 0x367   :  { %1359 = vmax.xlane.f32.xlu1 %v1358_v37  ;;  %v2514_v37 = vadd.f32 %v6787_v29, %v6783_v52  ;;  %v6817_v52 = vadd.f32 %v8008_v10, %v6231_v41 }
 0x368   :  { %2512 = vadd.xlane.f32.xlu0 %v2511_v7  ;;  %v2438_v47 = vpop.xlane.xlu0 %2437  ;;  %v1364_v63 = vmax.f32 %v6795_v6, %v6799_v17 }
 0x369   :  { %4252 = vrcp.f32 %v2438_v47  ;;  %v8007_v47 = vld [vmem:[#allocation90_spill] sm:$0xff] }
 0x36a   :  { %v6813_v0 = vadd.f32 %v8007_v47, %v6226_v33 }
 0x36b   :  { %v4245_v7 = vpop.eup %4244  ;;  %1362 = vmax.xlane.f32.xlu1 %v1361_v40 }
 0x36c   :  { %2515 = vadd.xlane.f32.xlu0 %v2514_v37  ;;  %v2441_v42 = vpop.xlane.xlu0 %2440  ;;  %v2559_v12 = vmul.f32 %v4245_v7, %v6251_v14  ;;  %v2558_v1 = vmul.f32 %v4245_v7, %v6249_v16  ;;  %v6807_v11 = vpop.eup %4246  ;;  %v2517_v16 = vadd.f32 %v6801_v5, %v6789_v39  ;;  %v8009_v37 = vld [vmem:[#allocation2_spill] sm:$0xff]  ;;  %v8010_v7 = vld [vmem:[#allocation3_spill] sm:$0xff] }
 0x36d   :  { %4254 = vrcp.f32 %v2441_v42  ;;  %v6819_v40 = vpop.eup %4248  ;;  %v8011_v29 = vpack.c.bf16 %v8009_v37, %v8010_v7  ;;  %v1367_v42 = vmax.f32 %v6813_v0, %v6817_v52 }
 0x36e   :  { %2814 = vmatprep.mubr.f32.mxu0 %v2559_v12  ;;  %v8012_v12 = vld [vmem:[#allocation92_spill] sm:$0xff] }
 0x36f   :  { %v4251_v14 = vpop.eup %4250  ;;  %1365 = vmax.xlane.f32.xlu1 %v1364_v63  ;;  %2815 = vmatmul.mubr.f32.vlgmr.msra.gmra.mrb[32].mxu0 %v2558_v1  ;;  %v6832_v10 = vadd.f32 %v8012_v12, %v6318_v44  ;;  %v8013_v63 = vld [vmem:[#allocation93_spill] sm:$0xff] }
 0x370   :  { %3932 = vmatpush1.bf16.msra.mxu0 %v8011_v29  ;;  %2518 = vadd.xlane.f32.xlu0 %v2517_v16  ;;  %v2444_v33 = vpop.xlane.xlu0 %2443  ;;  %v2561_v47 = vmul.f32 %v4251_v14, %v6259_v21  ;;  %v2560_v41 = vmul.f32 %v4251_v14, %v6257_v43  ;;  %v6836_v1 = vadd.f32 %v8013_v63, %v6323_v48  ;;  %v8014_v43 = vld [vmem:[#allocation4_spill] sm:$0xff]  ;;  %v8015_v16 = vld [vmem:[#allocation5_spill] sm:$0xff] }
 0x371   :  { %4256 = vrcp.f32 %v2444_v33  ;;  %3933 = vmatprep.subr.bf16.mxu0 %v7838_v46  ;;  %v2520_v21 = vadd.f32 %v6819_v40, %v6807_v11  ;;  %v8016_v14 = vpack.c.bf16 %v8014_v43, %v8015_v16 }
 0x372   :  { %2819 = vmatprep.mubr.f32.mxu0 %v2561_v47  ;;  %v1370_v7 = vmax.f32 %v6832_v10, %v6836_v1  ;;  %v8017_v47 = vld [vmem:[#allocation6_spill] sm:$0xff] }
 0x373   :  { %v4253_v29 = vpop.eup %4252  ;;  %2820 = vmatmul.mubr.f32.gmra.mrb[34].mxu0 %v2560_v41  ;;  %1368 = vmax.xlane.f32.xlu1 %v1367_v42  ;;  %v8018_v41 = vld [vmem:[#allocation7_spill] sm:$0xff] }
 0x374   :  { %3935 = vmatpush1.bf16.msra.mxu0 %v8016_v14  ;;  %2521 = vadd.xlane.f32.xlu0 %v2520_v21  ;;  %v2447_v44 = vpop.xlane.xlu0 %2446  ;;  %v2563_v37 = vmul.f32 %v4253_v29, %v6267_v26  ;;  %v2562_v48 = vmul.f32 %v4253_v29, %v6265_v60  ;;  %v8019_v42 = vpack.c.bf16 %v8017_v47, %v8018_v41  ;;  %v8020_v21 = vld [vmem:[#allocation8_spill] sm:$0xff]  ;;  %v8021_v29 = vld [vmem:[#allocation9_spill] sm:$0xff] }
 0x375   :  { %4258 = vrcp.f32 %v2447_v44  ;;  %3936 = vmatprep.subr.bf16.mxu0 %v7838_v46  ;;  %v8022_v43 = vpack.c.bf16 %v8020_v21, %v8021_v29  ;;  %v8027_v41 = vld [vmem:[#allocation13_spill] sm:$0xff] }
 0x376   :  { %2824 = vmatprep.mubr.f32.mxu0 %v2563_v37  ;;  %v8024_v37 = vld [vmem:[#allocation11_spill] sm:$0xff] }
 0x377   :  { %v4255_v33 = vpop.eup %4254  ;;  %2825 = vmatmul.mubr.f32.gmra.mrb[36].mxu0 %v2562_v48  ;;  %1371 = vmax.xlane.f32.xlu1 %v1370_v7 }
 0x378   :  { %3938 = vmatpush1.bf16.msra.mxu0 %v8019_v42  ;;  %v2450_v12 = vpop.xlane.xlu0 %2449  ;;  %v2565_v63 = vmul.f32 %v4255_v33, %v6275_v45  ;;  %v2564_v26 = vmul.f32 %v4255_v33, %v6273_v3  ;;  %v8023_v45 = vld [vmem:[#allocation10_spill] sm:$0xff] }
 0x379   :  { %4260 = vrcp.f32 %v2450_v12  ;;  %3939 = vmatprep.subr.bf16.mxu0 %v7838_v46  ;;  %v8025_v48 = vpack.c.bf16 %v8023_v45, %v8024_v37 }
 0x37a   :  { %2829 = vmatprep.mubr.f32.mxu0 %v2565_v63 }
 0x37b   :  { %v4257_v60 = vpop.eup %4256  ;;  %2830 = vmatmul.mubr.f32.gmra.mrb[38].mxu0 %v2564_v26 }
 0x37c   :  { %3941 = vmatpush1.bf16.msra.mxu0 %v8022_v43  ;;  %v2453_v16 = vpop.xlane.xlu1 %2452  ;;  %v2567_v14 = vmul.f32 %v4257_v60, %v6283_v56  ;;  %v2566_v44 = vmul.f32 %v4257_v60, %v6281_v27  ;;  %v8026_v56 = vld [vmem:[#allocation12_spill] sm:$0xff] }
 0x37d   :  { %4262 = vrcp.f32 %v2453_v16  ;;  %3942 = vmatprep.subr.bf16.mxu0 %v7838_v46  ;;  %v8028_v42 = vpack.c.bf16 %v8026_v56, %v8027_v41  ;;  %v8029_v16 = vld [vmem:[#allocation14_spill] sm:$0xff] }
 0x37e   :  { %2834 = vmatprep.mubr.f32.mxu0 %v2567_v14  ;;  %v8030_v14 = vld [vmem:[#allocation15_spill] sm:$0xff] }
 0x37f   :  { %v4259_v3 = vpop.eup %4258  ;;  %2835 = vmatmul.mubr.f32.gmra.mrb[40].mxu0 %v2566_v44  ;;  %v8031_v44 = vpack.c.bf16 %v8029_v16, %v8030_v14  ;;  %v8042_v14 = vld [vmem:[#allocation170_spill] sm:$0xff] }
 0x380   :  { %3944 = vmatpush1.bf16.msra.mxu0 %v8025_v48  ;;  %v2456_v7 = vpop.xlane.xlu1 %2455  ;;  %v2569_v33 = vmul.f32 %v4259_v3, %v6291_v30  ;;  %v2568_v47 = vmul.f32 %v4259_v3, %v6289_v28 }
 0x381   :  { %4264 = vrcp.f32 %v2456_v7  ;;  %3945 = vmatprep.subr.bf16.mxu0 %v7838_v46 }
 0x382   :  { %2839 = vmatprep.mubr.f32.mxu0 %v2569_v33  ;;  %v8032_v33 = vld [vmem:[#allocation16_spill] sm:$0xff] }
 0x383   :  { %v4261_v27 = vpop.eup %4260  ;;  %2840 = vmatmul.mubr.f32.gmra.mrb[42].mxu0 %v2568_v47  ;;  %v8033_v47 = vld [vmem:[#allocation17_spill] sm:$0xff] }
 0x384   :  { %3947 = vmatpush1.bf16.msra.mxu0 %v8028_v42  ;;  %v2237_v12 = vpop.xlane.xlu1 %2236  ;;  %v2459_v63 = vpop.xlane.xlu0 %2458  ;;  %v2571_v26 = vmul.f32 %v4261_v27, %v6299_v51  ;;  %v2570_v60 = vmul.f32 %v4261_v27, %v6297_v53  ;;  %v8034_v27 = vpack.c.bf16 %v8032_v33, %v8033_v47  ;;  %v8045_v33 = vld [vmem:[#allocation20_spill] sm:$0xff]  ;;  %v8046_v47 = vld [vmem:[#allocation21_spill] sm:$0xff] }
 0x385   :  { %v2300_v30 = vsub.f32 %v6329_v15, %v2237_v12  ;;  %v2301_v28 = vsub.f32 %v6333_v57, %v2237_v12  ;;  %4266 = vrcp.f32 %v2459_v63  ;;  %3948 = vmatprep.subr.bf16.mxu0 %v7838_v46  ;;  %v8037_v12 = vld [vmem:[#allocation175_spill] sm:$0xff] }
 0x386   :  { %2844 = vmatprep.mubr.f32.mxu0 %v2571_v26 }
 0x387   :  { %v4263_v21 = vpop.eup %4262  ;;  %v2426_v29 = vmul.f32 1.442695, %v2300_v30  ;;  %v2428_v43 = vmul.f32 1.442695, %v2301_v28  ;;  %2845 = vmatmul.mubr.f32.gmra.mrb[44].mxu0 %v2570_v60  ;;  %v8038_v28 = vld [vmem:[#allocation18_spill] sm:$0xff] }
 0x388   :  { %3950 = vmatpush1.bf16.msra.mxu0 %v8031_v44  ;;  %v1279_v3 = vpop.xlane.xlu1 %1278  ;;  %v2462_v51 = vpop.xlane.xlu0 %2461  ;;  %v2573_v53 = vmul.f32 %v4263_v21, %v6307_v54  ;;  %v2572_v15 = vmul.f32 %v4263_v21, %v6305_v61  ;;  %v8039_v21 = vld [vmem:[#allocation19_spill] sm:$0xff] }
 0x389   :  { %4268 = vpow2.f32 %v2426_v29  ;;  %v1373_v57 = vsub.f32 %v6345_v20, %v1279_v3  ;;  %v1374_v45 = vsub.f32 %v6349_v59, %v1279_v3  ;;  %3951 = vmatprep.subr.bf16.mxu0 %v7838_v46  ;;  %v8035_v20 = vld [vmem:[#allocation169_spill] sm:$0xff]  ;;  %v8036_v59 = vld [vmem:[#allocation174_spill] sm:$0xff]  ;;  %v8040_v29 = vpack.c.bf16 %v8038_v28, %v8039_v21 }
 0x38a   :  { %4270 = vpow2.f32 %v2428_v43  ;;  %2849 = vmatprep.mubr.f32.mxu0 %v2573_v53  ;;  %v8041_v43 = vld [vmem:[#allocation171_spill] sm:$0xff]  ;;  %v8043_v3 = vld [vmem:[#allocation94_spill] sm:$0xff] }
 0x38b   :  { %v4265_v37 = vpop.eup %4264  ;;  %v1437_v48 = vmul.f32 1.442695, %v1373_v57  ;;  %v1439_v7 = vmul.f32 1.442695, %v1374_v45  ;;  %4272 = vrcp.f32 %v2462_v51  ;;  %2850 = vmatmul.mubr.f32.gmra.mrb[46].mxu0 %v2572_v15  ;;  %v8044_v53 = vld [vmem:[#allocation34_spill] sm:$0xff] }
 0x38c   :  { %3953 = vmatpush1.bf16.msra.mxu0 %v8034_v27  ;;  %v1282_v54 = vpop.xlane.xlu1 %1281  ;;  %v2465_v61 = vpop.xlane.xlu0 %2464  ;;  %v2575_v56 = vmul.f32 %v4265_v37, %v6325_v35  ;;  %v2574_v41 = vmul.f32 %v4265_v37, %v8035_v20  ;;  %v8047_v27 = vpack.c.bf16 %v8045_v33, %v8046_v47  ;;  %v8057_v33 = vld [vmem:[#allocation121_spill] sm:$0xff] }
 0x38d   :  { %4274 = vpow2.f32 %v1437_v48  ;;  %v1375_v42 = vsub.f32 %v8036_v59, %v1282_v54  ;;  %v1376_v63 = vsub.f32 %v8037_v12, %v1282_v54  ;;  %3954 = vmatprep.subr.bf16.mxu0 %v7838_v46 }
 0x38e   :  { %4276 = vpow2.f32 %v1439_v7  ;;  %2854 = vmatprep.mubr.f32.mxu0 %v2575_v56  ;;  %v8048_v56 = vld [vmem:[#allocation124_spill] sm:$0xff] }
 0x38f   :  { %v4267_v26 = vpop.eup %4266  ;;  %v1441_v60 = vmul.f32 1.442695, %v1375_v42  ;;  %v1443_v30 = vmul.f32 1.442695, %v1376_v63  ;;  %4278 = vrcp.f32 %v2465_v61  ;;  %2855 = vmatmul.mubr.f32.gmra.mrb[48].mxu0 %v2574_v41  ;;  %v8049_v41 = vld [vmem:[#allocation125_spill] sm:$0xff] }
 0x390   :  { %3956 = vmatpush1.bf16.msra.mxu0 %v8040_v29  ;;  %v1285_v35 = vpop.xlane.xlu1 %1284  ;;  %v2577_v16 = vmul.f32 %v4267_v26, %v8041_v43  ;;  %v2576_v44 = vmul.f32 %v4267_v26, %v8042_v14  ;;  %v2468_v57 = vpop.xlane.xlu0 %2467  ;;  %v8050_v63 = vld [vmem:[#allocation173_spill] sm:$0xff]  ;;  %v8052_v43 = vld [vmem:[#allocation22_spill] sm:$0xff] }
 0x391   :  { %4280 = vpow2.f32 %v1441_v60  ;;  %v1377_v51 = vsub.f32 %v8043_v3, %v1285_v35  ;;  %v1378_v15 = vsub.f32 %v8044_v53, %v1285_v35  ;;  %3957 = vmatprep.subr.bf16.mxu0 %v7838_v46  ;;  %v8051_v60 = vld [vmem:[#allocation172_spill] sm:$0xff] }
 0x392   :  { %4282 = vpow2.f32 %v1443_v30  ;;  %2859 = vmatprep.mubr.f32.mxu0 %v2577_v16  ;;  %v8053_v16 = vld [vmem:[#allocation23_spill] sm:$0xff] }
 0x393   :  { %v6899_v45 = vpop.eup %4268  ;;  %v1445_v37 = vmul.f32 1.442695, %v1377_v51  ;;  %v1447_v48 = vmul.f32 1.442695, %v1378_v15  ;;  %4284 = vrcp.f32 %v2468_v57  ;;  %2860 = vmatmul.mubr.f32.gmra.mrb[50].mxu0 %v2576_v44  ;;  %v8054_v14 = vpack.c.bf16 %v8052_v43, %v8053_v16  ;;  %v8055_v51 = vld [vmem:[#allocation97_spill] sm:$0xff] }
 0x394   :  { %v6901_v7 = vpop.eup %4270  ;;  %3959 = vmatpush1.bf16.msra.mxu0 %v8047_v27  ;;  %v1288_v54 = vpop.xlane.xlu1 %1287  ;;  %v8056_v15 = vld [vmem:[#allocation37_spill] sm:$0xff]  ;;  %v8058_v27 = vld [vmem:[#allocation120_spill] sm:$0xff] }
 0x395   :  { %v4273_v61 = vpop.eup %4272  ;;  %4286 = vpow2.f32 %v1445_v37  ;;  %v1379_v20 = vsub.f32 %v8048_v56, %v1288_v54  ;;  %v1380_v59 = vsub.f32 %v8049_v41, %v1288_v54  ;;  %v2471_v42 = vpop.xlane.xlu0 %2470  ;;  %v2523_v12 = vadd.f32 %v6901_v7, %v6899_v45  ;;  %3960 = vmatprep.subr.bf16.mxu0 %v7838_v46 }
 0x396   :  { %4288 = vpow2.f32 %v1447_v48  ;;  %v2579_v26 = vmul.f32 %v4273_v61, %v8050_v63  ;;  %v2578_v30 = vmul.f32 %v4273_v61, %v8051_v60  ;;  %v8062_v60 = vld [vmem:[#allocation98_spill] sm:$0xff] }
 0x397   :  { %v6913_v28 = vpop.eup %4274  ;;  %v1449_v21 = vmul.f32 1.442695, %v1379_v20  ;;  %v1451_v29 = vmul.f32 1.442695, %v1380_v59  ;;  %4290 = vrcp.f32 %v2471_v42  ;;  %2524 = vadd.xlane.f32.xlu0 %v2523_v12  ;;  %v8059_v59 = vld [vmem:[#allocation24_spill] sm:$0xff]  ;;  %v8060_v42 = vld [vmem:[#allocation25_spill] sm:$0xff] }
 0x398   :  { %v6915_v35 = vpop.eup %4276  ;;  %2864 = vmatprep.mubr.f32.mxu0 %v2579_v26  ;;  %3962 = vmatpush1.bf16.msra.mxu0 %v8054_v14  ;;  %v1291_v44 = vpop.xlane.xlu1 %1290  ;;  %v8061_v12 = vpack.c.bf16 %v8059_v59, %v8060_v42  ;;  %v8064_v14 = vld [vmem:[#allocation35_spill] sm:$0xff]  ;;  %v8070_v59 = vld [vmem:[#allocation133_spill] sm:$0xff] }
 0x399   :  { %v4279_v3 = vpop.eup %4278  ;;  %4292 = vpow2.f32 %v1449_v21  ;;  %2865 = vmatmul.mubr.f32.gmra.mrb[52].mxu0 %v2578_v30  ;;  %v1381_v53 = vsub.f32 %v8055_v51, %v1291_v44  ;;  %v1382_v57 = vsub.f32 %v8056_v15, %v1291_v44  ;;  %v2474_v37 = vpop.xlane.xlu0 %2473  ;;  %v1565_v48 = vadd.f32 %v6915_v35, %v6913_v28  ;;  %3963 = vmatprep.subr.bf16.mxu0 %v7838_v46  ;;  %v8063_v21 = vld [vmem:[#allocation38_spill] sm:$0xff] }
 0x39a   :  { %4294 = vpow2.f32 %v1451_v29  ;;  %v2581_v47 = vmul.f32 %v4279_v3, %v8057_v33  ;;  %v2580_v54 = vmul.f32 %v4279_v3, %v8058_v27  ;;  %v8065_v3 = vld [vmem:[#allocation95_spill] sm:$0xff] }
 0x39b   :  { %v6927_v61 = vpop.eup %4280  ;;  %v1453_v56 = vmul.f32 1.442695, %v1381_v53  ;;  %v1455_v20 = vmul.f32 1.442695, %v1382_v57  ;;  %4296 = vrcp.f32 %v2474_v37  ;;  %1566 = vadd.xlane.f32.xlu0 %v1565_v48  ;;  %v8066_v48 = vld [vmem:[#allocation26_spill] sm:$0xff]  ;;  %v8067_v33 = vld [vmem:[#allocation27_spill] sm:$0xff] }
 0x39c   :  { %v6929_v41 = vpop.eup %4282  ;;  %2869 = vmatprep.mubr.f32.mxu0 %v2581_v47  ;;  %3965 = vmatpush1.bf16.msra.mxu0 %v8061_v12  ;;  %v1294_v63 = vpop.xlane.xlu1 %1293  ;;  %v8068_v47 = vpack.c.bf16 %v8066_v48, %v8067_v33 }
 0x39d   :  { %v4285_v26 = vpop.eup %4284  ;;  %4298 = vpow2.f32 %v1453_v56  ;;  %2870 = vmatmul.mubr.f32.gmra.mrb[54].mxu0 %v2580_v54  ;;  %v1383_v30 = vsub.f32 %v8062_v60, %v1294_v63  ;;  %v1384_v29 = vsub.f32 %v8063_v21, %v1294_v63  ;;  %v2477_v43 = vpop.xlane.xlu0 %2476  ;;  %v1568_v16 = vadd.f32 %v6929_v41, %v6927_v61  ;;  %3966 = vmatprep.subr.bf16.mxu0 %v7838_v46  ;;  %v8069_v56 = vld [vmem:[#allocation132_spill] sm:$0xff] }
 0x39e   :  { %4300 = vpow2.f32 %v1455_v20  ;;  %v2583_v44 = vmul.f32 %v4285_v26, %v8064_v14  ;;  %v2582_v51 = vmul.f32 %v4285_v26, %v8065_v3  ;;  %v8071_v26 = vld [vmem:[#allocation36_spill] sm:$0xff]  ;;  %v8074_v3 = vld [vmem:[#allocation29_spill] sm:$0xff] }
 0x39f   :  { %v6941_v53 = vpop.eup %4286  ;;  %v1457_v15 = vmul.f32 1.442695, %v1383_v30  ;;  %v1459_v57 = vmul.f32 1.442695, %v1384_v29  ;;  %4302 = vrcp.f32 %v2477_v43  ;;  %1569 = vadd.xlane.f32.xlu0 %v1568_v16  ;;  %v8072_v30 = vld [vmem:[#allocation96_spill] sm:$0xff] }
 0x3a0   :  { %v6943_v37 = vpop.eup %4288  ;;  %2874 = vmatprep.mubr.f32.mxu0 %v2583_v44  ;;  %3968 = vmatpush1.bf16.msra.mxu0 %v8068_v47  ;;  %v1297_v27 = vpop.xlane.xlu1 %1296  ;;  %v8073_v44 = vld [vmem:[#allocation28_spill] sm:$0xff]  ;;  %v8077_v47 = vld [vmem:[#allocation41_spill] sm:$0xff] }
 0x3a1   :  { %v4291_v54 = vpop.eup %4290  ;;  %4304 = vpow2.f32 %v1457_v15  ;;  %2875 = vmatmul.mubr.f32.gmra.mrb[56].mxu0 %v2582_v51  ;;  %v1385_v20 = vsub.f32 %v8069_v56, %v1297_v27  ;;  %v1386_v42 = vsub.f32 %v8070_v59, %v1297_v27  ;;  %v2480_v12 = vpop.xlane.xlu0 %2479  ;;  %v1571_v63 = vadd.f32 %v6943_v37, %v6941_v53  ;;  %3969 = vmatprep.subr.bf16.mxu0 %v7838_v46 }
 0x3a2   :  { %4306 = vpow2.f32 %v1459_v57  ;;  %v2585_v60 = vmul.f32 %v4291_v54, %v8071_v26  ;;  %v2584_v21 = vmul.f32 %v4291_v54, %v8072_v30  ;;  %v8075_v51 = vpack.c.bf16 %v8073_v44, %v8074_v3  ;;  %v8076_v57 = vld [vmem:[#allocation101_spill] sm:$0xff] }
 0x3a3   :  { %v6955_v29 = vpop.eup %4292  ;;  %v1461_v43 = vmul.f32 1.442695, %v1385_v20  ;;  %v1463_v16 = vmul.f32 1.442695, %v1386_v42  ;;  %4308 = vrcp.f32 %v2480_v12  ;;  %1572 = vadd.xlane.f32.xlu0 %v1571_v63  ;;  %v8078_v20 = vld [vmem:[#allocation129_spill] sm:$0xff]  ;;  %v8079_v42 = vld [vmem:[#allocation128_spill] sm:$0xff] }
 0x3a4   :  { %v6957_v14 = vpop.eup %4294  ;;  %2879 = vmatprep.mubr.f32.mxu0 %v2585_v60  ;;  %3971 = vmatpush1.bf16.msra.mxu0 %v8075_v51  ;;  %v1300_v15 = vpop.xlane.xlu1 %1299 }
 0x3a5   :  { %v4297_v48 = vpop.eup %4296  ;;  %4310 = vpow2.f32 %v1461_v43  ;;  %2880 = vmatmul.mubr.f32.gmra.mrb[58].mxu0 %v2584_v21  ;;  %v1387_v33 = vsub.f32 %v8076_v57, %v1300_v15  ;;  %v1388_v27 = vsub.f32 %v8077_v47, %v1300_v15  ;;  %v2483_v54 = vpop.xlane.xlu0 %2482  ;;  %v1574_v56 = vadd.f32 %v6957_v14, %v6955_v29  ;;  %3972 = vmatprep.subr.bf16.mxu0 %v7838_v46  ;;  %v8080_v21 = vld [vmem:[#allocation30_spill] sm:$0xff]  ;;  %v8081_v43 = vld [vmem:[#allocation31_spill] sm:$0xff] }
 0x3a6   :  { %4312 = vpow2.f32 %v1463_v16  ;;  %v2587_v59 = vmul.f32 %v4297_v48, %v8078_v20  ;;  %v2586_v12 = vmul.f32 %v4297_v48, %v8079_v42  ;;  %v8082_v44 = vpack.c.bf16 %v8080_v21, %v8081_v43  ;;  %v8083_v16 = vld [vmem:[#allocation103_spill] sm:$0xff]  ;;  %v8089_v21 = vld [vmem:[#allocation33_spill] sm:$0xff] }
 0x3a7   :  { %v6969_v63 = vpop.eup %4298  ;;  %v1465_v26 = vmul.f32 1.442695, %v1387_v33  ;;  %v1467_v60 = vmul.f32 1.442695, %v1388_v27  ;;  %4314 = vrcp.f32 %v2483_v54  ;;  %1575 = vadd.xlane.f32.xlu0 %v1574_v56  ;;  %v8084_v48 = vld [vmem:[#allocation43_spill] sm:$0xff] }
 0x3a8   :  { %v6971_v30 = vpop.eup %4300  ;;  %2884 = vmatprep.mubr.f32.mxu0 %v2587_v59  ;;  %3974 = vmatpush1.bf16.msra.mxu0 %v8082_v44  ;;  %v1303_v3 = vpop.xlane.xlu1 %1302  ;;  %v8085_v47 = vld [vmem:[#allocation39_spill] sm:$0xff] }
 0x3a9   :  { %v4303_v51 = vpop.eup %4302  ;;  %4316 = vpow2.f32 %v1465_v26  ;;  %2885 = vmatmul.mubr.f32.gmra.mrb[60].mxu0 %v2586_v12  ;;  %v1389_v15 = vsub.f32 %v8083_v16, %v1303_v3  ;;  %v1390_v57 = vsub.f32 %v8084_v48, %v1303_v3  ;;  %v1577_v33 = vadd.f32 %v6971_v30, %v6969_v63  ;;  %3975 = vmatprep.subr.bf16.mxu0 %v7838_v46  ;;  %v8086_v54 = vld [vmem:[#allocation99_spill] sm:$0xff]  ;;  %v8088_v26 = vld [vmem:[#allocation32_spill] sm:$0xff] }
 0x3aa   :  { %4318 = vpow2.f32 %v1467_v60  ;;  %v2589_v27 = vmul.f32 %v4303_v51, %v8085_v47  ;;  %v2588_v56 = vmul.f32 %v4303_v51, %v8086_v54  ;;  %v8090_v43 = vpack.c.bf16 %v8088_v26, %v8089_v21  ;;  %v8091_v46 = vld [vmem:[#allocation104_spill] sm:$0xff] }
 0x3ab   :  { %v6983_v20 = vpop.eup %4304  ;;  %v1469_v59 = vmul.f32 1.442695, %v1389_v15  ;;  %v1471_v42 = vmul.f32 1.442695, %v1390_v57  ;;  %1578 = vadd.xlane.f32.xlu0 %v1577_v33  ;;  %v8092_v16 = vld [vmem:[#allocation44_spill] sm:$0xff] }
 0x3ac   :  { %8087 = vst [vmem:[#allocation127_spill] sm:$0xff] %v6983_v20  ;;  %v6985_v12 = vpop.eup %4306  ;;  %2889 = vmatprep.mubr.f32.mxu0 %v2589_v27  ;;  %3977 = vmatpush1.bf16.msra.mxu0 %v8090_v43  ;;  %v1306_v44 = vpop.xlane.xlu1 %1305  ;;  %v8093_v48 = vld [vmem:[#allocation40_spill] sm:$0xff]  ;;  %v8095_v43 = vld [vmem:[#allocation105_spill] sm:$0xff] }
 0x3ad   :  { %v4309_v3 = vpop.eup %4308  ;;  %4320 = vpow2.f32 %v1469_v59  ;;  %2890 = vmatmul.mubr.f32.gmra.mrb[62].mxu0 %v2588_v56  ;;  %v1391_v60 = vsub.f32 %v8091_v46, %v1306_v44  ;;  %v1392_v51 = vsub.f32 %v8092_v16, %v1306_v44  ;;  %v1580_v15 = vadd.f32 %v6985_v12, %v6983_v20  ;;  %v8094_v33 = vld [vmem:[#allocation100_spill] sm:$0xff]  ;;  %v8096_v46 = vld [vmem:[#allocation45_spill] sm:$0xff] }
 0x3ae   :  { %4322 = vpow2.f32 %v1471_v42  ;;  %v2591_v57 = vmul.f32 %v4309_v3, %v8093_v48  ;;  %v2590_v47 = vmul.f32 %v4309_v3, %v8094_v33  ;;  %v8097_v3 = vld [vmem:[#allocation42_spill] sm:$0xff] }
 0x3af   :  { %v6996_v27 = vpop.eup %4310  ;;  %v1473_v54 = vmul.f32 1.442695, %v1391_v60  ;;  %v1475_v26 = vmul.f32 1.442695, %v1392_v51  ;;  %1581 = vadd.xlane.f32.xlu0 %v1580_v15  ;;  %v8098_v60 = vld [vmem:[#allocation102_spill] sm:$0xff] }
 0x3b0   :  { %v6998_v21 = vpop.eup %4312  ;;  %2894 = vmatprep.mubr.f32.mxu0 %v2591_v57  ;;  %v1309_v56 = vpop.xlane.xlu1 %1308 }
 0x3b1   :  { %v4315_v59 = vpop.eup %4314  ;;  %4324 = vpow2.f32 %v1473_v54  ;;  %2895 = vmatmul.mubr.f32.gmra.mrb[64].mxu0 %v2590_v47  ;;  %v1393_v44 = vsub.f32 %v8095_v43, %v1309_v56  ;;  %v1394_v42 = vsub.f32 %v8096_v46, %v1309_v56  ;;  %v1583_v16 = vadd.f32 %v6998_v21, %v6996_v27  ;;  %v8101_v54 = vld [vmem:[#allocation106_spill] sm:$0xff] }
 0x3b2   :  { %4326 = vpow2.f32 %v1475_v26  ;;  %v2593_v48 = vmul.f32 %v4315_v59, %v8097_v3  ;;  %v2592_v51 = vmul.f32 %v4315_v59, %v8098_v60  ;;  %v8102_v43 = vld [vmem:[#allocation46_spill] sm:$0xff] }
 0x3b3   :  { %v7006_v15 = vpop.eup %4316  ;;  %v1477_v33 = vmul.f32 1.442695, %v1393_v44  ;;  %v1479_v57 = vmul.f32 1.442695, %v1394_v42  ;;  %1584 = vadd.xlane.f32.xlu0 %v1583_v16 }
 0x3b4   :  { %8099 = vst [vmem:[#allocation63_spill] sm:$0xff] %v7006_v15  ;;  %v7008_v20 = vpop.eup %4318  ;;  %2899 = vmatprep.mubr.f32.mxu0 %v2593_v48  ;;  %v1312_v47 = vpop.xlane.xlu1 %1311  ;;  %v8105_v48 = vld [vmem:[#allocation107_spill] sm:$0xff] }
 0x3b5   :  { %8100 = vst [vmem:[#allocation147_spill] sm:$0xff] %v7008_v20  ;;  %4328 = vpow2.f32 %v1477_v33  ;;  %2900 = vmatmul.mubr.f32.gmra.mrb[66].mxu0 %v2592_v51  ;;  %v1395_v56 = vsub.f32 %v8101_v54, %v1312_v47  ;;  %v1396_v46 = vsub.f32 %v8102_v43, %v1312_v47  ;;  %v1586_v26 = vadd.f32 %v7008_v20, %v7006_v15  ;;  %v8106_v51 = vld [vmem:[#allocation47_spill] sm:$0xff] }
 0x3b6   :  { %4330 = vpow2.f32 %v1479_v57 }
 0x3b7   :  { %v7014_v59 = vpop.eup %4320  ;;  %v1481_v3 = vmul.f32 1.442695, %v1395_v56  ;;  %v1483_v44 = vmul.f32 1.442695, %v1396_v46  ;;  %1587 = vadd.xlane.f32.xlu0 %v1586_v26  ;;  %v8107_v26 = vld [vmem:[#allocation108_spill] sm:$0xff] }
 0x3b8   :  { %8103 = vst [vmem:[#allocation148_spill] sm:$0xff] %v7014_v59  ;;  %v7016_v42 = vpop.eup %4322  ;;  %v1315_v16 = vpop.xlane.xlu1 %1314 }
 0x3b9   :  { %8104 = vst [vmem:[#allocation130_spill] sm:$0xff] %v7016_v42  ;;  %4332 = vpow2.f32 %v1481_v3  ;;  %v1397_v60 = vsub.f32 %v8105_v48, %v1315_v16  ;;  %v1398_v33 = vsub.f32 %v8106_v51, %v1315_v16  ;;  %v1589_v47 = vadd.f32 %v7016_v42, %v7014_v59  ;;  %v8108_v3 = vld [vmem:[#allocation48_spill] sm:$0xff] }
 0x3ba   :  { %4334 = vpow2.f32 %v1483_v44 }
 0x3bb   :  { %v7022_v54 = vpop.eup %4324  ;;  %v1485_v57 = vmul.f32 1.442695, %v1397_v60  ;;  %v1487_v43 = vmul.f32 1.442695, %v1398_v33  ;;  %1590 = vadd.xlane.f32.xlu0 %v1589_v47  ;;  %v8111_v47 = vld [vmem:[#allocation109_spill] sm:$0xff] }
 0x3bc   :  { %v7024_v56 = vpop.eup %4326  ;;  %v1318_v46 = vpop.xlane.xlu1 %1317 }
 0x3bd   :  { %4336 = vpow2.f32 %v1485_v57  ;;  %v1399_v15 = vsub.f32 %v8107_v26, %v1318_v46  ;;  %v1400_v20 = vsub.f32 %v8108_v3, %v1318_v46  ;;  %v1592_v16 = vadd.f32 %v7024_v56, %v7022_v54  ;;  %v8112_v57 = vld [vmem:[#allocation49_spill] sm:$0xff] }
 0x3be   :  { %4338 = vpow2.f32 %v1487_v43 }
 0x3bf   :  { %v7030_v48 = vpop.eup %4328  ;;  %v1489_v44 = vmul.f32 1.442695, %v1399_v15  ;;  %v1491_v51 = vmul.f32 1.442695, %v1400_v20  ;;  %1593 = vadd.xlane.f32.xlu0 %v1592_v16 }
 0x3c0   :  { %8109 = vst [vmem:[#allocation64_spill] sm:$0xff] %v7030_v48  ;;  %v7032_v60 = vpop.eup %4330  ;;  %v1321_v33 = vpop.xlane.xlu1 %1320 }
 0x3c1   :  { %8110 = vst [vmem:[#allocation140_spill] sm:$0xff] %v7032_v60  ;;  %4340 = vpow2.f32 %v1489_v44  ;;  %v1401_v59 = vsub.f32 %v8111_v47, %v1321_v33  ;;  %v1402_v42 = vsub.f32 %v8112_v57, %v1321_v33  ;;  %v1595_v46 = vadd.f32 %v7032_v60, %v7030_v48 }
 0x3c2   :  { %4342 = vpow2.f32 %v1491_v51 }
 0x3c3   :  { %v7038_v26 = vpop.eup %4332  ;;  %v1493_v43 = vmul.f32 1.442695, %v1401_v59  ;;  %v1495_v3 = vmul.f32 1.442695, %v1402_v42  ;;  %1596 = vadd.xlane.f32.xlu1 %v1595_v46  ;;  %v8115_v46 = vld [vmem:[#allocation110_spill] sm:$0xff] }
 0x3c4   :  { %v7040_v15 = vpop.eup %4334  ;;  %v1324_v20 = vpop.xlane.xlu1 %1323 }
 0x3c5   :  { %4344 = vpow2.f32 %v1493_v43  ;;  %v1403_v16 = vsub.f32 %v6562_v34, %v1324_v20  ;;  %v1404_v44 = vsub.f32 %v6566_v24, %v1324_v20  ;;  %v1598_v33 = vadd.f32 %v7040_v15, %v7038_v26  ;;  %v8116_v43 = vld [vmem:[#allocation50_spill] sm:$0xff] }
 0x3c6   :  { %4346 = vpow2.f32 %v1495_v3 }
 0x3c7   :  { %v7046_v47 = vpop.eup %4336  ;;  %v1497_v51 = vmul.f32 1.442695, %v1403_v16  ;;  %v1499_v57 = vmul.f32 1.442695, %v1404_v44  ;;  %1599 = vadd.xlane.f32.xlu0 %v1598_v33 }
 0x3c8   :  { %8113 = vst [vmem:[#allocation131_spill] sm:$0xff] %v7046_v47  ;;  %v7048_v59 = vpop.eup %4338  ;;  %v1327_v42 = vpop.xlane.xlu1 %1326 }
 0x3c9   :  { %8114 = vst [vmem:[#allocation65_spill] sm:$0xff] %v7048_v59  ;;  %4348 = vpow2.f32 %v1497_v51  ;;  %v1405_v48 = vsub.f32 %v8115_v46, %v1327_v42  ;;  %v1406_v60 = vsub.f32 %v8116_v43, %v1327_v42  ;;  %v1601_v24 = vadd.f32 %v7048_v59, %v7046_v47 }
 0x3ca   :  { %4350 = vpow2.f32 %v1499_v57 }
 0x3cb   :  { %v7054_v34 = vpop.eup %4340  ;;  %v1501_v3 = vmul.f32 1.442695, %v1405_v48  ;;  %v1503_v20 = vmul.f32 1.442695, %v1406_v60  ;;  %1602 = vadd.xlane.f32.xlu1 %v1601_v24  ;;  %v8120_v24 = vld [vmem:[#allocation111_spill] sm:$0xff] }
 0x3cc   :  { %8117 = vst [vmem:[#allocation141_spill] sm:$0xff] %v7054_v34  ;;  %v7056_v16 = vpop.eup %4342  ;;  %v1330_v44 = vpop.xlane.xlu1 %1329 }
 0x3cd   :  { %4352 = vpow2.f32 %v1501_v3  ;;  %v1407_v33 = vsub.f32 %v6587_v9, %v1330_v44  ;;  %v1408_v51 = vsub.f32 %v6593_v4, %v1330_v44  ;;  %v1604_v42 = vadd.f32 %v7056_v16, %v7054_v34  ;;  %v8121_v3 = vld [vmem:[#allocation51_spill] sm:$0xff] }
 0x3ce   :  { %4354 = vpow2.f32 %v1503_v20 }
 0x3cf   :  { %v7062_v46 = vpop.eup %4344  ;;  %v1505_v57 = vmul.f32 1.442695, %v1407_v33  ;;  %v1507_v43 = vmul.f32 1.442695, %v1408_v51  ;;  %1605 = vadd.xlane.f32.xlu0 %v1604_v42 }
 0x3d0   :  { %8118 = vst [vmem:[#allocation142_spill] sm:$0xff] %v7062_v46  ;;  %v7064_v48 = vpop.eup %4346  ;;  %v1333_v60 = vpop.xlane.xlu1 %1332 }
 0x3d1   :  { %8119 = vst [vmem:[#allocation66_spill] sm:$0xff] %v7064_v48  ;;  %4356 = vpow2.f32 %v1505_v57  ;;  %v1409_v47 = vsub.f32 %v8120_v24, %v1333_v60  ;;  %v1410_v59 = vsub.f32 %v8121_v3, %v1333_v60  ;;  %v2486_v9 = vpop.xlane.xlu0 %2485  ;;  %v1607_v4 = vadd.f32 %v7064_v48, %v7062_v46 }
 0x3d2   :  { %4358 = vpow2.f32 %v1507_v43 }
 0x3d3   :  { %v7070_v44 = vpop.eup %4348  ;;  %v1509_v20 = vmul.f32 1.442695, %v1409_v47  ;;  %v1511_v34 = vmul.f32 1.442695, %v1410_v59  ;;  %4360 = vrcp.f32 %v2486_v9  ;;  %1608 = vadd.xlane.f32.xlu1 %v1607_v4  ;;  %v8126_v4 = vld [vmem:[#allocation114_spill] sm:$0xff] }
 0x3d4   :  { %8122 = vst [vmem:[#allocation143_spill] sm:$0xff] %v7070_v44  ;;  %v7072_v33 = vpop.eup %4350  ;;  %v1336_v51 = vpop.xlane.xlu1 %1335 }
 0x3d5   :  { %8123 = vst [vmem:[#allocation67_spill] sm:$0xff] %v7072_v33  ;;  %4362 = vpow2.f32 %v1509_v20  ;;  %v1411_v42 = vsub.f32 %v6615_v23, %v1336_v51  ;;  %v1412_v57 = vsub.f32 %v6622_v55, %v1336_v51  ;;  %v2489_v60 = vpop.xlane.xlu0 %2488  ;;  %v1610_v24 = vadd.f32 %v7072_v33, %v7070_v44  ;;  %v8127_v23 = vld [vmem:[#allocation54_spill] sm:$0xff]  ;;  %v8131_v33 = vld [vmem:[#allocation56_spill] sm:$0xff] }
 0x3d6   :  { %4364 = vpow2.f32 %v1511_v34 }
 0x3d7   :  { %v7078_v43 = vpop.eup %4352  ;;  %v1513_v3 = vmul.f32 1.442695, %v1411_v42  ;;  %v1515_v47 = vmul.f32 1.442695, %v1412_v57  ;;  %4366 = vrcp.f32 %v2489_v60  ;;  %1611 = vadd.xlane.f32.xlu0 %v1610_v24 }
 0x3d8   :  { %8124 = vst [vmem:[#allocation134_spill] sm:$0xff] %v7078_v43  ;;  %v7080_v59 = vpop.eup %4354  ;;  %v1339_v9 = vpop.xlane.xlu1 %1338 }
 0x3d9   :  { %8125 = vst [vmem:[#allocation68_spill] sm:$0xff] %v7080_v59  ;;  %4368 = vpow2.f32 %v1513_v3  ;;  %v1413_v20 = vsub.f32 %v8126_v4, %v1339_v9  ;;  %v1414_v46 = vsub.f32 %v8127_v23, %v1339_v9  ;;  %v2492_v55 = vpop.xlane.xlu0 %2491  ;;  %v1613_v51 = vadd.f32 %v7080_v59, %v7078_v43  ;;  %v8130_v3 = vld [vmem:[#allocation116_spill] sm:$0xff] }
 0x3da   :  { %4370 = vpow2.f32 %v1515_v47  ;;  %v8132_v47 = vld [vmem:[#allocation52_spill] sm:$0xff] }
 0x3db   :  { %v7086_v34 = vpop.eup %4356  ;;  %v1517_v44 = vmul.f32 1.442695, %v1413_v20  ;;  %v1519_v42 = vmul.f32 1.442695, %v1414_v46  ;;  %4372 = vrcp.f32 %v2492_v55  ;;  %1614 = vadd.xlane.f32.xlu1 %v1613_v51  ;;  %v8133_v20 = vld [vmem:[#allocation112_spill] sm:$0xff] }
 0x3dc   :  { %8128 = vst [vmem:[#allocation135_spill] sm:$0xff] %v7086_v34  ;;  %v7088_v57 = vpop.eup %4358  ;;  %v1342_v60 = vpop.xlane.xlu1 %1341 }
 0x3dd   :  { %8129 = vst [vmem:[#allocation69_spill] sm:$0xff] %v7088_v57  ;;  %v4361_v24 = vpop.eup %4360  ;;  %4374 = vpow2.f32 %v1517_v44  ;;  %v1415_v4 = vsub.f32 %v8130_v3, %v1342_v60  ;;  %v1416_v9 = vsub.f32 %v8131_v33, %v1342_v60  ;;  %v2495_v23 = vpop.xlane.xlu0 %2494  ;;  %v1616_v43 = vadd.f32 %v7088_v57, %v7086_v34  ;;  %v8134_v34 = vld [vmem:[#allocation118_spill] sm:$0xff] }
 0x3de   :  { %4376 = vpow2.f32 %v1519_v42  ;;  %v2595_v59 = vmul.f32 %v4361_v24, %v8132_v47  ;;  %v2594_v46 = vmul.f32 %v4361_v24, %v8133_v20 }
 0x3df   :  { %v7096_v55 = vpop.eup %4362  ;;  %v1521_v51 = vmul.f32 1.442695, %v1415_v4  ;;  %v1523_v48 = vmul.f32 1.442695, %v1416_v9  ;;  %4378 = vrcp.f32 %v2495_v23  ;;  %1617 = vadd.xlane.f32.xlu0 %v1616_v43  ;;  %v8135_v4 = vld [vmem:[#allocation53_spill] sm:$0xff] }
 0x3e0   :  { %v7098_v44 = vpop.eup %4364  ;;  %2904 = vmatprep.mubr.f32.mxu0 %v2595_v59  ;;  %v1345_v3 = vpop.xlane.xlu1 %1344  ;;  %v8136_v23 = vld [vmem:[#allocation113_spill] sm:$0xff] }
 0x3e1   :  { %v4367_v33 = vpop.eup %4366  ;;  %4380 = vpow2.f32 %v1521_v51  ;;  %v1417_v60 = vsub.f32 %v6669_v62, %v1345_v3  ;;  %v1418_v42 = vsub.f32 %v8134_v34, %v1345_v3  ;;  %2905 = vmatmul.mubr.f32.gmra.mrb[68].mxu0 %v2594_v46  ;;  %v2498_v47 = vpop.xlane.xlu0 %2497  ;;  %v1619_v24 = vadd.f32 %v7098_v44, %v7096_v55 }
 0x3e2   :  { %4382 = vpow2.f32 %v1523_v48  ;;  %v2597_v9 = vmul.f32 %v4367_v33, %v8135_v4  ;;  %v2596_v43 = vmul.f32 %v4367_v33, %v8136_v23 }
 0x3e3   :  { %v7106_v20 = vpop.eup %4368  ;;  %v1525_v59 = vmul.f32 1.442695, %v1417_v60  ;;  %v1527_v57 = vmul.f32 1.442695, %v1418_v42  ;;  %4384 = vrcp.f32 %v2498_v47  ;;  %1620 = vadd.xlane.f32.xlu1 %v1619_v24  ;;  %v8137_v60 = vld [vmem:[#allocation55_spill] sm:$0xff] }
 0x3e4   :  { %v7108_v51 = vpop.eup %4370  ;;  %2909 = vmatprep.mubr.f32.mxu0 %v2597_v9  ;;  %v1348_v62 = vpop.xlane.xlu1 %1347  ;;  %v8138_v47 = vld [vmem:[#allocation115_spill] sm:$0xff] }
 0x3e5   :  { %v4373_v34 = vpop.eup %4372  ;;  %4386 = vpow2.f32 %v1525_v59  ;;  %v1419_v46 = vsub.f32 %v6689_v18, %v1348_v62  ;;  %v1420_v48 = vsub.f32 %v6694_v13, %v1348_v62  ;;  %2910 = vmatmul.mubr.f32.gmra.mrb[70].mxu0 %v2596_v43  ;;  %v2501_v3 = vpop.xlane.xlu0 %2500  ;;  %v1622_v33 = vadd.f32 %v7108_v51, %v7106_v20 }
 0x3e6   :  { %4388 = vpow2.f32 %v1527_v57  ;;  %v2599_v42 = vmul.f32 %v4373_v34, %v8137_v60  ;;  %v2598_v24 = vmul.f32 %v4373_v34, %v8138_v47 }
 0x3e7   :  { %v7116_v4 = vpop.eup %4374  ;;  %v1529_v9 = vmul.f32 1.442695, %v1419_v46  ;;  %v1531_v23 = vmul.f32 1.442695, %v1420_v48  ;;  %4390 = vrcp.f32 %v2501_v3  ;;  %1623 = vadd.xlane.f32.xlu0 %v1622_v33  ;;  %v8139_v46 = vld [vmem:[#allocation57_spill] sm:$0xff] }
 0x3e8   :  { %v7118_v59 = vpop.eup %4376  ;;  %2914 = vmatprep.mubr.f32.mxu0 %v2599_v42  ;;  %v1351_v18 = vpop.xlane.xlu1 %1350  ;;  %v8140_v3 = vld [vmem:[#allocation117_spill] sm:$0xff] }
 0x3e9   :  { %v4379_v13 = vpop.eup %4378  ;;  %4392 = vpow2.f32 %v1529_v9  ;;  %v1421_v43 = vsub.f32 %v6705_v38, %v1351_v18  ;;  %v1422_v57 = vsub.f32 %v6709_v50, %v1351_v18  ;;  %2915 = vmatmul.mubr.f32.gmra.mrb[72].mxu0 %v2598_v24  ;;  %v2504_v62 = vpop.xlane.xlu0 %2503  ;;  %v1625_v34 = vadd.f32 %v7118_v59, %v7116_v4 }
 0x3ea   :  { %4394 = vpow2.f32 %v1531_v23  ;;  %v2601_v48 = vmul.f32 %v4379_v13, %v8139_v46  ;;  %v2600_v33 = vmul.f32 %v4379_v13, %v8140_v3 }
 0x3eb   :  { %v7126_v60 = vpop.eup %4380  ;;  %v1533_v42 = vmul.f32 1.442695, %v1421_v43  ;;  %v1535_v47 = vmul.f32 1.442695, %v1422_v57  ;;  %4396 = vrcp.f32 %v2504_v62  ;;  %1626 = vadd.xlane.f32.xlu1 %v1625_v34  ;;  %v8141_v57 = vld [vmem:[#allocation58_spill] sm:$0xff] }
 0x3ec   :  { %v7128_v9 = vpop.eup %4382  ;;  %2919 = vmatprep.mubr.f32.mxu0 %v2601_v48  ;;  %v1354_v38 = vpop.xlane.xlu1 %1353 }
 0x3ed   :  { %v4385_v50 = vpop.eup %4384  ;;  %4398 = vpow2.f32 %v1533_v42  ;;  %v1423_v24 = vsub.f32 %v6727_v49, %v1354_v38  ;;  %v1424_v23 = vsub.f32 %v6731_v22, %v1354_v38  ;;  %2920 = vmatmul.mubr.f32.gmra.mrb[74].mxu0 %v2600_v33  ;;  %v2507_v18 = vpop.xlane.xlu0 %2506  ;;  %v1628_v13 = vadd.f32 %v7128_v9, %v7126_v60 }
 0x3ee   :  { %4400 = vpow2.f32 %v1535_v47  ;;  %v2603_v43 = vmul.f32 %v4385_v50, %v6683_v25  ;;  %v2602_v62 = vmul.f32 %v4385_v50, %v8141_v57  ;;  %v8142_v50 = vld [vmem:[#allocation119_spill] sm:$0xff] }
 0x3ef   :  { %v7136_v34 = vpop.eup %4386  ;;  %v1537_v46 = vmul.f32 1.442695, %v1423_v24  ;;  %v1539_v48 = vmul.f32 1.442695, %v1424_v23  ;;  %4402 = vrcp.f32 %v2507_v18  ;;  %1629 = vadd.xlane.f32.xlu0 %v1628_v13 }
 0x3f0   :  { %v7138_v3 = vpop.eup %4388  ;;  %2924 = vmatprep.mubr.f32.mxu0 %v2603_v43  ;;  %v1357_v49 = vpop.xlane.xlu1 %1356 }
 0x3f1   :  { %v4391_v22 = vpop.eup %4390  ;;  %4404 = vpow2.f32 %v1537_v46  ;;  %v1425_v33 = vsub.f32 %v6745_v2, %v1357_v49  ;;  %v1426_v42 = vsub.f32 %v6749_v19, %v1357_v49  ;;  %2925 = vmatmul.mubr.f32.gmra.mrb[76].mxu0 %v2602_v62  ;;  %v2510_v25 = vpop.xlane.xlu0 %2509  ;;  %v1631_v47 = vadd.f32 %v7138_v3, %v7136_v34 }
 0x3f2   :  { %4406 = vpow2.f32 %v1539_v48  ;;  %v2605_v38 = vmul.f32 %v4391_v22, %v6701_v31  ;;  %v2604_v24 = vmul.f32 %v4391_v22, %v8142_v50  ;;  %v8143_v48 = vld [vmem:[#allocation136_spill] sm:$0xff]  ;;  %v8144_v22 = vld [vmem:[#allocation59_spill] sm:$0xff] }
 0x3f3   :  { %v7146_v23 = vpop.eup %4392  ;;  %v1541_v18 = vmul.f32 1.442695, %v1425_v33  ;;  %v1543_v13 = vmul.f32 1.442695, %v1426_v42  ;;  %4408 = vrcp.f32 %v2510_v25  ;;  %1632 = vadd.xlane.f32.xlu1 %v1631_v47 }
 0x3f4   :  { %v7148_v43 = vpop.eup %4394  ;;  %2929 = vmatprep.mubr.f32.mxu0 %v2605_v38  ;;  %v1360_v19 = vpop.xlane.xlu1 %1359 }
 0x3f5   :  { %v4397_v2 = vpop.eup %4396  ;;  %4410 = vpow2.f32 %v1541_v18  ;;  %v1427_v57 = vsub.f32 %v6761_v32, %v1360_v19  ;;  %v1428_v62 = vsub.f32 %v6765_v58, %v1360_v19  ;;  %2930 = vmatmul.mubr.f32.gmra.mrb[78].mxu0 %v2604_v24  ;;  %v2513_v31 = vpop.xlane.xlu0 %2512  ;;  %v1634_v46 = vadd.f32 %v7148_v43, %v7146_v23  ;;  %v8145_v19 = vld [vmem:[#allocation60_spill] sm:$0xff] }
 0x3f6   :  { %4412 = vpow2.f32 %v1543_v13  ;;  %v2607_v49 = vmul.f32 %v4397_v2, %v8143_v48  ;;  %v2606_v33 = vmul.f32 %v4397_v2, %v8144_v22 }
 0x3f7   :  { %v7156_v42 = vpop.eup %4398  ;;  %v1545_v25 = vmul.f32 1.442695, %v1427_v57  ;;  %v1547_v47 = vmul.f32 1.442695, %v1428_v62  ;;  %4414 = vrcp.f32 %v2513_v31  ;;  %1635 = vadd.xlane.f32.xlu0 %v1634_v46  ;;  %v8146_v57 = vld [vmem:[#allocation122_spill] sm:$0xff] }
 0x3f8   :  { %v7158_v38 = vpop.eup %4400  ;;  %2934 = vmatprep.mubr.f32.mxu0 %v2607_v49  ;;  %v1363_v32 = vpop.xlane.xlu1 %1362 }
 0x3f9   :  { %v4403_v58 = vpop.eup %4402  ;;  %4416 = vpow2.f32 %v1545_v25  ;;  %v1429_v50 = vsub.f32 %v6777_v8, %v1363_v32  ;;  %v1430_v24 = vsub.f32 %v6781_v36, %v1363_v32  ;;  %2935 = vmatmul.mubr.f32.gmra.mrb[80].mxu0 %v2606_v33  ;;  %v2516_v18 = vpop.xlane.xlu0 %2515  ;;  %v1637_v13 = vadd.f32 %v7158_v38, %v7156_v42  ;;  %v8147_v32 = vld [vmem:[#allocation61_spill] sm:$0xff] }
 0x3fa   :  { %4418 = vpow2.f32 %v1547_v47  ;;  %v2609_v2 = vmul.f32 %v4403_v58, %v8145_v19  ;;  %v2608_v62 = vmul.f32 %v4403_v58, %v8146_v57 }
 0x3fb   :  { %v7166_v31 = vpop.eup %4404  ;;  %v1549_v46 = vmul.f32 1.442695, %v1429_v50  ;;  %v1551_v48 = vmul.f32 1.442695, %v1430_v24  ;;  %4420 = vrcp.f32 %v2516_v18  ;;  %1638 = vadd.xlane.f32.xlu1 %v1637_v13  ;;  %v8148_v50 = vld [vmem:[#allocation123_spill] sm:$0xff] }
 0x3fc   :  { %v7168_v49 = vpop.eup %4406  ;;  %2939 = vmatprep.mubr.f32.mxu0 %v2609_v2  ;;  %v1366_v8 = vpop.xlane.xlu1 %1365 }
 0x3fd   :  { %v4409_v36 = vpop.eup %4408  ;;  %4422 = vpow2.f32 %v1549_v46  ;;  %v1431_v22 = vsub.f32 %v6795_v6, %v1366_v8  ;;  %v1432_v33 = vsub.f32 %v6799_v17, %v1366_v8  ;;  %2940 = vmatmul.mubr.f32.gmra.mrb[82].mxu0 %v2608_v62  ;;  %v2519_v25 = vpop.xlane.xlu0 %2518  ;;  %v1640_v47 = vadd.f32 %v7168_v49, %v7166_v31  ;;  %v8149_v8 = vld [vmem:[#allocation144_spill] sm:$0xff] }
 0x3fe   :  { %4424 = vpow2.f32 %v1551_v48  ;;  %v2611_v58 = vmul.f32 %v4409_v36, %v8147_v32  ;;  %v2610_v24 = vmul.f32 %v4409_v36, %v8148_v50 }
 0x3ff   :  { %v7176_v18 = vpop.eup %4410  ;;  %v1553_v13 = vmul.f32 1.442695, %v1431_v22  ;;  %v1555_v19 = vmul.f32 1.442695, %v1432_v33  ;;  %4426 = vrcp.f32 %v2519_v25  ;;  %1641 = vadd.xlane.f32.xlu0 %v1640_v47  ;;  %v8150_v22 = vld [vmem:[#allocation137_spill] sm:$0xff] }
 0x400   :  { %v7178_v2 = vpop.eup %4412  ;;  %2944 = vmatprep.mubr.f32.mxu0 %v2611_v58  ;;  %v1369_v17 = vpop.xlane.xlu1 %1368 }
 0x401   :  { %v4415_v6 = vpop.eup %4414  ;;  %4428 = vpow2.f32 %v1553_v13  ;;  %2945 = vmatmul.mubr.f32.gmra.mrb[84].mxu0 %v2610_v24  ;;  %v1433_v57 = vsub.f32 %v6813_v0, %v1369_v17  ;;  %v1434_v62 = vsub.f32 %v6817_v52, %v1369_v17  ;;  %v2522_v46 = vpop.xlane.xlu0 %2521  ;;  %v1643_v48 = vadd.f32 %v7178_v2, %v7176_v18 }
 0x402   :  { %4430 = vpow2.f32 %v1555_v19  ;;  %v2613_v36 = vmul.f32 %v4415_v6, %v8149_v8  ;;  %v2612_v33 = vmul.f32 %v4415_v6, %v8150_v22  ;;  %v8151_v19 = vld [vmem:[#allocation62_spill] sm:$0xff] }
 0x403   :  { %v7186_v25 = vpop.eup %4416  ;;  %v1557_v47 = vmul.f32 1.442695, %v1433_v57  ;;  %v1559_v32 = vmul.f32 1.442695, %v1434_v62  ;;  %4432 = vrcp.f32 %v2522_v46  ;;  %1644 = vadd.xlane.f32.xlu1 %v1643_v48  ;;  %v8152_v6 = vld [vmem:[#allocation126_spill] sm:$0xff] }
 0x404   :  { %v7188_v58 = vpop.eup %4418  ;;  %2949 = vmatprep.mubr.f32.mxu0 %v2613_v36  ;;  %v1372_v0 = vpop.xlane.xlu1 %1371 }
 0x405   :  { %v4421_v52 = vpop.eup %4420  ;;  %4434 = vpow2.f32 %v1557_v47  ;;  %2950 = vmatmul.mubr.f32.gmra.mrb[86].mxu0 %v2612_v33  ;;  %v1435_v50 = vsub.f32 %v6832_v10, %v1372_v0  ;;  %v1436_v24 = vsub.f32 %v6836_v1, %v1372_v0  ;;  %v1646_v13 = vadd.f32 %v7188_v58, %v7186_v25 }
 0x406   :  { %4436 = vpow2.f32 %v1559_v32  ;;  %v2615_v17 = vmul.f32 %v4421_v52, %v8151_v19  ;;  %v2614_v57 = vmul.f32 %v4421_v52, %v8152_v6 }
 0x407   :  { %v7196_v62 = vpop.eup %4422  ;;  %v1561_v46 = vmul.f32 1.442695, %v1435_v50  ;;  %v1563_v48 = vmul.f32 1.442695, %v1436_v24  ;;  %1647 = vadd.xlane.f32.xlu0 %v1646_v13 }
 0x408   :  { %v7198_v8 = vpop.eup %4424  ;;  %2954 = vmatprep.mubr.f32.mxu0 %v2615_v17 }
 0x409   :  { %v4427_v36 = vpop.eup %4426  ;;  %4438 = vpow2.f32 %v1561_v46  ;;  %2955 = vmatmul.mubr.f32.gmra.mrb[88].mxu0 %v2614_v57  ;;  %v1649_v10 = vadd.f32 %v7198_v8, %v7196_v62 }
 0x40a   :  { %4440 = vpow2.f32 %v1563_v48  ;;  %v2617_v1 = vmul.f32 %v4427_v36, %v6801_v5  ;;  %v2616_v22 = vmul.f32 %v4427_v36, %v6789_v39 }
 0x40b   :  { %v7204_v33 = vpop.eup %4428  ;;  %1650 = vadd.xlane.f32.xlu1 %v1649_v10 }
 0x40c   :  { %v7206_v47 = vpop.eup %4430  ;;  %2959 = vmatprep.mubr.f32.mxu0 %v2617_v1 }
 0x40d   :  { %v4433_v32 = vpop.eup %4432  ;;  %2960 = vmatmul.mubr.f32.gmra.mrb[90].mxu0 %v2616_v22  ;;  %v1652_v0 = vadd.f32 %v7206_v47, %v7204_v33 }
 0x40e   :  { %v2619_v52 = vmul.f32 %v4433_v32, %v6819_v40  ;;  %v2618_v50 = vmul.f32 %v4433_v32, %v6807_v11 }
 0x40f   :  { %v7212_v24 = vpop.eup %4434  ;;  %1653 = vadd.xlane.f32.xlu0 %v1652_v0 }
 0x410   :  { %v7214_v5 = vpop.eup %4436  ;;  %2964 = vmatprep.mubr.f32.mxu0 %v2619_v52 }
 0x411   :  { %2965 = vmatmul.mubr.f32.gmra.mrb[92].mxu0 %v2618_v50  ;;  %v1655_v39 = vadd.f32 %v7214_v5, %v7212_v24 }
 0x413   :  { %v7218_v13 = vpop.eup %4438  ;;  %1656 = vadd.xlane.f32.xlu1 %v1655_v39 }
 0x414   :  { %v7220_v19 = vpop.eup %4440 }
 0x415   :  { %v1658_v40 = vadd.f32 %v7220_v19, %v7218_v13 }
 0x417   :  { %1659 = vadd.xlane.f32.xlu0 %v1658_v40 }
 0x424   :  { %v2525_v11 = vpop.xlane.xlu0 %2524 }
 0x425   :  { %4442 = vrcp.f32 %v2525_v11 }
 0x428   :  { %v1567_v17 = vpop.xlane.xlu0 %1566 }
 0x429   :  { %4444 = vrcp.f32 %v1567_v17 }
 0x42c   :  { %v1570_v6 = vpop.xlane.xlu0 %1569 }
 0x42d   :  { %4446 = vrcp.f32 %v1570_v6 }
 0x42f   :  { %v4443_v57 = vpop.eup %4442 }
 0x430   :  { %v1573_v46 = vpop.xlane.xlu0 %1572  ;;  %v2621_v48 = vmul.f32 %v4443_v57, %v6901_v7  ;;  %v2620_v36 = vmul.f32 %v4443_v57, %v6899_v45 }
 0x431   :  { %4448 = vrcp.f32 %v1573_v46 }
 0x432   :  { %2969 = vmatprep.mubr.f32.mxu0 %v2621_v48 }
 0x433   :  { %v4445_v10 = vpop.eup %4444  ;;  %2970 = vmatmul.mubr.f32.gmra.mrb[94].mxu0 %v2620_v36  ;;  %v8153_v36 = vld [vmem:[#allocation127_spill] sm:$0xff] }
 0x434   :  { %v1693_v1 = vmul.f32 %v4445_v10, %v6913_v28  ;;  %v1576_v22 = vpop.xlane.xlu0 %1575  ;;  %v1694_v32 = vmul.f32 %v4445_v10, %v6915_v35 }
 0x435   :  { %4450 = vrcp.f32 %v1576_v22 }
 0x436   :  { %3039 = vmatprep.mubr.f32.mxu0 %v1694_v32  ;;  %v8154_v32 = vld [vmem:[#allocation147_spill] sm:$0xff] }
 0x437   :  { %v4447_v0 = vpop.eup %4446  ;;  %3040 = vmatmul.mubr.f32.vlgmr.msra.gmra.mrb[32].mxu0 %v1693_v1 }
 0x438   :  { %v1579_v52 = vpop.xlane.xlu0 %1578  ;;  %v1696_v50 = vmul.f32 %v4447_v0, %v6929_v41  ;;  %v1695_v7 = vmul.f32 %v4447_v0, %v6927_v61 }
 0x439   :  { %4452 = vrcp.f32 %v1579_v52  ;;  %v8155_v52 = vld [vmem:[#allocation63_spill] sm:$0xff] }
 0x43a   :  { %3044 = vmatprep.mubr.f32.mxu0 %v1696_v50 }
 0x43b   :  { %v4449_v45 = vpop.eup %4448  ;;  %3045 = vmatmul.mubr.f32.gmra.mrb[34].mxu0 %v1695_v7 }
 0x43c   :  { %v1582_v39 = vpop.xlane.xlu0 %1581  ;;  %v1698_v40 = vmul.f32 %v4449_v45, %v6943_v37  ;;  %v1697_v28 = vmul.f32 %v4449_v45, %v6941_v53  ;;  %v8156_v45 = vld [vmem:[#allocation130_spill] sm:$0xff] }
 0x43d   :  { %4454 = vrcp.f32 %v1582_v39 }
 0x43e   :  { %3049 = vmatprep.mubr.f32.mxu0 %v1698_v40  ;;  %v8157_v40 = vld [vmem:[#allocation148_spill] sm:$0xff] }
 0x43f   :  { %v4451_v35 = vpop.eup %4450  ;;  %3050 = vmatmul.mubr.f32.gmra.mrb[36].mxu0 %v1697_v28 }
 0x440   :  { %v1585_v11 = vpop.xlane.xlu0 %1584  ;;  %v1700_v17 = vmul.f32 %v4451_v35, %v6957_v14  ;;  %v1699_v41 = vmul.f32 %v4451_v35, %v6955_v29 }
 0x441   :  { %4456 = vrcp.f32 %v1585_v11 }
 0x442   :  { %3054 = vmatprep.mubr.f32.mxu0 %v1700_v17 }
 0x443   :  { %v4453_v61 = vpop.eup %4452  ;;  %3055 = vmatmul.mubr.f32.gmra.mrb[38].mxu0 %v1699_v41 }
 0x444   :  { %v1588_v6 = vpop.xlane.xlu0 %1587  ;;  %v1702_v57 = vmul.f32 %v4453_v61, %v6971_v30  ;;  %v1701_v37 = vmul.f32 %v4453_v61, %v6969_v63  ;;  %v8158_v61 = vld [vmem:[#allocation140_spill] sm:$0xff] }
 0x445   :  { %4458 = vrcp.f32 %v1588_v6 }
 0x446   :  { %3059 = vmatprep.mubr.f32.mxu0 %v1702_v57  ;;  %v8159_v57 = vld [vmem:[#allocation64_spill] sm:$0xff] }
 0x447   :  { %v4455_v53 = vpop.eup %4454  ;;  %3060 = vmatmul.mubr.f32.gmra.mrb[40].mxu0 %v1701_v37 }
 0x448   :  { %v1591_v46 = vpop.xlane.xlu0 %1590  ;;  %v1704_v48 = vmul.f32 %v4455_v53, %v6985_v12  ;;  %v1703_v14 = vmul.f32 %v4455_v53, %v8153_v36 }
 0x449   :  { %4460 = vrcp.f32 %v1591_v46 }
 0x44a   :  { %3064 = vmatprep.mubr.f32.mxu0 %v1704_v48 }
 0x44b   :  { %v4457_v29 = vpop.eup %4456  ;;  %3065 = vmatmul.mubr.f32.gmra.mrb[42].mxu0 %v1703_v14  ;;  %v8160_v14 = vld [vmem:[#allocation65_spill] sm:$0xff] }
 0x44c   :  { %v1594_v10 = vpop.xlane.xlu0 %1593  ;;  %v1706_v1 = vmul.f32 %v4457_v29, %v6998_v21  ;;  %v1705_v30 = vmul.f32 %v4457_v29, %v6996_v27 }
 0x44d   :  { %4462 = vrcp.f32 %v1594_v10  ;;  %v8161_v10 = vld [vmem:[#allocation131_spill] sm:$0xff] }
 0x44e   :  { %3069 = vmatprep.mubr.f32.mxu0 %v1706_v1 }
 0x44f   :  { %v4459_v63 = vpop.eup %4458  ;;  %3070 = vmatmul.mubr.f32.gmra.mrb[44].mxu0 %v1705_v30 }
 0x450   :  { %v1597_v22 = vpop.xlane.xlu1 %1596  ;;  %v1708_v0 = vmul.f32 %v4459_v63, %v8154_v32  ;;  %v1707_v12 = vmul.f32 %v4459_v63, %v8155_v52  ;;  %v8162_v32 = vld [vmem:[#allocation141_spill] sm:$0xff]  ;;  %v8163_v52 = vld [vmem:[#allocation66_spill] sm:$0xff] }
 0x451   :  { %4464 = vrcp.f32 %v1597_v22 }
 0x452   :  { %3074 = vmatprep.mubr.f32.mxu0 %v1708_v0 }
 0x453   :  { %v4461_v50 = vpop.eup %4460  ;;  %3075 = vmatmul.mubr.f32.gmra.mrb[46].mxu0 %v1707_v12 }
 0x454   :  { %v1600_v7 = vpop.xlane.xlu0 %1599  ;;  %v1710_v39 = vmul.f32 %v4461_v50, %v8156_v45  ;;  %v1709_v21 = vmul.f32 %v4461_v50, %v8157_v40  ;;  %v8164_v50 = vld [vmem:[#allocation142_spill] sm:$0xff]  ;;  %v8165_v40 = vld [vmem:[#allocation67_spill] sm:$0xff] }
 0x455   :  { %4466 = vrcp.f32 %v1600_v7 }
 0x456   :  { %3079 = vmatprep.mubr.f32.mxu0 %v1710_v39 }
 0x457   :  { %v4463_v27 = vpop.eup %4462  ;;  %3080 = vmatmul.mubr.f32.gmra.mrb[48].mxu0 %v1709_v21 }
 0x458   :  { %v1603_v28 = vpop.xlane.xlu1 %1602  ;;  %v1712_v35 = vmul.f32 %v4463_v27, %v7024_v56  ;;  %v1711_v11 = vmul.f32 %v4463_v27, %v7022_v54  ;;  %v8166_v27 = vld [vmem:[#allocation143_spill] sm:$0xff] }
 0x459   :  { %4468 = vrcp.f32 %v1603_v28 }
 0x45a   :  { %3084 = vmatprep.mubr.f32.mxu0 %v1712_v35 }
 0x45b   :  { %v4465_v17 = vpop.eup %4464  ;;  %3085 = vmatmul.mubr.f32.gmra.mrb[50].mxu0 %v1711_v11  ;;  %v8167_v11 = vld [vmem:[#allocation68_spill] sm:$0xff] }
 0x45c   :  { %v1606_v41 = vpop.xlane.xlu0 %1605  ;;  %v1714_v6 = vmul.f32 %v4465_v17, %v8158_v61  ;;  %v1713_v37 = vmul.f32 %v4465_v17, %v8159_v57 }
 0x45d   :  { %4470 = vrcp.f32 %v1606_v41  ;;  %v8168_v41 = vld [vmem:[#allocation134_spill] sm:$0xff] }
 0x45e   :  { %3089 = vmatprep.mubr.f32.mxu0 %v1714_v6 }
 0x45f   :  { %v4467_v53 = vpop.eup %4466  ;;  %3090 = vmatmul.mubr.f32.gmra.mrb[52].mxu0 %v1713_v37  ;;  %v8169_v37 = vld [vmem:[#allocation69_spill] sm:$0xff] }
 0x460   :  { %v1609_v46 = vpop.xlane.xlu1 %1608  ;;  %v1716_v48 = vmul.f32 %v4467_v53, %v7040_v15  ;;  %v1715_v56 = vmul.f32 %v4467_v53, %v7038_v26 }
 0x461   :  { %4472 = vrcp.f32 %v1609_v46  ;;  %v8170_v46 = vld [vmem:[#allocation135_spill] sm:$0xff] }
 0x462   :  { %3094 = vmatprep.mubr.f32.mxu0 %v1716_v48 }
 0x463   :  { %v4469_v54 = vpop.eup %4468  ;;  %3095 = vmatmul.mubr.f32.gmra.mrb[54].mxu0 %v1715_v56 }
 0x464   :  { %v1612_v36 = vpop.xlane.xlu0 %1611  ;;  %v1718_v29 = vmul.f32 %v4469_v54, %v8160_v14  ;;  %v1717_v1 = vmul.f32 %v4469_v54, %v8161_v10 }
 0x465   :  { %4474 = vrcp.f32 %v1612_v36 }
 0x466   :  { %3099 = vmatprep.mubr.f32.mxu0 %v1718_v29 }
 0x467   :  { %v4471_v30 = vpop.eup %4470  ;;  %3100 = vmatmul.mubr.f32.gmra.mrb[56].mxu0 %v1717_v1 }
 0x468   :  { %v1615_v63 = vpop.xlane.xlu1 %1614  ;;  %v1720_v22 = vmul.f32 %v4471_v30, %v7056_v16  ;;  %v1719_v15 = vmul.f32 %v4471_v30, %v8162_v32 }
 0x469   :  { %4476 = vrcp.f32 %v1615_v63 }
 0x46a   :  { %3104 = vmatprep.mubr.f32.mxu0 %v1720_v22 }
 0x46b   :  { %v4473_v26 = vpop.eup %4472  ;;  %3105 = vmatmul.mubr.f32.gmra.mrb[58].mxu0 %v1719_v15 }
 0x46c   :  { %v1618_v0 = vpop.xlane.xlu0 %1617  ;;  %v1722_v12 = vmul.f32 %v4473_v26, %v8163_v52  ;;  %v1721_v7 = vmul.f32 %v4473_v26, %v8164_v50 }
 0x46d   :  { %4478 = vrcp.f32 %v1618_v0 }
 0x46e   :  { %3109 = vmatprep.mubr.f32.mxu0 %v1722_v12 }
 0x46f   :  { %v4475_v45 = vpop.eup %4474  ;;  %3110 = vmatmul.mubr.f32.gmra.mrb[60].mxu0 %v1721_v7 }
 0x470   :  { %v1621_v39 = vpop.xlane.xlu1 %1620  ;;  %v1724_v21 = vmul.f32 %v4475_v45, %v8165_v40  ;;  %v1723_v16 = vmul.f32 %v4475_v45, %v8166_v27 }
 0x471   :  { %4480 = vrcp.f32 %v1621_v39 }
 0x472   :  { %3114 = vmatprep.mubr.f32.mxu0 %v1724_v21 }
 0x473   :  { %v4477_v28 = vpop.eup %4476  ;;  %3115 = vmatmul.mubr.f32.gmra.mrb[62].mxu0 %v1723_v16 }
 0x474   :  { %v1624_v35 = vpop.xlane.xlu0 %1623  ;;  %v1726_v17 = vmul.f32 %v4477_v28, %v8167_v11  ;;  %v1725_v61 = vmul.f32 %v4477_v28, %v8168_v41 }
 0x475   :  { %4482 = vrcp.f32 %v1624_v35 }
 0x476   :  { %3119 = vmatprep.mubr.f32.mxu0 %v1726_v17 }
 0x477   :  { %v4479_v6 = vpop.eup %4478  ;;  %3120 = vmatmul.mubr.f32.gmra.mrb[64].mxu0 %v1725_v61 }
 0x478   :  { %v1627_v57 = vpop.xlane.xlu1 %1626  ;;  %v1728_v53 = vmul.f32 %v4479_v6, %v8169_v37  ;;  %v1727_v48 = vmul.f32 %v4479_v6, %v8170_v46 }
 0x479   :  { %4484 = vrcp.f32 %v1627_v57 }
 0x47a   :  { %3124 = vmatprep.mubr.f32.mxu0 %v1728_v53 }
 0x47b   :  { %v4481_v56 = vpop.eup %4480  ;;  %3125 = vmatmul.mubr.f32.gmra.mrb[66].mxu0 %v1727_v48 }
 0x47c   :  { %v1630_v54 = vpop.xlane.xlu0 %1629  ;;  %v1730_v36 = vmul.f32 %v4481_v56, %v7098_v44  ;;  %v1729_v14 = vmul.f32 %v4481_v56, %v7096_v55 }
 0x47d   :  { %4486 = vrcp.f32 %v1630_v54 }
 0x47e   :  { %3129 = vmatprep.mubr.f32.mxu0 %v1730_v36 }
 0x47f   :  { %v4483_v29 = vpop.eup %4482  ;;  %3130 = vmatmul.mubr.f32.gmra.mrb[68].mxu0 %v1729_v14 }
 0x480   :  { %v1633_v10 = vpop.xlane.xlu1 %1632  ;;  %v1732_v1 = vmul.f32 %v4483_v29, %v7108_v51  ;;  %v1731_v30 = vmul.f32 %v4483_v29, %v7106_v20 }
 0x481   :  { %4488 = vrcp.f32 %v1633_v10 }
 0x482   :  { %3134 = vmatprep.mubr.f32.mxu0 %v1732_v1 }
 0x483   :  { %v4485_v63 = vpop.eup %4484  ;;  %3135 = vmatmul.mubr.f32.gmra.mrb[70].mxu0 %v1731_v30 }
 0x484   :  { %v1636_v22 = vpop.xlane.xlu0 %1635  ;;  %v1734_v32 = vmul.f32 %v4485_v63, %v7118_v59  ;;  %v1733_v44 = vmul.f32 %v4485_v63, %v7116_v4 }
 0x485   :  { %4490 = vrcp.f32 %v1636_v22 }
 0x486   :  { %3139 = vmatprep.mubr.f32.mxu0 %v1734_v32 }
 0x487   :  { %v4487_v55 = vpop.eup %4486  ;;  %3140 = vmatmul.mubr.f32.gmra.mrb[72].mxu0 %v1733_v44 }
 0x488   :  { %v1639_v15 = vpop.xlane.xlu1 %1638  ;;  %v1736_v26 = vmul.f32 %v4487_v55, %v7128_v9  ;;  %v1735_v51 = vmul.f32 %v4487_v55, %v7126_v60 }
 0x489   :  { %4492 = vrcp.f32 %v1639_v15 }
 0x48a   :  { %3144 = vmatprep.mubr.f32.mxu0 %v1736_v26 }
 0x48b   :  { %v4489_v20 = vpop.eup %4488  ;;  %3145 = vmatmul.mubr.f32.gmra.mrb[74].mxu0 %v1735_v51 }
 0x48c   :  { %v1642_v0 = vpop.xlane.xlu0 %1641  ;;  %v1738_v52 = vmul.f32 %v4489_v20, %v7138_v3  ;;  %v1737_v59 = vmul.f32 %v4489_v20, %v7136_v34 }
 0x48d   :  { %4494 = vrcp.f32 %v1642_v0 }
 0x48e   :  { %3149 = vmatprep.mubr.f32.mxu0 %v1738_v52 }
 0x48f   :  { %v4491_v4 = vpop.eup %4490  ;;  %3150 = vmatmul.mubr.f32.gmra.mrb[76].mxu0 %v1737_v59 }
 0x490   :  { %v1645_v12 = vpop.xlane.xlu1 %1644  ;;  %v1740_v50 = vmul.f32 %v4491_v4, %v7148_v43  ;;  %v1739_v9 = vmul.f32 %v4491_v4, %v7146_v23 }
 0x491   :  { %4496 = vrcp.f32 %v1645_v12 }
 0x492   :  { %3154 = vmatprep.mubr.f32.mxu0 %v1740_v50 }
 0x493   :  { %v4493_v60 = vpop.eup %4492  ;;  %3155 = vmatmul.mubr.f32.gmra.mrb[78].mxu0 %v1739_v9 }
 0x494   :  { %v1648_v7 = vpop.xlane.xlu0 %1647  ;;  %v1742_v45 = vmul.f32 %v4493_v60, %v7158_v38  ;;  %v1741_v3 = vmul.f32 %v4493_v60, %v7156_v42 }
 0x495   :  { %4498 = vrcp.f32 %v1648_v7 }
 0x496   :  { %3159 = vmatprep.mubr.f32.mxu0 %v1742_v45 }
 0x497   :  { %v4495_v34 = vpop.eup %4494  ;;  %3160 = vmatmul.mubr.f32.gmra.mrb[80].mxu0 %v1741_v3 }
 0x498   :  { %v1651_v39 = vpop.xlane.xlu1 %1650  ;;  %v1744_v40 = vmul.f32 %v4495_v34, %v7168_v49  ;;  %v1743_v43 = vmul.f32 %v4495_v34, %v7166_v31 }
 0x499   :  { %4500 = vrcp.f32 %v1651_v39 }
 0x49a   :  { %3164 = vmatprep.mubr.f32.mxu0 %v1744_v40 }
 0x49b   :  { %v4497_v23 = vpop.eup %4496  ;;  %3165 = vmatmul.mubr.f32.gmra.mrb[82].mxu0 %v1743_v43 }
 0x49c   :  { %v1654_v21 = vpop.xlane.xlu0 %1653  ;;  %v1746_v27 = vmul.f32 %v4497_v23, %v7178_v2  ;;  %v1745_v38 = vmul.f32 %v4497_v23, %v7176_v18 }
 0x49d   :  { %4502 = vrcp.f32 %v1654_v21 }
 0x49e   :  { %3169 = vmatprep.mubr.f32.mxu0 %v1746_v27 }
 0x49f   :  { %v4499_v42 = vpop.eup %4498  ;;  %3170 = vmatmul.mubr.f32.gmra.mrb[84].mxu0 %v1745_v38 }
 0x4a0   :  { %v1657_v16 = vpop.xlane.xlu1 %1656  ;;  %v1748_v28 = vmul.f32 %v4499_v42, %v7188_v58  ;;  %v1747_v49 = vmul.f32 %v4499_v42, %v7186_v25 }
 0x4a1   :  { %4504 = vrcp.f32 %v1657_v16 }
 0x4a2   :  { %3174 = vmatprep.mubr.f32.mxu0 %v1748_v28 }
 0x4a3   :  { %v4501_v31 = vpop.eup %4500  ;;  %3175 = vmatmul.mubr.f32.gmra.mrb[86].mxu0 %v1747_v49 }
 0x4a4   :  { %v1660_v35 = vpop.xlane.xlu0 %1659  ;;  %v1750_v11 = vmul.f32 %v4501_v31, %v7198_v8  ;;  %v1749_v2 = vmul.f32 %v4501_v31, %v7196_v62 }
 0x4a5   :  { %4506 = vrcp.f32 %v1660_v35 }
 0x4a6   :  { %3179 = vmatprep.mubr.f32.mxu0 %v1750_v11 }
 0x4a7   :  { %v4503_v18 = vpop.eup %4502  ;;  %3180 = vmatmul.mubr.f32.gmra.mrb[88].mxu0 %v1749_v2 }
 0x4a8   :  { %v1752_v17 = vmul.f32 %v4503_v18, %v7206_v47  ;;  %v1751_v41 = vmul.f32 %v4503_v18, %v7204_v33 }
 0x4aa   :  { %3184 = vmatprep.mubr.f32.mxu0 %v1752_v17 }
 0x4ab   :  { %v4505_v58 = vpop.eup %4504  ;;  %3185 = vmatmul.mubr.f32.gmra.mrb[90].mxu0 %v1751_v41 }
 0x4ac   :  { %v1754_v25 = vmul.f32 %v4505_v58, %v7214_v5  ;;  %v1753_v61 = vmul.f32 %v4505_v58, %v7212_v24 }
 0x4ae   :  { %3189 = vmatprep.mubr.f32.mxu0 %v1754_v25 }
 0x4af   :  { %v4507_v6 = vpop.eup %4506  ;;  %3190 = vmatmul.mubr.f32.gmra.mrb[92].mxu0 %v1753_v61 }
 0x4b0   :  { %v1756_v62 = vmul.f32 %v4507_v6, %v7220_v19  ;;  %v1755_v8 = vmul.f32 %v4507_v6, %v7218_v13 }
 0x4b2   :  { %3194 = vmatprep.mubr.f32.mxu0 %v1756_v62 }
 0x4b3   :  { %3195 = vmatmul.mubr.f32.gmra.mrb[94].mxu0 %v1755_v8 }
 0x50a   :  { %v3041_v57 = vpop.f32.mrb[32].mxu0 }
 0x50b   :  { %3200 = vst.msk [vmem:[%s7424_s6] sm:$0xff] %vm120_vm0, %v3041_v57  ;;  %v3043_v33 = vpop.f32.mrb[33].mxu0 }
 0x50e   :  { %v3046_v47 = vpop.f32.mrb[34].mxu0 }
 0x50f   :  { %3201 = vst.msk [vmem:[%s7424_s6 + $0x8] sm:$0xff] %vm120_vm0, %v3046_v47  ;;  %v3048_v24 = vpop.f32.mrb[35].mxu0 }
 0x512   :  { %v3051_v5 = vpop.f32.mrb[36].mxu0 }
 0x513   :  { %3202 = vst.msk [vmem:[%s7424_s6 + $0x10] sm:$0xff] %vm120_vm0, %v3051_v5  ;;  %v3053_v13 = vpop.f32.mrb[37].mxu0 }
 0x516   :  { %v3056_v19 = vpop.f32.mrb[38].mxu0 }
 0x517   :  { %3203 = vst.msk [vmem:[%s7424_s6 + $0x18] sm:$0xff] %vm120_vm0, %v3056_v19  ;;  %v3058_v37 = vpop.f32.mrb[39].mxu0 }
 0x51a   :  { %v3061_v53 = vpop.f32.mrb[40].mxu0 }
 0x51b   :  { %3204 = vst.msk [vmem:[%s7424_s6 + $0x20] sm:$0xff] %vm120_vm0, %v3061_v53  ;;  %v3063_v46 = vpop.f32.mrb[41].mxu0 }
 0x51e   :  { %v3066_v48 = vpop.f32.mrb[42].mxu0 }
 0x51f   :  { %3205 = vst.msk [vmem:[%s7424_s6 + $0x28] sm:$0xff] %vm120_vm0, %v3066_v48  ;;  %v3068_v56 = vpop.f32.mrb[43].mxu0 }
 0x522   :  { %v3071_v54 = vpop.f32.mrb[44].mxu0 }
 0x523   :  { %3206 = vst.msk [vmem:[%s7424_s6 + $0x30] sm:$0xff] %vm120_vm0, %v3071_v54  ;;  %v3073_v36 = vpop.f32.mrb[45].mxu0 }
 0x526   :  { %v3076_v14 = vpop.f32.mrb[46].mxu0 }
 0x527   :  { %3207 = vst.msk [vmem:[%s7424_s6 + $0x38] sm:$0xff] %vm120_vm0, %v3076_v14  ;;  %v3078_v29 = vpop.f32.mrb[47].mxu0 }
 0x52a   :  { %v3081_v10 = vpop.f32.mrb[48].mxu0 }
 0x52b   :  { %3208 = vst.msk [vmem:[%s7424_s6 + $0x40] sm:$0xff] %vm120_vm0, %v3081_v10  ;;  %v3083_v1 = vpop.f32.mrb[49].mxu0 }
 0x52e   :  { %v3086_v30 = vpop.f32.mrb[50].mxu0 }
 0x52f   :  { %3209 = vst.msk [vmem:[%s7424_s6 + $0x48] sm:$0xff] %vm120_vm0, %v3086_v30  ;;  %v3088_v63 = vpop.f32.mrb[51].mxu0 }
 0x532   :  { %v3091_v22 = vpop.f32.mrb[52].mxu0 }
 0x533   :  { %3210 = vst.msk [vmem:[%s7424_s6 + $0x50] sm:$0xff] %vm120_vm0, %v3091_v22  ;;  %v3093_v32 = vpop.f32.mrb[53].mxu0 }
 0x536   :  { %v3096_v44 = vpop.f32.mrb[54].mxu0 }
 0x537   :  { %3211 = vst.msk [vmem:[%s7424_s6 + $0x58] sm:$0xff] %vm120_vm0, %v3096_v44  ;;  %v3098_v55 = vpop.f32.mrb[55].mxu0 }
 0x53a   :  { %v3101_v15 = vpop.f32.mrb[56].mxu0 }
 0x53b   :  { %3212 = vst.msk [vmem:[%s7424_s6 + $0x60] sm:$0xff] %vm120_vm0, %v3101_v15  ;;  %v3103_v26 = vpop.f32.mrb[57].mxu0 }
 0x53e   :  { %v3106_v51 = vpop.f32.mrb[58].mxu0 }
 0x53f   :  { %3213 = vst.msk [vmem:[%s7424_s6 + $0x68] sm:$0xff] %vm120_vm0, %v3106_v51  ;;  %v3108_v20 = vpop.f32.mrb[59].mxu0 }
 0x542   :  { %v3111_v0 = vpop.f32.mrb[60].mxu0 }
 0x543   :  { %3214 = vst.msk [vmem:[%s7424_s6 + $0x70] sm:$0xff] %vm120_vm0, %v3111_v0  ;;  %v3113_v52 = vpop.f32.mrb[61].mxu0 }
 0x546   :  { %v3116_v59 = vpop.f32.mrb[62].mxu0 }
 0x547   :  { %3215 = vst.msk [vmem:[%s7424_s6 + $0x78] sm:$0xff] %vm120_vm0, %v3116_v59  ;;  %v3118_v4 = vpop.f32.mrb[63].mxu0 }
 0x54a   :  { %v3121_v12 = vpop.f32.mrb[64].mxu0 }
 0x54b   :  { %3216 = vst.msk [vmem:[%s7424_s6 + $0x80] sm:$0xff] %vm120_vm0, %v3121_v12  ;;  %v3123_v50 = vpop.f32.mrb[65].mxu0 }
 0x54e   :  { %v3126_v9 = vpop.f32.mrb[66].mxu0 }
 0x54f   :  { %3217 = vst.msk [vmem:[%s7424_s6 + $0x88] sm:$0xff] %vm120_vm0, %v3126_v9  ;;  %v3128_v60 = vpop.f32.mrb[67].mxu0 }
 0x552   :  { %v3131_v7 = vpop.f32.mrb[68].mxu0 }
 0x553   :  { %3218 = vst.msk [vmem:[%s7424_s6 + $0x90] sm:$0xff] %vm120_vm0, %v3131_v7  ;;  %v3133_v45 = vpop.f32.mrb[69].mxu0 }
 0x556   :  { %v3136_v3 = vpop.f32.mrb[70].mxu0 }
 0x557   :  { %3219 = vst.msk [vmem:[%s7424_s6 + $0x98] sm:$0xff] %vm120_vm0, %v3136_v3  ;;  %v3138_v34 = vpop.f32.mrb[71].mxu0 }
 0x55a   :  { %v3141_v39 = vpop.f32.mrb[72].mxu0 }
 0x55b   :  { %3220 = vst.msk [vmem:[%s7424_s6 + $0xa0] sm:$0xff] %vm120_vm0, %v3141_v39  ;;  %v3143_v40 = vpop.f32.mrb[73].mxu0 }
 0x55e   :  { %v3146_v43 = vpop.f32.mrb[74].mxu0 }
 0x55f   :  { %3221 = vst.msk [vmem:[%s7424_s6 + $0xa8] sm:$0xff] %vm120_vm0, %v3146_v43  ;;  %v3148_v23 = vpop.f32.mrb[75].mxu0 }
 0x562   :  { %v3151_v21 = vpop.f32.mrb[76].mxu0 }
 0x563   :  { %3222 = vst.msk [vmem:[%s7424_s6 + $0xb0] sm:$0xff] %vm120_vm0, %v3151_v21  ;;  %v3153_v27 = vpop.f32.mrb[77].mxu0 }
 0x566   :  { %v3156_v38 = vpop.f32.mrb[78].mxu0 }
 0x567   :  { %3223 = vst.msk [vmem:[%s7424_s6 + $0xb8] sm:$0xff] %vm120_vm0, %v3156_v38  ;;  %v3158_v42 = vpop.f32.mrb[79].mxu0 }
 0x56a   :  { %v3161_v16 = vpop.f32.mrb[80].mxu0 }
 0x56b   :  { %3224 = vst.msk [vmem:[%s7424_s6 + $0xc0] sm:$0xff] %vm120_vm0, %v3161_v16  ;;  %v3163_v28 = vpop.f32.mrb[81].mxu0 }
 0x56e   :  { %v3166_v49 = vpop.f32.mrb[82].mxu0 }
 0x56f   :  { %3225 = vst.msk [vmem:[%s7424_s6 + $0xc8] sm:$0xff] %vm120_vm0, %v3166_v49  ;;  %v3168_v31 = vpop.f32.mrb[83].mxu0 }
 0x572   :  { %v3171_v35 = vpop.f32.mrb[84].mxu0 }
 0x573   :  { %3226 = vst.msk [vmem:[%s7424_s6 + $0xd0] sm:$0xff] %vm120_vm0, %v3171_v35  ;;  %v3173_v11 = vpop.f32.mrb[85].mxu0 }
 0x576   :  { %v3176_v2 = vpop.f32.mrb[86].mxu0 }
 0x577   :  { %3227 = vst.msk [vmem:[%s7424_s6 + $0xd8] sm:$0xff] %vm120_vm0, %v3176_v2  ;;  %v3178_v18 = vpop.f32.mrb[87].mxu0 }
 0x57a   :  { %v3181_v17 = vpop.f32.mrb[88].mxu0 }
 0x57b   :  { %3228 = vst.msk [vmem:[%s7424_s6 + $0xe0] sm:$0xff] %vm120_vm0, %v3181_v17  ;;  %v3183_v41 = vpop.f32.mrb[89].mxu0 }
 0x57e   :  { %v3186_v58 = vpop.f32.mrb[90].mxu0 }
 0x57f   :  { %3229 = vst.msk [vmem:[%s7424_s6 + $0xe8] sm:$0xff] %vm120_vm0, %v3186_v58  ;;  %v3188_v25 = vpop.f32.mrb[91].mxu0 }
 0x582   :  { %v3191_v61 = vpop.f32.mrb[92].mxu0 }
 0x583   :  { %3230 = vst.msk [vmem:[%s7424_s6 + $0xf0] sm:$0xff] %vm120_vm0, %v3191_v61  ;;  %v3193_v6 = vpop.f32.mrb[93].mxu0 }
 0x586   :  { %v3196_v62 = vpop.f32.mrb[94].mxu0 }
 0x587   :  { %3231 = vst.msk [vmem:[%s7424_s6 + $0xf8] sm:$0xff] %vm120_vm0, %v3196_v62  ;;  %v3198_v8 = vpop.f32.mrb[95].mxu0 }

</bundles_post_ra>
